<compile_context>
chip_gen: v5e
topology: v5e:2x2
jax: 0.10.0
libtpu: 0.0.40
codegen_flags: <defaults>
</compile_context>

<pallas_src>
import functools

import jax
import jax.numpy as jnp
from jax.experimental import pallas as pl
from jax.experimental.pallas import tpu as pltpu


def _lstm_fc_kernel(x_ref,        # (T*B, I)  f32, time-major: rows t*B:(t+1)*B = step t
                    wih0_ref,     # (I, 4H)   bf16   W_ih layer0, transposed
                    whh0_ref,     # (H, 4H)   bf16   W_hh layer0, transposed
                    b0_ref,       # (1, 4H)   f32    b_ih0 + b_hh0
                    w1cat_ref,    # (2H, 4H)  bf16   [W_ih1^T ; W_hh1^T]
                    b1_ref,       # (1, 4H)   f32    b_ih1 + b_hh1
                    wfc_ref,      # (H, C)    f32    FC weight, transposed
                    bfc_ref,      # (1, C)    f32
                    out_ref,      # (B, C)    f32
                    *, seq_len, batch, hidden):
    T, B, H = seq_len, batch, hidden

    # --- Hoisted layer-0 input projection for ALL time steps at once. ---
    # (T*B, I) @ (I, 4H) -> (T*B, 4H); bf16 operands, f32 accumulation on MXU.
    xproj = (jnp.dot(x_ref[...].astype(jnp.bfloat16), wih0_ref[...],
                     preferred_element_type=jnp.float32)
             + b0_ref[...])

    # Hoist weight loads out of the unrolled loop (one VMEM->vreg load each).
    whh0 = whh0_ref[...]
    w1cat = w1cat_ref[...]
    b1 = b1_ref[...]

    def gates_to_hc(gates, c):
        # PyTorch gate order along 4H: [i, f, g, o]; H is a multiple of 128 so
        # these static slices land on lane boundaries (free).
        i = jax.nn.sigmoid(gates[:, 0 * H:1 * H])
        f = jax.nn.sigmoid(gates[:, 1 * H:2 * H])
        g = jnp.tanh(gates[:, 2 * H:3 * H])
        o = jax.nn.sigmoid(gates[:, 3 * H:4 * H])
        c_new = f * c + i * g
        h_new = o * jnp.tanh(c_new)
        return h_new, c_new

    h1 = jnp.zeros((B, H), jnp.float32)
    c1 = jnp.zeros((B, H), jnp.float32)
    h2 = jnp.zeros((B, H), jnp.float32)
    c2 = jnp.zeros((B, H), jnp.float32)

    # Fully-unrolled time loop (T is small and static): two MXU matmuls / step.
    for t in range(T):
        # Layer 0: recurrent part only (input part hoisted above).
        g0 = (xproj[t * B:(t + 1) * B, :]
              + jnp.dot(h1.astype(jnp.bfloat16), whh0,
                        preferred_element_type=jnp.float32))
        h1, c1 = gates_to_hc(g0, c1)

        # Layer 1: fused input+recurrent matmul: [h1, h2] @ [W_ih1^T ; W_hh1^T].
        hcat = jnp.concatenate([h1, h2], axis=-1).astype(jnp.bfloat16)
        g1 = jnp.dot(hcat, w1cat, preferred_element_type=jnp.float32) + b1
        h2, c2 = gates_to_hc(g1, c2)

    # FC head on the last time step's top-layer hidden state (written once).
    out_ref[...] = (jnp.dot(h2, wfc_ref[...], preferred_element_type=jnp.float32)
                    + bfc_ref[...])


def rnn_forward(x, params):
    """x: (B, T, I) float32. Returns (B, num_classes) float32."""
    B, T, I = x.shape
    H = params["whh0"].shape[0]
    C = params["wfc"].shape[1]

    # Layout plumbing (wrapper side): time-major 2-D view so each time step is
    # a contiguous block of B rows for the hoisted input projection.
    x2d = jnp.transpose(x, (1, 0, 2)).reshape(T * B, I)

    # Every operand is small enough to live fully in VMEM -> full-array blocks.
    full = lambda shape: pl.BlockSpec(shape, lambda i, s=shape: (0,) * len(s))

    kernel = functools.partial(_lstm_fc_kernel, seq_len=T, batch=B, hidden=H)

    return pl.pallas_call(
        kernel,
        out_shape=jax.ShapeDtypeStruct((B, C), jnp.float32),
        grid=(1,),
        in_specs=[
            full((T * B, I)),        # x (time-major 2-D)
            full((I, 4 * H)),        # W_ih0^T (bf16)
            full((H, 4 * H)),        # W_hh0^T (bf16)
            full((1, 4 * H)),        # b0
            full((2 * H, 4 * H)),    # [W_ih1^T ; W_hh1^T] (bf16)
            full((1, 4 * H)),        # b1
            full((H, C)),            # W_fc^T
            full((1, C)),            # b_fc
        ],
        out_specs=pl.BlockSpec((B, C), lambda i: (0, 0)),
        compiler_params=pltpu.CompilerParams(
            dimension_semantics=("arbitrary",)),
    )(x2d,
      params["wih0"], params["whh0"], params["b0"],
      params["w1cat"], params["b1"],
      params["wfc"], params["bfc"])


def rnn_reference(x, params):
    """Pure-JAX reference of the same 2-layer LSTM + FC (same bf16-weight
    matmuls, f32 accumulation, f32 gate math — identical math to the kernel)."""
    B, T, I = x.shape
    H = params["whh0"].shape[0]
    f32 = jnp.float32

    def gates_to_hc(gates, c):
        i = jax.nn.sigmoid(gates[:, 0 * H:1 * H])
        f = jax.nn.sigmoid(gates[:, 1 * H:2 * H])
        g = jnp.tanh(gates[:, 2 * H:3 * H])
        o = jax.nn.sigmoid(gates[:, 3 * H:4 * H])
        c_new = f * c + i * g
        return o * jnp.tanh(c_new), c_new

    wih1 = params["w1cat"][:H]
    whh1 = params["w1cat"][H:]

    h1 = jnp.zeros((B, H), f32)
    c1 = jnp.zeros((B, H), f32)
    h2 = jnp.zeros((B, H), f32)
    c2 = jnp.zeros((B, H), f32)
    for t in range(T):
        x_t = x[:, t, :]
        g0 = (jnp.dot(x_t.astype(jnp.bfloat16), params["wih0"],
                      preferred_element_type=f32)
              + jnp.dot(h1.astype(jnp.bfloat16), params["whh0"],
                        preferred_element_type=f32)
              + params["b0"])
        h1, c1 = gates_to_hc(g0, c1)
        g1 = (jnp.dot(h1.astype(jnp.bfloat16), wih1, preferred_element_type=f32)
              + jnp.dot(h2.astype(jnp.bfloat16), whh1, preferred_element_type=f32)
              + params["b1"])
        h2, c2 = gates_to_hc(g1, c2)
    return jnp.dot(h2, params["wfc"], preferred_element_type=f32) + params["bfc"]


def init_params(key, input_size, hidden_size, num_classes):
    """Deterministic synthetic parameters (PyTorch-style uniform init),
    pre-transposed / pre-fused for the kernel."""
    H = hidden_size
    bound = 1.0 / float(H) ** 0.5
    ks = jax.random.split(key, 10)
    u = lambda k, shape: jax.random.uniform(k, shape, jnp.float32, -bound, bound)

    # Layer 0
    w_ih0 = u(ks[0], (4 * H, input_size))
    w_hh0 = u(ks[1], (4 * H, H))
    b_ih0 = u(ks[2], (4 * H,))
    b_hh0 = u(ks[3], (4 * H,))
    # Layer 1
    w_ih1 = u(ks[4], (4 * H, H))
    w_hh1 = u(ks[5], (4 * H, H))
    b_ih1 = u(ks[6], (4 * H,))
    b_hh1 = u(ks[7], (4 * H,))
    # FC head
    w_fc = u(ks[8], (num_classes, H))
    b_fc = u(ks[9], (num_classes,))

    return {
        # bf16 matmul operands (f32 accumulation inside the kernel)
        "wih0": w_ih0.T.astype(jnp.bfloat16),                                       # (I, 4H)
        "whh0": w_hh0.T.astype(jnp.bfloat16),                                       # (H, 4H)
        "w1cat": jnp.concatenate([w_ih1.T, w_hh1.T], axis=0).astype(jnp.bfloat16),  # (2H, 4H)
        # f32 biases / FC head
        "b0": (b_ih0 + b_hh0).reshape(1, 4 * H),
        "b1": (b_ih1 + b_hh1).reshape(1, 4 * H),
        "wfc": w_fc.T,                                                              # (H, C)
        "bfc": b_fc.reshape(1, num_classes),                                        # (1, C)
    }


if __name__ == "__main__":
    # Small shapes consistent with the module: x is (batch, seq, input_size).
    batch, seq_len, input_size = 2, 8, 28
    hidden_size, num_classes = 128, 10

    key = jax.random.PRNGKey(0)
    k_x, k_p = jax.random.split(key)
    x = jax.random.normal(k_x, (batch, seq_len, input_size), jnp.float32)
    params = init_params(k_p, input_size, hidden_size, num_classes)

    fwd = jax.jit(functools.partial(rnn_forward, params=params))
    out = jax.block_until_ready(fwd(x))

    ref = rnn_reference(x, params)
    assert out.shape == (batch, num_classes)
    assert jnp.allclose(out, ref, rtol=1e-3, atol=1e-3), "mismatch vs JAX reference"

    print("KERNEL_OK")
</pallas_src>

<mosaic_0001>
module attributes {stable_mosaic.version = 11 : i64} {
  func.func @_lstm_fc_kernel(%arg0: i32, %arg1: memref<16x28xf32, #tpu.memory_space<vmem>>, %arg2: memref<28x512xbf16, #tpu.memory_space<vmem>>, %arg3: memref<128x512xbf16, #tpu.memory_space<vmem>>, %arg4: memref<1x512xf32, #tpu.memory_space<vmem>>, %arg5: memref<256x512xbf16, #tpu.memory_space<vmem>>, %arg6: memref<1x512xf32, #tpu.memory_space<vmem>>, %arg7: memref<128x10xf32, #tpu.memory_space<vmem>>, %arg8: memref<1x10xf32, #tpu.memory_space<vmem>>, %arg9: memref<2x10xf32, #tpu.memory_space<vmem>>) attributes {dimension_semantics = [#tpu.dimension_semantics<arbitrary>], iteration_bounds = array<i64: 1>, scalar_prefetch = 0 : i64, scratch_operands = 0 : i64, tpu.core_type = #tpu.core_type<tc>, window_params = [{pipeline_mode = #tpu.pipeline_mode<synchronous>, transform_indices = @transform_0, window_bounds = array<i64: 16, 28>}, {pipeline_mode = #tpu.pipeline_mode<synchronous>, transform_indices = @transform_1, window_bounds = array<i64: 28, 512>}, {pipeline_mode = #tpu.pipeline_mode<synchronous>, transform_indices = @transform_2, window_bounds = array<i64: 128, 512>}, {pipeline_mode = #tpu.pipeline_mode<synchronous>, transform_indices = @transform_3, window_bounds = array<i64: 1, 512>}, {pipeline_mode = #tpu.pipeline_mode<synchronous>, transform_indices = @transform_4, window_bounds = array<i64: 256, 512>}, {pipeline_mode = #tpu.pipeline_mode<synchronous>, transform_indices = @transform_5, window_bounds = array<i64: 1, 512>}, {pipeline_mode = #tpu.pipeline_mode<synchronous>, transform_indices = @transform_6, window_bounds = array<i64: 128, 10>}, {pipeline_mode = #tpu.pipeline_mode<synchronous>, transform_indices = @transform_7, window_bounds = array<i64: 1, 10>}, {pipeline_mode = #tpu.pipeline_mode<synchronous>, transform_indices = @transform_8, window_bounds = array<i64: 2, 10>}]} {
    %c0 = arith.constant 0 : index
    %c0_0 = arith.constant 0 : index
    %0 = vector.load %arg1[%c0, %c0_0] : memref<16x28xf32, #tpu.memory_space<vmem>>, vector<16x28xf32>
    %1 = arith.truncf %0 : vector<16x28xf32> to vector<16x28xbf16>
    %c0_1 = arith.constant 0 : index
    %c0_2 = arith.constant 0 : index
    %2 = vector.load %arg2[%c0_1, %c0_2] : memref<28x512xbf16, #tpu.memory_space<vmem>>, vector<28x512xbf16>
    %cst = arith.constant dense<0.000000e+00> : vector<16x512xf32>
    %3 = tpu.matmul %1, %2, %cst {dimension_numbers = #tpu.dot_dimension_numbers<[1], [0], [0], [1], [0, 0, 1, 1], [], []>} : vector<16x28xbf16>, vector<28x512xbf16>, vector<16x512xf32> -> vector<16x512xf32>
    %c0_3 = arith.constant 0 : index
    %c0_4 = arith.constant 0 : index
    %4 = vector.load %arg4[%c0_3, %c0_4] : memref<1x512xf32, #tpu.memory_space<vmem>>, vector<1x512xf32>
    %5 = vector.broadcast %4 : vector<1x512xf32> to vector<16x512xf32>
    %6 = arith.addf %3, %5 : vector<16x512xf32>
    %c0_5 = arith.constant 0 : index
    %c0_6 = arith.constant 0 : index
    %7 = vector.load %arg3[%c0_5, %c0_6] : memref<128x512xbf16, #tpu.memory_space<vmem>>, vector<128x512xbf16>
    %c0_7 = arith.constant 0 : index
    %c0_8 = arith.constant 0 : index
    %8 = vector.load %arg5[%c0_7, %c0_8] : memref<256x512xbf16, #tpu.memory_space<vmem>>, vector<256x512xbf16>
    %c0_9 = arith.constant 0 : index
    %c0_10 = arith.constant 0 : index
    %9 = vector.load %arg6[%c0_9, %c0_10] : memref<1x512xf32, #tpu.memory_space<vmem>>, vector<1x512xf32>
    %cst_11 = arith.constant 0.000000e+00 : f32
    %10 = vector.broadcast %cst_11 : f32 to vector<2x128xf32>
    %cst_12 = arith.constant 0.000000e+00 : f32
    %11 = vector.broadcast %cst_12 : f32 to vector<2x128xf32>
    %cst_13 = arith.constant 0.000000e+00 : f32
    %12 = vector.broadcast %cst_13 : f32 to vector<2x128xf32>
    %cst_14 = arith.constant 0.000000e+00 : f32
    %13 = vector.broadcast %cst_14 : f32 to vector<2x128xf32>
    %14 = vector.extract_strided_slice %6 {offsets = [0, 0], sizes = [2, 512], strides = [1, 1]} : vector<16x512xf32> to vector<2x512xf32>
    %15 = arith.truncf %10 : vector<2x128xf32> to vector<2x128xbf16>
    %cst_15 = arith.constant dense<0.000000e+00> : vector<2x512xf32>
    %16 = tpu.matmul %15, %7, %cst_15 {dimension_numbers = #tpu.dot_dimension_numbers<[1], [0], [0], [1], [0, 0, 1, 1], [], []>} : vector<2x128xbf16>, vector<128x512xbf16>, vector<2x512xf32> -> vector<2x512xf32>
    %17 = arith.addf %14, %16 : vector<2x512xf32>
    %18 = vector.extract_strided_slice %17 {offsets = [0, 0], sizes = [2, 128], strides = [1, 1]} : vector<2x512xf32> to vector<2x128xf32>
    %19 = arith.negf %18 : vector<2x128xf32>
    %20 = math.exp %19 : vector<2x128xf32>
    %cst_16 = arith.constant 1.000000e+00 : f32
    %21 = vector.broadcast %cst_16 : f32 to vector<2x128xf32>
    %22 = arith.addf %21, %20 : vector<2x128xf32>
    %23 = arith.divf %21, %22 : vector<2x128xf32>
    %24 = vector.extract_strided_slice %17 {offsets = [0, 128], sizes = [2, 128], strides = [1, 1]} : vector<2x512xf32> to vector<2x128xf32>
    %25 = arith.negf %24 : vector<2x128xf32>
    %26 = math.exp %25 : vector<2x128xf32>
    %cst_17 = arith.constant 1.000000e+00 : f32
    %27 = vector.broadcast %cst_17 : f32 to vector<2x128xf32>
    %28 = arith.addf %27, %26 : vector<2x128xf32>
    %29 = arith.divf %27, %28 : vector<2x128xf32>
    %30 = vector.extract_strided_slice %17 {offsets = [0, 256], sizes = [2, 128], strides = [1, 1]} : vector<2x512xf32> to vector<2x128xf32>
    %31 = math.tanh %30 : vector<2x128xf32>
    %32 = vector.extract_strided_slice %17 {offsets = [0, 384], sizes = [2, 128], strides = [1, 1]} : vector<2x512xf32> to vector<2x128xf32>
    %33 = arith.negf %32 : vector<2x128xf32>
    %34 = math.exp %33 : vector<2x128xf32>
    %cst_18 = arith.constant 1.000000e+00 : f32
    %35 = vector.broadcast %cst_18 : f32 to vector<2x128xf32>
    %36 = arith.addf %35, %34 : vector<2x128xf32>
    %37 = arith.divf %35, %36 : vector<2x128xf32>
    %38 = arith.mulf %29, %11 : vector<2x128xf32>
    %39 = arith.mulf %23, %31 : vector<2x128xf32>
    %40 = arith.addf %38, %39 : vector<2x128xf32>
    %41 = math.tanh %40 : vector<2x128xf32>
    %42 = arith.mulf %37, %41 : vector<2x128xf32>
    %43 = tpu.concatenate %42, %12 in 1 : vector<2x128xf32>, vector<2x128xf32> -> vector<2x256xf32>
    %44 = arith.truncf %43 : vector<2x256xf32> to vector<2x256xbf16>
    %cst_19 = arith.constant dense<0.000000e+00> : vector<2x512xf32>
    %45 = tpu.matmul %44, %8, %cst_19 {dimension_numbers = #tpu.dot_dimension_numbers<[1], [0], [0], [1], [0, 0, 1, 1], [], []>} : vector<2x256xbf16>, vector<256x512xbf16>, vector<2x512xf32> -> vector<2x512xf32>
    %46 = vector.broadcast %9 : vector<1x512xf32> to vector<2x512xf32>
    %47 = arith.addf %45, %46 : vector<2x512xf32>
    %48 = vector.extract_strided_slice %47 {offsets = [0, 0], sizes = [2, 128], strides = [1, 1]} : vector<2x512xf32> to vector<2x128xf32>
    %49 = arith.negf %48 : vector<2x128xf32>
    %50 = math.exp %49 : vector<2x128xf32>
    %cst_20 = arith.constant 1.000000e+00 : f32
    %51 = vector.broadcast %cst_20 : f32 to vector<2x128xf32>
    %52 = arith.addf %51, %50 : vector<2x128xf32>
    %53 = arith.divf %51, %52 : vector<2x128xf32>
    %54 = vector.extract_strided_slice %47 {offsets = [0, 128], sizes = [2, 128], strides = [1, 1]} : vector<2x512xf32> to vector<2x128xf32>
    %55 = arith.negf %54 : vector<2x128xf32>
    %56 = math.exp %55 : vector<2x128xf32>
    %cst_21 = arith.constant 1.000000e+00 : f32
    %57 = vector.broadcast %cst_21 : f32 to vector<2x128xf32>
    %58 = arith.addf %57, %56 : vector<2x128xf32>
    %59 = arith.divf %57, %58 : vector<2x128xf32>
    %60 = vector.extract_strided_slice %47 {offsets = [0, 256], sizes = [2, 128], strides = [1, 1]} : vector<2x512xf32> to vector<2x128xf32>
    %61 = math.tanh %60 : vector<2x128xf32>
    %62 = vector.extract_strided_slice %47 {offsets = [0, 384], sizes = [2, 128], strides = [1, 1]} : vector<2x512xf32> to vector<2x128xf32>
    %63 = arith.negf %62 : vector<2x128xf32>
    %64 = math.exp %63 : vector<2x128xf32>
    %cst_22 = arith.constant 1.000000e+00 : f32
    %65 = vector.broadcast %cst_22 : f32 to vector<2x128xf32>
    %66 = arith.addf %65, %64 : vector<2x128xf32>
    %67 = arith.divf %65, %66 : vector<2x128xf32>
    %68 = arith.mulf %59, %13 : vector<2x128xf32>
    %69 = arith.mulf %53, %61 : vector<2x128xf32>
    %70 = arith.addf %68, %69 : vector<2x128xf32>
    %71 = math.tanh %70 : vector<2x128xf32>
    %72 = arith.mulf %67, %71 : vector<2x128xf32>
    %73 = vector.extract_strided_slice %6 {offsets = [2, 0], sizes = [2, 512], strides = [1, 1]} : vector<16x512xf32> to vector<2x512xf32>
    %74 = arith.truncf %42 : vector<2x128xf32> to vector<2x128xbf16>
    %cst_23 = arith.constant dense<0.000000e+00> : vector<2x512xf32>
    %75 = tpu.matmul %74, %7, %cst_23 {dimension_numbers = #tpu.dot_dimension_numbers<[1], [0], [0], [1], [0, 0, 1, 1], [], []>} : vector<2x128xbf16>, vector<128x512xbf16>, vector<2x512xf32> -> vector<2x512xf32>
    %76 = arith.addf %73, %75 : vector<2x512xf32>
    %77 = vector.extract_strided_slice %76 {offsets = [0, 0], sizes = [2, 128], strides = [1, 1]} : vector<2x512xf32> to vector<2x128xf32>
    %78 = arith.negf %77 : vector<2x128xf32>
    %79 = math.exp %78 : vector<2x128xf32>
    %cst_24 = arith.constant 1.000000e+00 : f32
    %80 = vector.broadcast %cst_24 : f32 to vector<2x128xf32>
    %81 = arith.addf %80, %79 : vector<2x128xf32>
    %82 = arith.divf %80, %81 : vector<2x128xf32>
    %83 = vector.extract_strided_slice %76 {offsets = [0, 128], sizes = [2, 128], strides = [1, 1]} : vector<2x512xf32> to vector<2x128xf32>
    %84 = arith.negf %83 : vector<2x128xf32>
    %85 = math.exp %84 : vector<2x128xf32>
    %cst_25 = arith.constant 1.000000e+00 : f32
    %86 = vector.broadcast %cst_25 : f32 to vector<2x128xf32>
    %87 = arith.addf %86, %85 : vector<2x128xf32>
    %88 = arith.divf %86, %87 : vector<2x128xf32>
    %89 = vector.extract_strided_slice %76 {offsets = [0, 256], sizes = [2, 128], strides = [1, 1]} : vector<2x512xf32> to vector<2x128xf32>
    %90 = math.tanh %89 : vector<2x128xf32>
    %91 = vector.extract_strided_slice %76 {offsets = [0, 384], sizes = [2, 128], strides = [1, 1]} : vector<2x512xf32> to vector<2x128xf32>
    %92 = arith.negf %91 : vector<2x128xf32>
    %93 = math.exp %92 : vector<2x128xf32>
    %cst_26 = arith.constant 1.000000e+00 : f32
    %94 = vector.broadcast %cst_26 : f32 to vector<2x128xf32>
    %95 = arith.addf %94, %93 : vector<2x128xf32>
    %96 = arith.divf %94, %95 : vector<2x128xf32>
    %97 = arith.mulf %88, %40 : vector<2x128xf32>
    %98 = arith.mulf %82, %90 : vector<2x128xf32>
    %99 = arith.addf %97, %98 : vector<2x128xf32>
    %100 = math.tanh %99 : vector<2x128xf32>
    %101 = arith.mulf %96, %100 : vector<2x128xf32>
    %102 = tpu.concatenate %101, %72 in 1 : vector<2x128xf32>, vector<2x128xf32> -> vector<2x256xf32>
    %103 = arith.truncf %102 : vector<2x256xf32> to vector<2x256xbf16>
    %cst_27 = arith.constant dense<0.000000e+00> : vector<2x512xf32>
    %104 = tpu.matmul %103, %8, %cst_27 {dimension_numbers = #tpu.dot_dimension_numbers<[1], [0], [0], [1], [0, 0, 1, 1], [], []>} : vector<2x256xbf16>, vector<256x512xbf16>, vector<2x512xf32> -> vector<2x512xf32>
    %105 = vector.broadcast %9 : vector<1x512xf32> to vector<2x512xf32>
    %106 = arith.addf %104, %105 : vector<2x512xf32>
    %107 = vector.extract_strided_slice %106 {offsets = [0, 0], sizes = [2, 128], strides = [1, 1]} : vector<2x512xf32> to vector<2x128xf32>
    %108 = arith.negf %107 : vector<2x128xf32>
    %109 = math.exp %108 : vector<2x128xf32>
    %cst_28 = arith.constant 1.000000e+00 : f32
    %110 = vector.broadcast %cst_28 : f32 to vector<2x128xf32>
    %111 = arith.addf %110, %109 : vector<2x128xf32>
    %112 = arith.divf %110, %111 : vector<2x128xf32>
    %113 = vector.extract_strided_slice %106 {offsets = [0, 128], sizes = [2, 128], strides = [1, 1]} : vector<2x512xf32> to vector<2x128xf32>
    %114 = arith.negf %113 : vector<2x128xf32>
    %115 = math.exp %114 : vector<2x128xf32>
    %cst_29 = arith.constant 1.000000e+00 : f32
    %116 = vector.broadcast %cst_29 : f32 to vector<2x128xf32>
    %117 = arith.addf %116, %115 : vector<2x128xf32>
    %118 = arith.divf %116, %117 : vector<2x128xf32>
    %119 = vector.extract_strided_slice %106 {offsets = [0, 256], sizes = [2, 128], strides = [1, 1]} : vector<2x512xf32> to vector<2x128xf32>
    %120 = math.tanh %119 : vector<2x128xf32>
    %121 = vector.extract_strided_slice %106 {offsets = [0, 384], sizes = [2, 128], strides = [1, 1]} : vector<2x512xf32> to vector<2x128xf32>
    %122 = arith.negf %121 : vector<2x128xf32>
    %123 = math.exp %122 : vector<2x128xf32>
    %cst_30 = arith.constant 1.000000e+00 : f32
    %124 = vector.broadcast %cst_30 : f32 to vector<2x128xf32>
    %125 = arith.addf %124, %123 : vector<2x128xf32>
    %126 = arith.divf %124, %125 : vector<2x128xf32>
    %127 = arith.mulf %118, %70 : vector<2x128xf32>
    %128 = arith.mulf %112, %120 : vector<2x128xf32>
    %129 = arith.addf %127, %128 : vector<2x128xf32>
    %130 = math.tanh %129 : vector<2x128xf32>
    %131 = arith.mulf %126, %130 : vector<2x128xf32>
    %132 = vector.extract_strided_slice %6 {offsets = [4, 0], sizes = [2, 512], strides = [1, 1]} : vector<16x512xf32> to vector<2x512xf32>
    %133 = arith.truncf %101 : vector<2x128xf32> to vector<2x128xbf16>
    %cst_31 = arith.constant dense<0.000000e+00> : vector<2x512xf32>
    %134 = tpu.matmul %133, %7, %cst_31 {dimension_numbers = #tpu.dot_dimension_numbers<[1], [0], [0], [1], [0, 0, 1, 1], [], []>} : vector<2x128xbf16>, vector<128x512xbf16>, vector<2x512xf32> -> vector<2x512xf32>
    %135 = arith.addf %132, %134 : vector<2x512xf32>
    %136 = vector.extract_strided_slice %135 {offsets = [0, 0], sizes = [2, 128], strides = [1, 1]} : vector<2x512xf32> to vector<2x128xf32>
    %137 = arith.negf %136 : vector<2x128xf32>
    %138 = math.exp %137 : vector<2x128xf32>
    %cst_32 = arith.constant 1.000000e+00 : f32
    %139 = vector.broadcast %cst_32 : f32 to vector<2x128xf32>
    %140 = arith.addf %139, %138 : vector<2x128xf32>
    %141 = arith.divf %139, %140 : vector<2x128xf32>
    %142 = vector.extract_strided_slice %135 {offsets = [0, 128], sizes = [2, 128], strides = [1, 1]} : vector<2x512xf32> to vector<2x128xf32>
    %143 = arith.negf %142 : vector<2x128xf32>
    %144 = math.exp %143 : vector<2x128xf32>
    %cst_33 = arith.constant 1.000000e+00 : f32
    %145 = vector.broadcast %cst_33 : f32 to vector<2x128xf32>
    %146 = arith.addf %145, %144 : vector<2x128xf32>
    %147 = arith.divf %145, %146 : vector<2x128xf32>
    %148 = vector.extract_strided_slice %135 {offsets = [0, 256], sizes = [2, 128], strides = [1, 1]} : vector<2x512xf32> to vector<2x128xf32>
    %149 = math.tanh %148 : vector<2x128xf32>
    %150 = vector.extract_strided_slice %135 {offsets = [0, 384], sizes = [2, 128], strides = [1, 1]} : vector<2x512xf32> to vector<2x128xf32>
    %151 = arith.negf %150 : vector<2x128xf32>
    %152 = math.exp %151 : vector<2x128xf32>
    %cst_34 = arith.constant 1.000000e+00 : f32
    %153 = vector.broadcast %cst_34 : f32 to vector<2x128xf32>
    %154 = arith.addf %153, %152 : vector<2x128xf32>
    %155 = arith.divf %153, %154 : vector<2x128xf32>
    %156 = arith.mulf %147, %99 : vector<2x128xf32>
    %157 = arith.mulf %141, %149 : vector<2x128xf32>
    %158 = arith.addf %156, %157 : vector<2x128xf32>
    %159 = math.tanh %158 : vector<2x128xf32>
    %160 = arith.mulf %155, %159 : vector<2x128xf32>
    %161 = tpu.concatenate %160, %131 in 1 : vector<2x128xf32>, vector<2x128xf32> -> vector<2x256xf32>
    %162 = arith.truncf %161 : vector<2x256xf32> to vector<2x256xbf16>
    %cst_35 = arith.constant dense<0.000000e+00> : vector<2x512xf32>
    %163 = tpu.matmul %162, %8, %cst_35 {dimension_numbers = #tpu.dot_dimension_numbers<[1], [0], [0], [1], [0, 0, 1, 1], [], []>} : vector<2x256xbf16>, vector<256x512xbf16>, vector<2x512xf32> -> vector<2x512xf32>
    %164 = vector.broadcast %9 : vector<1x512xf32> to vector<2x512xf32>
    %165 = arith.addf %163, %164 : vector<2x512xf32>
    %166 = vector.extract_strided_slice %165 {offsets = [0, 0], sizes = [2, 128], strides = [1, 1]} : vector<2x512xf32> to vector<2x128xf32>
    %167 = arith.negf %166 : vector<2x128xf32>
    %168 = math.exp %167 : vector<2x128xf32>
    %cst_36 = arith.constant 1.000000e+00 : f32
    %169 = vector.broadcast %cst_36 : f32 to vector<2x128xf32>
    %170 = arith.addf %169, %168 : vector<2x128xf32>
    %171 = arith.divf %169, %170 : vector<2x128xf32>
    %172 = vector.extract_strided_slice %165 {offsets = [0, 128], sizes = [2, 128], strides = [1, 1]} : vector<2x512xf32> to vector<2x128xf32>
    %173 = arith.negf %172 : vector<2x128xf32>
    %174 = math.exp %173 : vector<2x128xf32>
    %cst_37 = arith.constant 1.000000e+00 : f32
    %175 = vector.broadcast %cst_37 : f32 to vector<2x128xf32>
    %176 = arith.addf %175, %174 : vector<2x128xf32>
    %177 = arith.divf %175, %176 : vector<2x128xf32>
    %178 = vector.extract_strided_slice %165 {offsets = [0, 256], sizes = [2, 128], strides = [1, 1]} : vector<2x512xf32> to vector<2x128xf32>
    %179 = math.tanh %178 : vector<2x128xf32>
    %180 = vector.extract_strided_slice %165 {offsets = [0, 384], sizes = [2, 128], strides = [1, 1]} : vector<2x512xf32> to vector<2x128xf32>
    %181 = arith.negf %180 : vector<2x128xf32>
    %182 = math.exp %181 : vector<2x128xf32>
    %cst_38 = arith.constant 1.000000e+00 : f32
    %183 = vector.broadcast %cst_38 : f32 to vector<2x128xf32>
    %184 = arith.addf %183, %182 : vector<2x128xf32>
    %185 = arith.divf %183, %184 : vector<2x128xf32>
    %186 = arith.mulf %177, %129 : vector<2x128xf32>
    %187 = arith.mulf %171, %179 : vector<2x128xf32>
    %188 = arith.addf %186, %187 : vector<2x128xf32>
    %189 = math.tanh %188 : vector<2x128xf32>
    %190 = arith.mulf %185, %189 : vector<2x128xf32>
    %191 = vector.extract_strided_slice %6 {offsets = [6, 0], sizes = [2, 512], strides = [1, 1]} : vector<16x512xf32> to vector<2x512xf32>
    %192 = arith.truncf %160 : vector<2x128xf32> to vector<2x128xbf16>
    %cst_39 = arith.constant dense<0.000000e+00> : vector<2x512xf32>
    %193 = tpu.matmul %192, %7, %cst_39 {dimension_numbers = #tpu.dot_dimension_numbers<[1], [0], [0], [1], [0, 0, 1, 1], [], []>} : vector<2x128xbf16>, vector<128x512xbf16>, vector<2x512xf32> -> vector<2x512xf32>
    %194 = arith.addf %191, %193 : vector<2x512xf32>
    %195 = vector.extract_strided_slice %194 {offsets = [0, 0], sizes = [2, 128], strides = [1, 1]} : vector<2x512xf32> to vector<2x128xf32>
    %196 = arith.negf %195 : vector<2x128xf32>
    %197 = math.exp %196 : vector<2x128xf32>
    %cst_40 = arith.constant 1.000000e+00 : f32
    %198 = vector.broadcast %cst_40 : f32 to vector<2x128xf32>
    %199 = arith.addf %198, %197 : vector<2x128xf32>
    %200 = arith.divf %198, %199 : vector<2x128xf32>
    %201 = vector.extract_strided_slice %194 {offsets = [0, 128], sizes = [2, 128], strides = [1, 1]} : vector<2x512xf32> to vector<2x128xf32>
    %202 = arith.negf %201 : vector<2x128xf32>
    %203 = math.exp %202 : vector<2x128xf32>
    %cst_41 = arith.constant 1.000000e+00 : f32
    %204 = vector.broadcast %cst_41 : f32 to vector<2x128xf32>
    %205 = arith.addf %204, %203 : vector<2x128xf32>
    %206 = arith.divf %204, %205 : vector<2x128xf32>
    %207 = vector.extract_strided_slice %194 {offsets = [0, 256], sizes = [2, 128], strides = [1, 1]} : vector<2x512xf32> to vector<2x128xf32>
    %208 = math.tanh %207 : vector<2x128xf32>
    %209 = vector.extract_strided_slice %194 {offsets = [0, 384], sizes = [2, 128], strides = [1, 1]} : vector<2x512xf32> to vector<2x128xf32>
    %210 = arith.negf %209 : vector<2x128xf32>
    %211 = math.exp %210 : vector<2x128xf32>
    %cst_42 = arith.constant 1.000000e+00 : f32
    %212 = vector.broadcast %cst_42 : f32 to vector<2x128xf32>
    %213 = arith.addf %212, %211 : vector<2x128xf32>
    %214 = arith.divf %212, %213 : vector<2x128xf32>
    %215 = arith.mulf %206, %158 : vector<2x128xf32>
    %216 = arith.mulf %200, %208 : vector<2x128xf32>
    %217 = arith.addf %215, %216 : vector<2x128xf32>
    %218 = math.tanh %217 : vector<2x128xf32>
    %219 = arith.mulf %214, %218 : vector<2x128xf32>
    %220 = tpu.concatenate %219, %190 in 1 : vector<2x128xf32>, vector<2x128xf32> -> vector<2x256xf32>
    %221 = arith.truncf %220 : vector<2x256xf32> to vector<2x256xbf16>
    %cst_43 = arith.constant dense<0.000000e+00> : vector<2x512xf32>
    %222 = tpu.matmul %221, %8, %cst_43 {dimension_numbers = #tpu.dot_dimension_numbers<[1], [0], [0], [1], [0, 0, 1, 1], [], []>} : vector<2x256xbf16>, vector<256x512xbf16>, vector<2x512xf32> -> vector<2x512xf32>
    %223 = vector.broadcast %9 : vector<1x512xf32> to vector<2x512xf32>
    %224 = arith.addf %222, %223 : vector<2x512xf32>
    %225 = vector.extract_strided_slice %224 {offsets = [0, 0], sizes = [2, 128], strides = [1, 1]} : vector<2x512xf32> to vector<2x128xf32>
    %226 = arith.negf %225 : vector<2x128xf32>
    %227 = math.exp %226 : vector<2x128xf32>
    %cst_44 = arith.constant 1.000000e+00 : f32
    %228 = vector.broadcast %cst_44 : f32 to vector<2x128xf32>
    %229 = arith.addf %228, %227 : vector<2x128xf32>
    %230 = arith.divf %228, %229 : vector<2x128xf32>
    %231 = vector.extract_strided_slice %224 {offsets = [0, 128], sizes = [2, 128], strides = [1, 1]} : vector<2x512xf32> to vector<2x128xf32>
    %232 = arith.negf %231 : vector<2x128xf32>
    %233 = math.exp %232 : vector<2x128xf32>
    %cst_45 = arith.constant 1.000000e+00 : f32
    %234 = vector.broadcast %cst_45 : f32 to vector<2x128xf32>
    %235 = arith.addf %234, %233 : vector<2x128xf32>
    %236 = arith.divf %234, %235 : vector<2x128xf32>
    %237 = vector.extract_strided_slice %224 {offsets = [0, 256], sizes = [2, 128], strides = [1, 1]} : vector<2x512xf32> to vector<2x128xf32>
    %238 = math.tanh %237 : vector<2x128xf32>
    %239 = vector.extract_strided_slice %224 {offsets = [0, 384], sizes = [2, 128], strides = [1, 1]} : vector<2x512xf32> to vector<2x128xf32>
    %240 = arith.negf %239 : vector<2x128xf32>
    %241 = math.exp %240 : vector<2x128xf32>
    %cst_46 = arith.constant 1.000000e+00 : f32
    %242 = vector.broadcast %cst_46 : f32 to vector<2x128xf32>
    %243 = arith.addf %242, %241 : vector<2x128xf32>
    %244 = arith.divf %242, %243 : vector<2x128xf32>
    %245 = arith.mulf %236, %188 : vector<2x128xf32>
    %246 = arith.mulf %230, %238 : vector<2x128xf32>
    %247 = arith.addf %245, %246 : vector<2x128xf32>
    %248 = math.tanh %247 : vector<2x128xf32>
    %249 = arith.mulf %244, %248 : vector<2x128xf32>
    %250 = vector.extract_strided_slice %6 {offsets = [8, 0], sizes = [2, 512], strides = [1, 1]} : vector<16x512xf32> to vector<2x512xf32>
    %251 = arith.truncf %219 : vector<2x128xf32> to vector<2x128xbf16>
    %cst_47 = arith.constant dense<0.000000e+00> : vector<2x512xf32>
    %252 = tpu.matmul %251, %7, %cst_47 {dimension_numbers = #tpu.dot_dimension_numbers<[1], [0], [0], [1], [0, 0, 1, 1], [], []>} : vector<2x128xbf16>, vector<128x512xbf16>, vector<2x512xf32> -> vector<2x512xf32>
    %253 = arith.addf %250, %252 : vector<2x512xf32>
    %254 = vector.extract_strided_slice %253 {offsets = [0, 0], sizes = [2, 128], strides = [1, 1]} : vector<2x512xf32> to vector<2x128xf32>
    %255 = arith.negf %254 : vector<2x128xf32>
    %256 = math.exp %255 : vector<2x128xf32>
    %cst_48 = arith.constant 1.000000e+00 : f32
    %257 = vector.broadcast %cst_48 : f32 to vector<2x128xf32>
    %258 = arith.addf %257, %256 : vector<2x128xf32>
    %259 = arith.divf %257, %258 : vector<2x128xf32>
    %260 = vector.extract_strided_slice %253 {offsets = [0, 128], sizes = [2, 128], strides = [1, 1]} : vector<2x512xf32> to vector<2x128xf32>
    %261 = arith.negf %260 : vector<2x128xf32>
    %262 = math.exp %261 : vector<2x128xf32>
    %cst_49 = arith.constant 1.000000e+00 : f32
    %263 = vector.broadcast %cst_49 : f32 to vector<2x128xf32>
    %264 = arith.addf %263, %262 : vector<2x128xf32>
    %265 = arith.divf %263, %264 : vector<2x128xf32>
    %266 = vector.extract_strided_slice %253 {offsets = [0, 256], sizes = [2, 128], strides = [1, 1]} : vector<2x512xf32> to vector<2x128xf32>
    %267 = math.tanh %266 : vector<2x128xf32>
    %268 = vector.extract_strided_slice %253 {offsets = [0, 384], sizes = [2, 128], strides = [1, 1]} : vector<2x512xf32> to vector<2x128xf32>
    %269 = arith.negf %268 : vector<2x128xf32>
    %270 = math.exp %269 : vector<2x128xf32>
    %cst_50 = arith.constant 1.000000e+00 : f32
    %271 = vector.broadcast %cst_50 : f32 to vector<2x128xf32>
    %272 = arith.addf %271, %270 : vector<2x128xf32>
    %273 = arith.divf %271, %272 : vector<2x128xf32>
    %274 = arith.mulf %265, %217 : vector<2x128xf32>
    %275 = arith.mulf %259, %267 : vector<2x128xf32>
    %276 = arith.addf %274, %275 : vector<2x128xf32>
    %277 = math.tanh %276 : vector<2x128xf32>
    %278 = arith.mulf %273, %277 : vector<2x128xf32>
    %279 = tpu.concatenate %278, %249 in 1 : vector<2x128xf32>, vector<2x128xf32> -> vector<2x256xf32>
    %280 = arith.truncf %279 : vector<2x256xf32> to vector<2x256xbf16>
    %cst_51 = arith.constant dense<0.000000e+00> : vector<2x512xf32>
    %281 = tpu.matmul %280, %8, %cst_51 {dimension_numbers = #tpu.dot_dimension_numbers<[1], [0], [0], [1], [0, 0, 1, 1], [], []>} : vector<2x256xbf16>, vector<256x512xbf16>, vector<2x512xf32> -> vector<2x512xf32>
    %282 = vector.broadcast %9 : vector<1x512xf32> to vector<2x512xf32>
    %283 = arith.addf %281, %282 : vector<2x512xf32>
    %284 = vector.extract_strided_slice %283 {offsets = [0, 0], sizes = [2, 128], strides = [1, 1]} : vector<2x512xf32> to vector<2x128xf32>
    %285 = arith.negf %284 : vector<2x128xf32>
    %286 = math.exp %285 : vector<2x128xf32>
    %cst_52 = arith.constant 1.000000e+00 : f32
    %287 = vector.broadcast %cst_52 : f32 to vector<2x128xf32>
    %288 = arith.addf %287, %286 : vector<2x128xf32>
    %289 = arith.divf %287, %288 : vector<2x128xf32>
    %290 = vector.extract_strided_slice %283 {offsets = [0, 128], sizes = [2, 128], strides = [1, 1]} : vector<2x512xf32> to vector<2x128xf32>
    %291 = arith.negf %290 : vector<2x128xf32>
    %292 = math.exp %291 : vector<2x128xf32>
    %cst_53 = arith.constant 1.000000e+00 : f32
    %293 = vector.broadcast %cst_53 : f32 to vector<2x128xf32>
    %294 = arith.addf %293, %292 : vector<2x128xf32>
    %295 = arith.divf %293, %294 : vector<2x128xf32>
    %296 = vector.extract_strided_slice %283 {offsets = [0, 256], sizes = [2, 128], strides = [1, 1]} : vector<2x512xf32> to vector<2x128xf32>
    %297 = math.tanh %296 : vector<2x128xf32>
    %298 = vector.extract_strided_slice %283 {offsets = [0, 384], sizes = [2, 128], strides = [1, 1]} : vector<2x512xf32> to vector<2x128xf32>
    %299 = arith.negf %298 : vector<2x128xf32>
    %300 = math.exp %299 : vector<2x128xf32>
    %cst_54 = arith.constant 1.000000e+00 : f32
    %301 = vector.broadcast %cst_54 : f32 to vector<2x128xf32>
    %302 = arith.addf %301, %300 : vector<2x128xf32>
    %303 = arith.divf %301, %302 : vector<2x128xf32>
    %304 = arith.mulf %295, %247 : vector<2x128xf32>
    %305 = arith.mulf %289, %297 : vector<2x128xf32>
    %306 = arith.addf %304, %305 : vector<2x128xf32>
    %307 = math.tanh %306 : vector<2x128xf32>
    %308 = arith.mulf %303, %307 : vector<2x128xf32>
    %309 = vector.extract_strided_slice %6 {offsets = [10, 0], sizes = [2, 512], strides = [1, 1]} : vector<16x512xf32> to vector<2x512xf32>
    %310 = arith.truncf %278 : vector<2x128xf32> to vector<2x128xbf16>
    %cst_55 = arith.constant dense<0.000000e+00> : vector<2x512xf32>
    %311 = tpu.matmul %310, %7, %cst_55 {dimension_numbers = #tpu.dot_dimension_numbers<[1], [0], [0], [1], [0, 0, 1, 1], [], []>} : vector<2x128xbf16>, vector<128x512xbf16>, vector<2x512xf32> -> vector<2x512xf32>
    %312 = arith.addf %309, %311 : vector<2x512xf32>
    %313 = vector.extract_strided_slice %312 {offsets = [0, 0], sizes = [2, 128], strides = [1, 1]} : vector<2x512xf32> to vector<2x128xf32>
    %314 = arith.negf %313 : vector<2x128xf32>
    %315 = math.exp %314 : vector<2x128xf32>
    %cst_56 = arith.constant 1.000000e+00 : f32
    %316 = vector.broadcast %cst_56 : f32 to vector<2x128xf32>
    %317 = arith.addf %316, %315 : vector<2x128xf32>
    %318 = arith.divf %316, %317 : vector<2x128xf32>
    %319 = vector.extract_strided_slice %312 {offsets = [0, 128], sizes = [2, 128], strides = [1, 1]} : vector<2x512xf32> to vector<2x128xf32>
    %320 = arith.negf %319 : vector<2x128xf32>
    %321 = math.exp %320 : vector<2x128xf32>
    %cst_57 = arith.constant 1.000000e+00 : f32
    %322 = vector.broadcast %cst_57 : f32 to vector<2x128xf32>
    %323 = arith.addf %322, %321 : vector<2x128xf32>
    %324 = arith.divf %322, %323 : vector<2x128xf32>
    %325 = vector.extract_strided_slice %312 {offsets = [0, 256], sizes = [2, 128], strides = [1, 1]} : vector<2x512xf32> to vector<2x128xf32>
    %326 = math.tanh %325 : vector<2x128xf32>
    %327 = vector.extract_strided_slice %312 {offsets = [0, 384], sizes = [2, 128], strides = [1, 1]} : vector<2x512xf32> to vector<2x128xf32>
    %328 = arith.negf %327 : vector<2x128xf32>
    %329 = math.exp %328 : vector<2x128xf32>
    %cst_58 = arith.constant 1.000000e+00 : f32
    %330 = vector.broadcast %cst_58 : f32 to vector<2x128xf32>
    %331 = arith.addf %330, %329 : vector<2x128xf32>
    %332 = arith.divf %330, %331 : vector<2x128xf32>
    %333 = arith.mulf %324, %276 : vector<2x128xf32>
    %334 = arith.mulf %318, %326 : vector<2x128xf32>
    %335 = arith.addf %333, %334 : vector<2x128xf32>
    %336 = math.tanh %335 : vector<2x128xf32>
    %337 = arith.mulf %332, %336 : vector<2x128xf32>
    %338 = tpu.concatenate %337, %308 in 1 : vector<2x128xf32>, vector<2x128xf32> -> vector<2x256xf32>
    %339 = arith.truncf %338 : vector<2x256xf32> to vector<2x256xbf16>
    %cst_59 = arith.constant dense<0.000000e+00> : vector<2x512xf32>
    %340 = tpu.matmul %339, %8, %cst_59 {dimension_numbers = #tpu.dot_dimension_numbers<[1], [0], [0], [1], [0, 0, 1, 1], [], []>} : vector<2x256xbf16>, vector<256x512xbf16>, vector<2x512xf32> -> vector<2x512xf32>
    %341 = vector.broadcast %9 : vector<1x512xf32> to vector<2x512xf32>
    %342 = arith.addf %340, %341 : vector<2x512xf32>
    %343 = vector.extract_strided_slice %342 {offsets = [0, 0], sizes = [2, 128], strides = [1, 1]} : vector<2x512xf32> to vector<2x128xf32>
    %344 = arith.negf %343 : vector<2x128xf32>
    %345 = math.exp %344 : vector<2x128xf32>
    %cst_60 = arith.constant 1.000000e+00 : f32
    %346 = vector.broadcast %cst_60 : f32 to vector<2x128xf32>
    %347 = arith.addf %346, %345 : vector<2x128xf32>
    %348 = arith.divf %346, %347 : vector<2x128xf32>
    %349 = vector.extract_strided_slice %342 {offsets = [0, 128], sizes = [2, 128], strides = [1, 1]} : vector<2x512xf32> to vector<2x128xf32>
    %350 = arith.negf %349 : vector<2x128xf32>
    %351 = math.exp %350 : vector<2x128xf32>
    %cst_61 = arith.constant 1.000000e+00 : f32
    %352 = vector.broadcast %cst_61 : f32 to vector<2x128xf32>
    %353 = arith.addf %352, %351 : vector<2x128xf32>
    %354 = arith.divf %352, %353 : vector<2x128xf32>
    %355 = vector.extract_strided_slice %342 {offsets = [0, 256], sizes = [2, 128], strides = [1, 1]} : vector<2x512xf32> to vector<2x128xf32>
    %356 = math.tanh %355 : vector<2x128xf32>
    %357 = vector.extract_strided_slice %342 {offsets = [0, 384], sizes = [2, 128], strides = [1, 1]} : vector<2x512xf32> to vector<2x128xf32>
    %358 = arith.negf %357 : vector<2x128xf32>
    %359 = math.exp %358 : vector<2x128xf32>
    %cst_62 = arith.constant 1.000000e+00 : f32
    %360 = vector.broadcast %cst_62 : f32 to vector<2x128xf32>
    %361 = arith.addf %360, %359 : vector<2x128xf32>
    %362 = arith.divf %360, %361 : vector<2x128xf32>
    %363 = arith.mulf %354, %306 : vector<2x128xf32>
    %364 = arith.mulf %348, %356 : vector<2x128xf32>
    %365 = arith.addf %363, %364 : vector<2x128xf32>
    %366 = math.tanh %365 : vector<2x128xf32>
    %367 = arith.mulf %362, %366 : vector<2x128xf32>
    %368 = vector.extract_strided_slice %6 {offsets = [12, 0], sizes = [2, 512], strides = [1, 1]} : vector<16x512xf32> to vector<2x512xf32>
    %369 = arith.truncf %337 : vector<2x128xf32> to vector<2x128xbf16>
    %cst_63 = arith.constant dense<0.000000e+00> : vector<2x512xf32>
    %370 = tpu.matmul %369, %7, %cst_63 {dimension_numbers = #tpu.dot_dimension_numbers<[1], [0], [0], [1], [0, 0, 1, 1], [], []>} : vector<2x128xbf16>, vector<128x512xbf16>, vector<2x512xf32> -> vector<2x512xf32>
    %371 = arith.addf %368, %370 : vector<2x512xf32>
    %372 = vector.extract_strided_slice %371 {offsets = [0, 0], sizes = [2, 128], strides = [1, 1]} : vector<2x512xf32> to vector<2x128xf32>
    %373 = arith.negf %372 : vector<2x128xf32>
    %374 = math.exp %373 : vector<2x128xf32>
    %cst_64 = arith.constant 1.000000e+00 : f32
    %375 = vector.broadcast %cst_64 : f32 to vector<2x128xf32>
    %376 = arith.addf %375, %374 : vector<2x128xf32>
    %377 = arith.divf %375, %376 : vector<2x128xf32>
    %378 = vector.extract_strided_slice %371 {offsets = [0, 128], sizes = [2, 128], strides = [1, 1]} : vector<2x512xf32> to vector<2x128xf32>
    %379 = arith.negf %378 : vector<2x128xf32>
    %380 = math.exp %379 : vector<2x128xf32>
    %cst_65 = arith.constant 1.000000e+00 : f32
    %381 = vector.broadcast %cst_65 : f32 to vector<2x128xf32>
    %382 = arith.addf %381, %380 : vector<2x128xf32>
    %383 = arith.divf %381, %382 : vector<2x128xf32>
    %384 = vector.extract_strided_slice %371 {offsets = [0, 256], sizes = [2, 128], strides = [1, 1]} : vector<2x512xf32> to vector<2x128xf32>
    %385 = math.tanh %384 : vector<2x128xf32>
    %386 = vector.extract_strided_slice %371 {offsets = [0, 384], sizes = [2, 128], strides = [1, 1]} : vector<2x512xf32> to vector<2x128xf32>
    %387 = arith.negf %386 : vector<2x128xf32>
    %388 = math.exp %387 : vector<2x128xf32>
    %cst_66 = arith.constant 1.000000e+00 : f32
    %389 = vector.broadcast %cst_66 : f32 to vector<2x128xf32>
    %390 = arith.addf %389, %388 : vector<2x128xf32>
    %391 = arith.divf %389, %390 : vector<2x128xf32>
    %392 = arith.mulf %383, %335 : vector<2x128xf32>
    %393 = arith.mulf %377, %385 : vector<2x128xf32>
    %394 = arith.addf %392, %393 : vector<2x128xf32>
    %395 = math.tanh %394 : vector<2x128xf32>
    %396 = arith.mulf %391, %395 : vector<2x128xf32>
    %397 = tpu.concatenate %396, %367 in 1 : vector<2x128xf32>, vector<2x128xf32> -> vector<2x256xf32>
    %398 = arith.truncf %397 : vector<2x256xf32> to vector<2x256xbf16>
    %cst_67 = arith.constant dense<0.000000e+00> : vector<2x512xf32>
    %399 = tpu.matmul %398, %8, %cst_67 {dimension_numbers = #tpu.dot_dimension_numbers<[1], [0], [0], [1], [0, 0, 1, 1], [], []>} : vector<2x256xbf16>, vector<256x512xbf16>, vector<2x512xf32> -> vector<2x512xf32>
    %400 = vector.broadcast %9 : vector<1x512xf32> to vector<2x512xf32>
    %401 = arith.addf %399, %400 : vector<2x512xf32>
    %402 = vector.extract_strided_slice %401 {offsets = [0, 0], sizes = [2, 128], strides = [1, 1]} : vector<2x512xf32> to vector<2x128xf32>
    %403 = arith.negf %402 : vector<2x128xf32>
    %404 = math.exp %403 : vector<2x128xf32>
    %cst_68 = arith.constant 1.000000e+00 : f32
    %405 = vector.broadcast %cst_68 : f32 to vector<2x128xf32>
    %406 = arith.addf %405, %404 : vector<2x128xf32>
    %407 = arith.divf %405, %406 : vector<2x128xf32>
    %408 = vector.extract_strided_slice %401 {offsets = [0, 128], sizes = [2, 128], strides = [1, 1]} : vector<2x512xf32> to vector<2x128xf32>
    %409 = arith.negf %408 : vector<2x128xf32>
    %410 = math.exp %409 : vector<2x128xf32>
    %cst_69 = arith.constant 1.000000e+00 : f32
    %411 = vector.broadcast %cst_69 : f32 to vector<2x128xf32>
    %412 = arith.addf %411, %410 : vector<2x128xf32>
    %413 = arith.divf %411, %412 : vector<2x128xf32>
    %414 = vector.extract_strided_slice %401 {offsets = [0, 256], sizes = [2, 128], strides = [1, 1]} : vector<2x512xf32> to vector<2x128xf32>
    %415 = math.tanh %414 : vector<2x128xf32>
    %416 = vector.extract_strided_slice %401 {offsets = [0, 384], sizes = [2, 128], strides = [1, 1]} : vector<2x512xf32> to vector<2x128xf32>
    %417 = arith.negf %416 : vector<2x128xf32>
    %418 = math.exp %417 : vector<2x128xf32>
    %cst_70 = arith.constant 1.000000e+00 : f32
    %419 = vector.broadcast %cst_70 : f32 to vector<2x128xf32>
    %420 = arith.addf %419, %418 : vector<2x128xf32>
    %421 = arith.divf %419, %420 : vector<2x128xf32>
    %422 = arith.mulf %413, %365 : vector<2x128xf32>
    %423 = arith.mulf %407, %415 : vector<2x128xf32>
    %424 = arith.addf %422, %423 : vector<2x128xf32>
    %425 = math.tanh %424 : vector<2x128xf32>
    %426 = arith.mulf %421, %425 : vector<2x128xf32>
    %427 = vector.extract_strided_slice %6 {offsets = [14, 0], sizes = [2, 512], strides = [1, 1]} : vector<16x512xf32> to vector<2x512xf32>
    %428 = arith.truncf %396 : vector<2x128xf32> to vector<2x128xbf16>
    %cst_71 = arith.constant dense<0.000000e+00> : vector<2x512xf32>
    %429 = tpu.matmul %428, %7, %cst_71 {dimension_numbers = #tpu.dot_dimension_numbers<[1], [0], [0], [1], [0, 0, 1, 1], [], []>} : vector<2x128xbf16>, vector<128x512xbf16>, vector<2x512xf32> -> vector<2x512xf32>
    %430 = arith.addf %427, %429 : vector<2x512xf32>
    %431 = vector.extract_strided_slice %430 {offsets = [0, 0], sizes = [2, 128], strides = [1, 1]} : vector<2x512xf32> to vector<2x128xf32>
    %432 = arith.negf %431 : vector<2x128xf32>
    %433 = math.exp %432 : vector<2x128xf32>
    %cst_72 = arith.constant 1.000000e+00 : f32
    %434 = vector.broadcast %cst_72 : f32 to vector<2x128xf32>
    %435 = arith.addf %434, %433 : vector<2x128xf32>
    %436 = arith.divf %434, %435 : vector<2x128xf32>
    %437 = vector.extract_strided_slice %430 {offsets = [0, 128], sizes = [2, 128], strides = [1, 1]} : vector<2x512xf32> to vector<2x128xf32>
    %438 = arith.negf %437 : vector<2x128xf32>
    %439 = math.exp %438 : vector<2x128xf32>
    %cst_73 = arith.constant 1.000000e+00 : f32
    %440 = vector.broadcast %cst_73 : f32 to vector<2x128xf32>
    %441 = arith.addf %440, %439 : vector<2x128xf32>
    %442 = arith.divf %440, %441 : vector<2x128xf32>
    %443 = vector.extract_strided_slice %430 {offsets = [0, 256], sizes = [2, 128], strides = [1, 1]} : vector<2x512xf32> to vector<2x128xf32>
    %444 = math.tanh %443 : vector<2x128xf32>
    %445 = vector.extract_strided_slice %430 {offsets = [0, 384], sizes = [2, 128], strides = [1, 1]} : vector<2x512xf32> to vector<2x128xf32>
    %446 = arith.negf %445 : vector<2x128xf32>
    %447 = math.exp %446 : vector<2x128xf32>
    %cst_74 = arith.constant 1.000000e+00 : f32
    %448 = vector.broadcast %cst_74 : f32 to vector<2x128xf32>
    %449 = arith.addf %448, %447 : vector<2x128xf32>
    %450 = arith.divf %448, %449 : vector<2x128xf32>
    %451 = arith.mulf %442, %394 : vector<2x128xf32>
    %452 = arith.mulf %436, %444 : vector<2x128xf32>
    %453 = arith.addf %451, %452 : vector<2x128xf32>
    %454 = math.tanh %453 : vector<2x128xf32>
    %455 = arith.mulf %450, %454 : vector<2x128xf32>
    %456 = tpu.concatenate %455, %426 in 1 : vector<2x128xf32>, vector<2x128xf32> -> vector<2x256xf32>
    %457 = arith.truncf %456 : vector<2x256xf32> to vector<2x256xbf16>
    %cst_75 = arith.constant dense<0.000000e+00> : vector<2x512xf32>
    %458 = tpu.matmul %457, %8, %cst_75 {dimension_numbers = #tpu.dot_dimension_numbers<[1], [0], [0], [1], [0, 0, 1, 1], [], []>} : vector<2x256xbf16>, vector<256x512xbf16>, vector<2x512xf32> -> vector<2x512xf32>
    %459 = vector.broadcast %9 : vector<1x512xf32> to vector<2x512xf32>
    %460 = arith.addf %458, %459 : vector<2x512xf32>
    %461 = vector.extract_strided_slice %460 {offsets = [0, 0], sizes = [2, 128], strides = [1, 1]} : vector<2x512xf32> to vector<2x128xf32>
    %462 = arith.negf %461 : vector<2x128xf32>
    %463 = math.exp %462 : vector<2x128xf32>
    %cst_76 = arith.constant 1.000000e+00 : f32
    %464 = vector.broadcast %cst_76 : f32 to vector<2x128xf32>
    %465 = arith.addf %464, %463 : vector<2x128xf32>
    %466 = arith.divf %464, %465 : vector<2x128xf32>
    %467 = vector.extract_strided_slice %460 {offsets = [0, 128], sizes = [2, 128], strides = [1, 1]} : vector<2x512xf32> to vector<2x128xf32>
    %468 = arith.negf %467 : vector<2x128xf32>
    %469 = math.exp %468 : vector<2x128xf32>
    %cst_77 = arith.constant 1.000000e+00 : f32
    %470 = vector.broadcast %cst_77 : f32 to vector<2x128xf32>
    %471 = arith.addf %470, %469 : vector<2x128xf32>
    %472 = arith.divf %470, %471 : vector<2x128xf32>
    %473 = vector.extract_strided_slice %460 {offsets = [0, 256], sizes = [2, 128], strides = [1, 1]} : vector<2x512xf32> to vector<2x128xf32>
    %474 = math.tanh %473 : vector<2x128xf32>
    %475 = vector.extract_strided_slice %460 {offsets = [0, 384], sizes = [2, 128], strides = [1, 1]} : vector<2x512xf32> to vector<2x128xf32>
    %476 = arith.negf %475 : vector<2x128xf32>
    %477 = math.exp %476 : vector<2x128xf32>
    %cst_78 = arith.constant 1.000000e+00 : f32
    %478 = vector.broadcast %cst_78 : f32 to vector<2x128xf32>
    %479 = arith.addf %478, %477 : vector<2x128xf32>
    %480 = arith.divf %478, %479 : vector<2x128xf32>
    %481 = arith.mulf %472, %424 : vector<2x128xf32>
    %482 = arith.mulf %466, %474 : vector<2x128xf32>
    %483 = arith.addf %481, %482 : vector<2x128xf32>
    %484 = math.tanh %483 : vector<2x128xf32>
    %485 = arith.mulf %480, %484 : vector<2x128xf32>
    %c0_79 = arith.constant 0 : index
    %c0_80 = arith.constant 0 : index
    %486 = vector.load %arg7[%c0_79, %c0_80] : memref<128x10xf32, #tpu.memory_space<vmem>>, vector<128x10xf32>
    %cst_81 = arith.constant dense<0.000000e+00> : vector<2x10xf32>
    %487 = tpu.matmul %485, %486, %cst_81 {dimension_numbers = #tpu.dot_dimension_numbers<[1], [0], [0], [1], [0, 0, 1, 1], [], []>} : vector<2x128xf32>, vector<128x10xf32>, vector<2x10xf32> -> vector<2x10xf32>
    %c0_82 = arith.constant 0 : index
    %c0_83 = arith.constant 0 : index
    %488 = vector.load %arg8[%c0_82, %c0_83] : memref<1x10xf32, #tpu.memory_space<vmem>>, vector<1x10xf32>
    %489 = vector.broadcast %488 : vector<1x10xf32> to vector<2x10xf32>
    %490 = arith.addf %487, %489 : vector<2x10xf32>
    %c0_84 = arith.constant 0 : index
    %c0_85 = arith.constant 0 : index
    %491 = vector.load %arg9[%c0_84, %c0_85] : memref<2x10xf32, #tpu.memory_space<vmem>>, vector<2x10xf32>
    tpu.vector_store %arg9[%c0_84, %c0_85], %490 {strides = array<i32>} : memref<2x10xf32, #tpu.memory_space<vmem>>, vector<2x10xf32>,
    return
  }
  func.func @transform_0(%arg0: i32) -> (i32, i32) {
    %c0_i32 = arith.constant 0 : i32
    %c0_i32_0 = arith.constant 0 : i32
    %c0_i32_1 = arith.constant 0 : i32
    return %c0_i32, %c0_i32_0 : i32, i32
  }
  func.func @transform_1(%arg0: i32) -> (i32, i32) {
    %c0_i32 = arith.constant 0 : i32
    %c0_i32_0 = arith.constant 0 : i32
    %c0_i32_1 = arith.constant 0 : i32
    return %c0_i32, %c0_i32_0 : i32, i32
  }
  func.func @transform_2(%arg0: i32) -> (i32, i32) {
    %c0_i32 = arith.constant 0 : i32
    %c0_i32_0 = arith.constant 0 : i32
    %c0_i32_1 = arith.constant 0 : i32
    return %c0_i32, %c0_i32_0 : i32, i32
  }
  func.func @transform_3(%arg0: i32) -> (i32, i32) {
    %c0_i32 = arith.constant 0 : i32
    %c0_i32_0 = arith.constant 0 : i32
    %c0_i32_1 = arith.constant 0 : i32
    return %c0_i32, %c0_i32_0 : i32, i32
  }
  func.func @transform_4(%arg0: i32) -> (i32, i32) {
    %c0_i32 = arith.constant 0 : i32
    %c0_i32_0 = arith.constant 0 : i32
    %c0_i32_1 = arith.constant 0 : i32
    return %c0_i32, %c0_i32_0 : i32, i32
  }
  func.func @transform_5(%arg0: i32) -> (i32, i32) {
    %c0_i32 = arith.constant 0 : i32
    %c0_i32_0 = arith.constant 0 : i32
    %c0_i32_1 = arith.constant 0 : i32
    return %c0_i32, %c0_i32_0 : i32, i32
  }
  func.func @transform_6(%arg0: i32) -> (i32, i32) {
    %c0_i32 = arith.constant 0 : i32
    %c0_i32_0 = arith.constant 0 : i32
    %c0_i32_1 = arith.constant 0 : i32
    return %c0_i32, %c0_i32_0 : i32, i32
  }
  func.func @transform_7(%arg0: i32) -> (i32, i32) {
    %c0_i32 = arith.constant 0 : i32
    %c0_i32_0 = arith.constant 0 : i32
    %c0_i32_1 = arith.constant 0 : i32
    return %c0_i32, %c0_i32_0 : i32, i32
  }
  func.func @transform_8(%arg0: i32) -> (i32, i32) {
    %c0_i32 = arith.constant 0 : i32
    %c0_i32_0 = arith.constant 0 : i32
    %c0_i32_1 = arith.constant 0 : i32
    return %c0_i32, %c0_i32_0 : i32, i32
  }
}

</mosaic_0001>

<bundles_post_ra>
// kernel: rnn_forward.1
= control target key start
LH: loop header
LB: loop body
LE: loop exit
PB: predicated region body
PF: predicated region fallthrough
CT: control target
= control target key end

     0   :  { %13 = vsyncpa [#allocation3], 0  ;;  %s5861_s0 = inlined_call_operand.vmem [shape: f32[16,28], index: 0, kind: input, shape index: {}]   ;;  %s5862_s1 = inlined_call_operand.hbm [shape: bf16[28,512], index: 1, kind: input, shape index: {}]   ;;  %s5863_s2 = inlined_call_operand.hbm [shape: bf16[128,512], index: 2, kind: input, shape index: {}]   ;;  %s5864_s3 = inlined_call_operand.vmem [shape: f32[1,512], index: 3, kind: input, shape index: {}]   ;;  %s5865_s4 = inlined_call_operand.hbm [shape: bf16[256,512], index: 4, kind: input, shape index: {}]   ;;  %s5866_s5 = inlined_call_operand.vmem [shape: f32[1,512], index: 5, kind: input, shape index: {}]   ;;  %s5867_s6 = inlined_call_operand.hbm [shape: f32[128,10], index: 6, kind: input, shape index: {}]   ;;  %s5868_s7 = inlined_call_operand.vmem [shape: f32[1,10], index: 7, kind: input, shape index: {}]   ;;  %s5869_s8 = inlined_call_operand.hbm [shape: f32[2,10], index: 8, kind: output, shape index: {}]  }
   0x1   :  { %14 = vsyncpa [#allocation6], 0 }
   0x2   :  { %15 = vsyncpa [#allocation9], 0 }
   0x3   :  { %16 = vsyncpa [#allocation4], 0  ;;  %s36_s29 = sshll.u32 %s5863_s2, 4  ;;  %s4290_s30 = smov [#allocation5]   ;;  %s37_s29 = int_to_ptr.hbm [resolvable:$true] %s36_s29 }
   0x4   :  { %s38_s9 = sshll.u32 %s4290_s30, 4  ;;  %s23_s12 = sshll.u32 %s5862_s1, 4  ;;  %s39_s9 = int_to_ptr.vmem [resolvable:$true] %s38_s9  ;;  %s24_s12 = int_to_ptr.hbm [resolvable:$true] %s23_s12 }
   0x5   :  { %s4291_s13 = smov 256   ;;  %s4292_s14 = smov 16  }
   0x6   :  { %44 = dma.hbm_to_vmem [thread:$0]  %s37_s29, 4096, %s39_s9, [#allocation6], %s4291_s13, %s4291_s13, %s4292_s14  }
   0x7   :  { %s4293_s15 = smov [#allocation2]   ;;  %s51_s19 = sshll.u32 %s5865_s4, 4  ;;  %s52_s19 = int_to_ptr.hbm [resolvable:$true] %s51_s19 }
   0x8   :  { %s25_s16 = sshll.u32 %s4293_s15, 4  ;;  %s66_s21 = sshll.u32 %s5867_s6, 4  ;;  %s26_s16 = int_to_ptr.vmem [resolvable:$true] %s25_s16  ;;  %s67_s21 = int_to_ptr.hbm [resolvable:$true] %s66_s21 }
   0x9   :  { %31 = dma.hbm_to_vmem [thread:$0]  %s24_s12, 1024, %s26_s16, [#allocation3], %s4291_s13, %s4291_s13, %s4292_s14  }
   0xa   :  { %s4294_s22 = smov [#allocation7]   ;;  %s4295_s1 = smov [#allocation8]  }
   0xb   :  { %s53_s23 = sshll.u32 %s4294_s22, 4  ;;  %s68_s24 = sshll.u32 %s4295_s1, 4  ;;  %s54_s23 = int_to_ptr.vmem [resolvable:$true] %s53_s23  ;;  %s69_s24 = int_to_ptr.vmem [resolvable:$true] %s68_s24 }
   0xc   :  { %59 = dma.hbm_to_vmem [thread:$0]  %s52_s19, 8192, %s54_s23, [#allocation6], %s4291_s13, %s4291_s13, %s4292_s14  }
   0xd   :  { %s4296_s25 = smov 128   ;;  %s4297_s26 = smov 8  }
   0xe   :  { %74 = dma.hbm_to_vmem [thread:$0]  %s67_s21, 2048, %s69_s24, [#allocation9], %s4296_s25, %s4296_s25, %s4297_s26  }
   0xf   :  { %4282 = dma.done.wait [#allocation3], 1024  }
  0x10   :  { %4283 = vsyncadd [#allocation3], 4294966272 }
  0x11   :  { %4284 = dma.done.wait [#allocation6], 12288  }
  0x12   :  { %4285 = vsyncadd [#allocation6], 4294955008 }
  0x13   :  { %4286 = dma.done.wait [#allocation9], 2048  }
  0x14   :  { %4287 = vsyncadd [#allocation9], 4294965248  ;;  %vm155_vm0 = vcmask 1045504   ;;  %v3472_v0 = vld [vmem:[#allocation5 + $0xe0] sm:$0xf]  ;;  %v95_v29 = vld [vmem:[%s5861_s0 + $0x8] sm:$0xff] }
  0x15   :  { %v3828_v1 = vld [vmem:[#allocation5 + $0xec] sm:$0xf0]  ;;  %v3340_v2 = vld [vmem:[#allocation2 + $0x20] sm:$0xf]  ;;  %v3795_v5 = vld [vmem:[#allocation2 + $0x2c] sm:$0xf] }
  0x16   :  { %v4358_v3 = vor.u32 %v3828_v1, %v3472_v0  ;;  %v3796_v4 = vld [vmem:[#allocation2 + $0x2c] sm:$0x30]  ;;  %v3350_v6 = vld [vmem:[#allocation2 + $0x38] sm:$0x30]  ;;  %v3456_v9 = vld [vmem:[#allocation5 + $0xc0] sm:$0xf] }
  0x17   :  { %v3341_v7 = vor.u32 %v3796_v4, %v3340_v2  ;;  %v3353_v8 = vor.u32 %v3795_v5, %v3350_v6  ;;  %v3824_v10 = vld [vmem:[#allocation5 + $0xcc] sm:$0xf0]  ;;  %v3324_v11 = vld [vmem:[#allocation2] sm:$0xf]  ;;  %v3791_v14 = vld [vmem:[#allocation2 + $0xc] sm:$0xf] }
  0x18   :  { %481 = vmatpush.bf16.msra.mxu0 %v4358_v3  ;;  %v4361_v12 = vor.u32 %v3824_v10, %v3456_v9  ;;  %v3792_v13 = vld [vmem:[#allocation2 + $0xc] sm:$0xf0]  ;;  %v3334_v15 = vld [vmem:[#allocation2 + $0x18] sm:$0xf0]  ;;  %v3794_v18 = vld [vmem:[#allocation2 + $0x24] sm:$0xf] }
  0x19   :  { %v157_v16 = vsel %vm155_vm0, %v3341_v7, 0  ;;  %v166_v17 = vsel %vm155_vm0, %v3353_v8, 0  ;;  %v3342_v19 = vld [vmem:[#allocation2 + $0x30] sm:$0x30]  ;;  %v3325_v20 = vor.u32 %v3792_v13, %v3324_v11  ;;  %v3337_v21 = vor.u32 %v3791_v14, %v3334_v15  ;;  %v3827_v23 = vld [vmem:[#allocation5 + $0xec] sm:$0xf] }
  0x1a   :  { %174 = vmatpush.bf16.msra.mxu1 %v157_v16  ;;  %216 = vmatpush.bf16.msra.mxu3 %v166_v17  ;;  %v3345_v22 = vor.u32 %v3794_v18, %v3342_v19  ;;  %v3482_v24 = vld [vmem:[#allocation5 + $0xf8] sm:$0xf0]  ;;  %v3348_v25 = vld [vmem:[#allocation2 + $0x28] sm:$0xf]  ;;  %v3797_v27 = vld [vmem:[#allocation2 + $0x34] sm:$0x30] }
  0x1b   :  { %v4365_v26 = vor.u32 %v3827_v23, %v3482_v24  ;;  %v94_v28 = vld [vmem:[%s5861_s0] sm:$0xff]  ;;  %v3349_v31 = vor.u32 %v3797_v27, %v3348_v25  ;;  %v3820_v33 = vld [vmem:[#allocation5 + $0xac] sm:$0xf0]  ;;  %v3326_v37 = vld [vmem:[#allocation2 + $0x10] sm:$0xf0]  ;;  %vm151_vm1 = vcmask 228352  }
  0x1c   :  { %482 = vmatpush.bf16.msra.mxu0 %v4361_v12  ;;  %v160_v30 = vsel %vm155_vm0, %v3345_v22, 0  ;;  %v3440_v32 = vld [vmem:[#allocation5 + $0xa0] sm:$0xf]  ;;  %v4375_v34 = vpack.c.bf16 %v95_v29, %v94_v28  ;;  %v3790_v36 = vld [vmem:[#allocation2 + $0x4] sm:$0xf]  ;;  %s4300_s10 = smov [#allocation10]  }
  0x1d   :  { %6082 = vst [vmem:[#allocation15_spill] sm:$0xff] %v4365_v26  ;;  %v4377_v35 = vor.u32 %v3820_v33, %v3440_v32  ;;  %v3823_v38 = vld [vmem:[#allocation5 + $0xcc] sm:$0xf]  ;;  %v163_v39 = vsel %vm155_vm0, %v3349_v31, 0  ;;  %v3466_v40 = vld [vmem:[#allocation5 + $0xd8] sm:$0xf0]  ;;  %v3329_v42 = vor.u32 %v3790_v36, %v3326_v37 }
  0x1e   :  { %175 = vmatpush.bf16.msra.mxu1 %v3325_v20  ;;  %217 = vmatpush.bf16.msra.mxu3 %v3337_v21  ;;  %v3332_v41 = vld [vmem:[#allocation2 + $0x8] sm:$0xf]  ;;  %v4381_v43 = vor.u32 %v3823_v38, %v3466_v40  ;;  %v3793_v44 = vld [vmem:[#allocation2 + $0x14] sm:$0xf0]  ;;  %v3826_v45 = vld [vmem:[#allocation5 + $0xe4] sm:$0xf] }
  0x1f   :  { %v3474_v46 = vld [vmem:[#allocation5 + $0xf0] sm:$0xf0]  ;;  %202 = vmatpush.bf16.msra.mxu2 %v163_v39  ;;  %v3333_v47 = vor.u32 %v3793_v44, %v3332_v41  ;;  %v3424_v49 = vld [vmem:[#allocation5 + $0x80] sm:$0xf]  ;;  %v3816_v50 = vld [vmem:[#allocation5 + $0x8c] sm:$0xf0] }
  0x20   :  { %6083 = vst [vmem:[#allocation16_spill] sm:$0xff] %v4381_v43  ;;  %483 = vmatpush.bf16.msra.mxu0 %v4377_v35  ;;  %v4384_v48 = vor.u32 %v3826_v45, %v3474_v46  ;;  %v3480_v51 = vld [vmem:[#allocation5 + $0xe8] sm:$0xf]  ;;  %v4388_v52 = vor.u32 %v3816_v50, %v3424_v49  ;;  %v3829_v53 = vld [vmem:[#allocation5 + $0xf4] sm:$0xf0]  ;;  %s3308_s11 = sshll.u32 %s4300_s10, 4  ;;  %s3309_s11 = int_to_ptr.vmem [resolvable:$true] %s3308_s11 }
  0x21   :  { %3354 = vmatmul.msk.bf16.vlgmr.msra.gmra.mxu1 %vm151_vm1, %v4375_v34  ;;  %v3819_v54 = vld [vmem:[#allocation5 + $0xac] sm:$0xf]  ;;  %v3450_v55 = vld [vmem:[#allocation5 + $0xb8] sm:$0xf0]  ;;  %3357 = vmatmul.msk.bf16.vlgmr.msra.gmra.mxu3 %vm151_vm1, %v4375_v34  ;;  %v4392_v56 = vor.u32 %v3829_v53, %v3480_v51  ;;  %v3822_v57 = vld [vmem:[#allocation5 + $0xc4] sm:$0xf] }
  0x22   :  { %188 = vmatpush.bf16.msrb.mxu1 %v160_v30  ;;  %520 = vmatpush.bf16.msrb.mxu3 %v4365_v26  ;;  %6084 = vst [vmem:[#allocation17_spill] sm:$0xff] %v4384_v48  ;;  %v3458_v58 = vld [vmem:[#allocation5 + $0xd0] sm:$0xf0]  ;;  %v3408_v59 = vld [vmem:[#allocation5 + $0x60] sm:$0xf]  ;;  %v4395_v60 = vor.u32 %v3819_v54, %v3450_v55  ;;  %s3310_s14 = sshll.u32 %s5869_s8, 4  ;;  %s3311_s14 = int_to_ptr.hbm [resolvable:$true] %s3310_s14 }
  0x23   :  { %v3812_v61 = vld [vmem:[#allocation5 + $0x6c] sm:$0xf0]  ;;  %v3464_v62 = vld [vmem:[#allocation5 + $0xc8] sm:$0xf]  ;;  %v3825_v63 = vld [vmem:[#allocation5 + $0xd4] sm:$0xf0]  ;;  %203 = vmatpush.bf16.msra.mxu2 %v3333_v47  ;;  %v4398_v0 = vor.u32 %v3822_v57, %v3458_v58 }
  0x24   :  { %6085 = vst [vmem:[#allocation18_spill] sm:$0xff] %v4395_v60  ;;  %v3815_v1 = vld [vmem:[#allocation5 + $0x8c] sm:$0xf]  ;;  %v3434_v2 = vld [vmem:[#allocation5 + $0x98] sm:$0xf0]  ;;  %484 = vmatpush.bf16.msra.mxu0 %v4388_v52  ;;  %v4402_v4 = vor.u32 %v3812_v61, %v3408_v59  ;;  %v4404_v5 = vor.u32 %v3825_v63, %v3464_v62 }
  0x25   :  { %6086 = vst [vmem:[#allocation19_spill] sm:$0xff] %v4398_v0  ;;  %v3818_v6 = vld [vmem:[#allocation5 + $0xa4] sm:$0xf]  ;;  %v3442_v7 = vld [vmem:[#allocation5 + $0xb0] sm:$0xf0]  ;;  %v4407_v13 = vor.u32 %v3815_v1, %v3434_v2 }
  0x26   :  { %189 = vmatpush.bf16.msrb.mxu1 %v3329_v42  ;;  %521 = vmatpush.bf16.msrb.mxu3 %v4381_v43  ;;  %6087 = vst [vmem:[#allocation20_spill] sm:$0xff] %v4402_v4  ;;  %v3392_v8 = vld [vmem:[#allocation5 + $0x40] sm:$0xf]  ;;  %v3808_v9 = vld [vmem:[#allocation5 + $0x4c] sm:$0xf0]  ;;  %v4412_v14 = vor.u32 %v3818_v6, %v3442_v7  ;;  %v4298_v6 = vmov 0  }
  0x27   :  { %507 = vmatpush.bf16.msrb.mxu2 %v4392_v56  ;;  %v3448_v10 = vld [vmem:[#allocation5 + $0xa8] sm:$0xf]  ;;  %v3821_v11 = vld [vmem:[#allocation5 + $0xb4] sm:$0xf0]  ;;  %6088 = vst [vmem:[#allocation21_spill] sm:$0xff] %v4407_v13  ;;  %v4416_v17 = vor.u32 %v3808_v9, %v3392_v8 }
  0x28   :  { %3356 = vmatmul.msk.bf16.vlgmr.msra.gmra.mxu2 %vm151_vm1, %v4375_v34  ;;  %6089 = vst [vmem:[#allocation22_spill] sm:$0xff] %v4412_v14  ;;  %v3811_v15 = vld [vmem:[#allocation5 + $0x6c] sm:$0xf]  ;;  %v3418_v16 = vld [vmem:[#allocation5 + $0x78] sm:$0xf0]  ;;  %485 = vmatpush.bf16.msra.mxu0 %v4402_v4  ;;  %v4418_v18 = vor.u32 %v3821_v11, %v3448_v10 }
  0x29   :  { %6090 = vst [vmem:[#allocation23_spill] sm:$0xff] %v4416_v17  ;;  %v3814_v19 = vld [vmem:[#allocation5 + $0x84] sm:$0xf]  ;;  %v3426_v20 = vld [vmem:[#allocation5 + $0x90] sm:$0xf0]  ;;  %v4421_v23 = vor.u32 %v3811_v15, %v3418_v16 }
  0x2a   :  { %494 = vmatpush.bf16.msra.mxu1 %v4384_v48  ;;  %522 = vmatpush.bf16.msrb.mxu3 %v4395_v60  ;;  %v3376_v21 = vld [vmem:[#allocation5 + $0x20] sm:$0xf]  ;;  %v3804_v22 = vld [vmem:[#allocation5 + $0x2c] sm:$0xf0]  ;;  %v3432_v24 = vld [vmem:[#allocation5 + $0x88] sm:$0xf]  ;;  %v4424_v27 = vor.u32 %v3814_v19, %v3426_v20 }
  0x2b   :  { %508 = vmatpush.bf16.msrb.mxu2 %v4404_v5  ;;  %6091 = vst [vmem:[#allocation24_spill] sm:$0xff] %v4421_v23  ;;  %v3817_v25 = vld [vmem:[#allocation5 + $0x94] sm:$0xf0]  ;;  %v3807_v28 = vld [vmem:[#allocation5 + $0x4c] sm:$0xf]  ;;  %v4428_v30 = vor.u32 %v3804_v22, %v3376_v21 }
  0x2c   :  { %6092 = vst [vmem:[#allocation25_spill] sm:$0xff] %v4424_v27  ;;  %v3402_v29 = vld [vmem:[#allocation5 + $0x58] sm:$0xf0]  ;;  %486 = vmatpush.bf16.msra.mxu0 %v4416_v17  ;;  %v3810_v31 = vld [vmem:[#allocation5 + $0x64] sm:$0xf]  ;;  %v4430_v33 = vor.u32 %v3817_v25, %v3432_v24 }
  0x2d   :  { %6093 = vst [vmem:[#allocation26_spill] sm:$0xff] %v4428_v30  ;;  %v3410_v32 = vld [vmem:[#allocation5 + $0x70] sm:$0xf0]  ;;  %v3360_v36 = vld [vmem:[#allocation5] sm:$0xf]  ;;  %v4433_v38 = vor.u32 %v3807_v28, %v3402_v29 }
  0x2e   :  { %495 = vmatpush.bf16.msra.mxu1 %v4398_v0  ;;  %523 = vmatpush.bf16.msrb.mxu3 %v4407_v13  ;;  %6094 = vst [vmem:[#allocation27_spill] sm:$0xff] %v4430_v33  ;;  %v3800_v37 = vld [vmem:[#allocation5 + $0xc] sm:$0xf0]  ;;  %v3416_v39 = vld [vmem:[#allocation5 + $0x68] sm:$0xf]  ;;  %v4436_v41 = vor.u32 %v3810_v31, %v3410_v32 }
  0x2f   :  { %509 = vmatpush.bf16.msrb.mxu2 %v4418_v18  ;;  %6095 = vst [vmem:[#allocation28_spill] sm:$0xff] %v4433_v38  ;;  %v3813_v40 = vld [vmem:[#allocation5 + $0x74] sm:$0xf0]  ;;  %v3803_v42 = vld [vmem:[#allocation5 + $0x2c] sm:$0xf]  ;;  %v4441_v45 = vor.u32 %v3800_v37, %v3360_v36 }
  0x30   :  { %6096 = vst [vmem:[#allocation29_spill] sm:$0xff] %v4436_v41  ;;  %v3386_v44 = vld [vmem:[#allocation5 + $0x38] sm:$0xf0]  ;;  %487 = vmatpush.bf16.msra.mxu0 %v4428_v30  ;;  %v3806_v46 = vld [vmem:[#allocation5 + $0x44] sm:$0xf]  ;;  %v4444_v49 = vor.u32 %v3813_v40, %v3416_v39 }
  0x31   :  { %3355 = vmatmul.msk.bf16.vlgmr.msrb.gmra.mxu1 %vm151_vm1, %v4375_v34  ;;  %6097 = vst [vmem:[#allocation30_spill] sm:$0xff] %v4441_v45  ;;  %v3394_v47 = vld [vmem:[#allocation5 + $0x50] sm:$0xf0]  ;;  %v4447_v50 = vor.u32 %v3803_v42, %v3386_v44  ;;  %v3400_v51 = vld [vmem:[#allocation5 + $0x48] sm:$0xf] }
  0x32   :  { %496 = vmatpush.bf16.msra.mxu1 %v4412_v14  ;;  %524 = vmatpush.bf16.msrb.mxu3 %v4421_v23  ;;  %6098 = vst [vmem:[#allocation31_spill] sm:$0xff] %v4444_v49  ;;  %v3809_v53 = vld [vmem:[#allocation5 + $0x54] sm:$0xf0]  ;;  %v3799_v54 = vld [vmem:[#allocation5 + $0xc] sm:$0xf]  ;;  %v4450_v34 = vor.u32 %v3806_v46, %v3394_v47 }
  0x33   :  { %510 = vmatpush.bf16.msrb.mxu2 %v4430_v33  ;;  %v3370_v55 = vld [vmem:[#allocation5 + $0x18] sm:$0xf0]  ;;  %v3802_v57 = vld [vmem:[#allocation5 + $0x24] sm:$0xf]  ;;  %v3378_v58 = vld [vmem:[#allocation5 + $0x30] sm:$0xf0]  ;;  %v4454_v62 = vor.u32 %v3809_v53, %v3400_v51 }
  0x34   :  { %6099 = vst [vmem:[#allocation32_spill] sm:$0xff] %v4450_v34  ;;  %488 = vmatpush.bf16.msra.mxu0 %v4441_v45  ;;  %v3890_v59 = vld [vmem:[#allocation7 + $0x1e4] sm:$0xf]  ;;  %v3733_v61 = vld [vmem:[#allocation7 + $0x1f0] sm:$0xf0]  ;;  %v4457_v63 = vor.u32 %v3799_v54, %v3370_v55  ;;  %v4460_v7 = vor.u32 %v3802_v57, %v3378_v58 }
  0x35   :  { %6100 = vst [vmem:[#allocation33_spill] sm:$0xff] %v4454_v62  ;;  %v3384_v1 = vld [vmem:[#allocation5 + $0x28] sm:$0xf]  ;;  %v3805_v2 = vld [vmem:[#allocation5 + $0x34] sm:$0xf0]  ;;  %v4462_v9 = vor.u32 %v3890_v59, %v3733_v61 }
  0x36   :  { %497 = vmatpush.bf16.msra.mxu1 %v4424_v27  ;;  %525 = vmatpush.bf16.msrb.mxu3 %v4433_v38  ;;  %6101 = vst [vmem:[#allocation34_spill] sm:$0xff] %v4457_v63  ;;  %v3798_v8 = vld [vmem:[#allocation5 + $0x4] sm:$0xf]  ;;  %v3362_v10 = vld [vmem:[#allocation5 + $0x10] sm:$0xf0]  ;;  %v4465_v16 = vor.u32 %v3805_v2, %v3384_v1 }
  0x37   :  { %511 = vmatpush.bf16.msrb.mxu2 %v4444_v49  ;;  %489 = vmatmul.bf16.vlgmr.msra.gmra.mxu0 %v4298_v6  ;;  %6102 = vst [vmem:[#allocation35_spill] sm:$0xff] %v4462_v9  ;;  %v3886_v11 = vld [vmem:[#allocation7 + $0x1c4] sm:$0xf]  ;;  %v3717_v15 = vld [vmem:[#allocation7 + $0x1d0] sm:$0xf0]  ;;  %v4469_v24 = vor.u32 %v3798_v8, %v3362_v10 }
  0x38   :  { %6103 = vst [vmem:[#allocation36_spill] sm:$0xff] %v4465_v16  ;;  %v3731_v19 = vld [vmem:[#allocation7 + $0x1e0] sm:$0xf]  ;;  %v3892_v20 = vld [vmem:[#allocation7 + $0x1ec] sm:$0xf0]  ;;  %v4472_v25 = vor.u32 %v3886_v11, %v3717_v15 }
  0x39   :  { %v3368_v21 = vld [vmem:[#allocation5 + $0x8] sm:$0xf]  ;;  %v3801_v22 = vld [vmem:[#allocation5 + $0x14] sm:$0xf0]  ;;  %v4474_v28 = vor.u32 %v3892_v20, %v3731_v19  ;;  %v3882_v29 = vld [vmem:[#allocation7 + $0x1a4] sm:$0xf] }
  0x3a   :  { %498 = vmatpush.bf16.msra.mxu1 %v4436_v41  ;;  %526 = vmatpush.bf16.msrb.mxu3 %v4447_v50  ;;  %6104 = vst [vmem:[#allocation37_spill] sm:$0xff] %v4472_v25  ;;  %v3701_v31 = vld [vmem:[#allocation7 + $0x1b0] sm:$0xf0]  ;;  %v4477_v32 = vor.u32 %v3801_v22, %v3368_v21  ;;  %v3715_v36 = vld [vmem:[#allocation7 + $0x1c0] sm:$0xf] }
  0x3b   :  { %512 = vmatpush.bf16.msrb.mxu2 %v4454_v62  ;;  %6105 = vst [vmem:[#allocation38_spill] sm:$0xff] %v4474_v28  ;;  %v3888_v37 = vld [vmem:[#allocation7 + $0x1cc] sm:$0xf0]  ;;  %v4481_v39 = vor.u32 %v3882_v29, %v3701_v31  ;;  %v3699_v42 = vld [vmem:[#allocation7 + $0x1a0] sm:$0xf] }
  0x3c   :  { %6106 = vst [vmem:[#allocation39_spill] sm:$0xff] %v4477_v32  ;;  %v4484_v40 = vor.u32 %v3888_v37, %v3715_v36  ;;  %v3884_v44 = vld [vmem:[#allocation7 + $0x1ac] sm:$0xf0]  ;;  %v3683_v47 = vld [vmem:[#allocation7 + $0x180] sm:$0xf] }
  0x3d   :  { %6107 = vst [vmem:[#allocation40_spill] sm:$0xff] %v4481_v39  ;;  %v4489_v46 = vor.u32 %v3884_v44, %v3699_v42  ;;  %v3880_v51 = vld [vmem:[#allocation7 + $0x18c] sm:$0xf0]  ;;  %v3878_v53 = vld [vmem:[#allocation7 + $0x184] sm:$0xf] }
  0x3e   :  { %499 = vmatpush.bf16.msra.mxu1 %v4450_v34  ;;  %527 = vmatpush.bf16.msrb.mxu3 %v4457_v63  ;;  %6108 = vst [vmem:[#allocation41_spill] sm:$0xff] %v4484_v40  ;;  %v4492_v54 = vor.u32 %v3880_v51, %v3683_v47  ;;  %v3685_v55 = vld [vmem:[#allocation7 + $0x190] sm:$0xf0]  ;;  %v3667_v57 = vld [vmem:[#allocation7 + $0x160] sm:$0xf] }
  0x3f   :  { %513 = vmatpush.bf16.msrb.mxu2 %v4465_v16  ;;  %6109 = vst [vmem:[#allocation42_spill] sm:$0xff] %v4489_v46  ;;  %v3876_v58 = vld [vmem:[#allocation7 + $0x16c] sm:$0xf0]  ;;  %v4494_v59 = vor.u32 %v3878_v53, %v3685_v55  ;;  %v3874_v61 = vld [vmem:[#allocation7 + $0x164] sm:$0xf] }
  0x40   :  { %6110 = vst [vmem:[#allocation43_spill] sm:$0xff] %v4492_v54  ;;  %v3669_v1 = vld [vmem:[#allocation7 + $0x170] sm:$0xf0]  ;;  %v4497_v2 = vor.u32 %v3876_v58, %v3667_v57  ;;  %v3651_v8 = vld [vmem:[#allocation7 + $0x140] sm:$0xf] }
  0x41   :  { %528 = vmatmul.bf16.vlgmr.msrb.gmra.mxu3 %v4298_v6  ;;  %6111 = vst [vmem:[#allocation44_spill] sm:$0xff] %v4494_v59  ;;  %v3872_v10 = vld [vmem:[#allocation7 + $0x14c] sm:$0xf0]  ;;  %v3870_v11 = vld [vmem:[#allocation7 + $0x144] sm:$0xf] }
  0x42   :  { %500 = vmatpush.bf16.msra.mxu1 %v4460_v7  ;;  %970 = vmatpush.bf16.msra.mxu3 %v4462_v9  ;;  %6112 = vst [vmem:[#allocation45_spill] sm:$0xff] %v4497_v2  ;;  %v4504_v15 = vor.u32 %v3872_v10, %v3651_v8  ;;  %v3653_v19 = vld [vmem:[#allocation7 + $0x150] sm:$0xf0]  ;;  %v3635_v20 = vld [vmem:[#allocation7 + $0x120] sm:$0xf] }
  0x43   :  { %514 = vmatpush.bf16.msrb.mxu2 %v4477_v32  ;;  %v3868_v21 = vld [vmem:[#allocation7 + $0x12c] sm:$0xf0]  ;;  %v4506_v22 = vor.u32 %v3870_v11, %v3653_v19  ;;  %v3866_v29 = vld [vmem:[#allocation7 + $0x124] sm:$0xf]  ;;  %v3637_v31 = vld [vmem:[#allocation7 + $0x130] sm:$0xf0] }
  0x44   :  { %6114 = vst [vmem:[#allocation47_spill] sm:$0xff] %v4504_v15  ;;  %v4509_v36 = vor.u32 %v3868_v21, %v3635_v20  ;;  %v4512_v37 = vor.u32 %v3866_v29, %v3637_v31  ;;  %v3619_v42 = vld [vmem:[#allocation7 + $0x100] sm:$0xf]  ;;  %v3864_v44 = vld [vmem:[#allocation7 + $0x10c] sm:$0xf0] }
  0x45   :  { %6115 = vst [vmem:[#allocation48_spill] sm:$0xff] %v4506_v22  ;;  %v4516_v47 = vor.u32 %v3864_v44, %v3619_v42  ;;  %v3862_v51 = vld [vmem:[#allocation7 + $0x104] sm:$0xf]  ;;  %v3621_v53 = vld [vmem:[#allocation7 + $0x110] sm:$0xf0] }
  0x46   :  { %501 = vmatpush.bf16.msra.mxu1 %v4469_v24  ;;  %971 = vmatpush.bf16.msra.mxu3 %v4472_v25  ;;  %6116 = vst [vmem:[#allocation49_spill] sm:$0xff] %v4509_v36  ;;  %v3739_v55 = vld [vmem:[#allocation7 + $0x1e8] sm:$0xf]  ;;  %v4518_v57 = vor.u32 %v3862_v51, %v3621_v53  ;;  %v3893_v58 = vld [vmem:[#allocation7 + $0x1f4] sm:$0xf0] }
  0x47   :  { %515 = vmatmul.bf16.vlgmr.msrb.gmra.mxu2 %v4298_v6  ;;  %6117 = vst [vmem:[#allocation50_spill] sm:$0xff] %v4512_v37  ;;  %v4521_v8 = vor.u32 %v3893_v58, %v3739_v55  ;;  %v3603_v11 = vld [vmem:[#allocation7 + $0xe0] sm:$0xf]  ;;  %v3860_v19 = vld [vmem:[#allocation7 + $0xec] sm:$0xf0] }
  0x48   :  { %6118 = vst [vmem:[#allocation51_spill] sm:$0xff] %v4516_v47  ;;  %v3858_v20 = vld [vmem:[#allocation7 + $0xe4] sm:$0xf]  ;;  %v4528_v21 = vor.u32 %v3860_v19, %v3603_v11  ;;  %v3605_v29 = vld [vmem:[#allocation7 + $0xf0] sm:$0xf0] }
  0x49   :  { %502 = vmatmul.bf16.vlgmr.msra.gmra.mxu1 %v4298_v6  ;;  %v4500_v6 = vor.u32 %v3874_v61, %v3669_v1  ;;  %6119 = vst [vmem:[#allocation52_spill] sm:$0xff] %v4518_v57  ;;  %v3891_v61 = vld [vmem:[#allocation7 + $0x1ec] sm:$0xf]  ;;  %v3741_v1 = vld [vmem:[#allocation7 + $0x1f8] sm:$0xf0]  ;;  %v4530_v44 = vor.u32 %v3858_v20, %v3605_v29 }
  0x4a   :  { %944 = vmatpush.bf16.msrb.mxu1 %v4474_v28  ;;  %972 = vmatpush.bf16.msra.mxu3 %v4481_v39  ;;  %6120 = vst [vmem:[#allocation53_spill] sm:$0xff] %v4521_v8  ;;  %v4523_v10 = vor.u32 %v3891_v61, %v3741_v1  ;;  %v3723_v31 = vld [vmem:[#allocation7 + $0x1c8] sm:$0xf]  ;;  %v3889_v42 = vld [vmem:[#allocation7 + $0x1d4] sm:$0xf0] }
  0x4b   :  { %6113 = vst [vmem:[#allocation46_spill] sm:$0xff] %v4500_v6  ;;  %v4532_v51 = vor.u32 %v3889_v42, %v3723_v31  ;;  %v3887_v53 = vld [vmem:[#allocation7 + $0x1cc] sm:$0xf]  ;;  %v3725_v55 = vld [vmem:[#allocation7 + $0x1d8] sm:$0xf0]  ;;  %931 = vmatpush.bf16.msrb.mxu0 %v4528_v21  ;;  %957 = vmatpush.bf16.msra.mxu2 %v4530_v44 }
  0x4c   :  { %6121 = vst [vmem:[#allocation54_spill] sm:$0xff] %v4523_v10  ;;  %v4535_v58 = vor.u32 %v3887_v53, %v3725_v55  ;;  %v3587_v61 = vld [vmem:[#allocation7 + $0xc0] sm:$0xf]  ;;  %v3856_v1 = vld [vmem:[#allocation7 + $0xcc] sm:$0xf0] }
  0x4d   :  { %6122 = vst [vmem:[#allocation55_spill] sm:$0xff] %v4528_v21  ;;  %v3854_v32 = vld [vmem:[#allocation7 + $0xc4] sm:$0xf]  ;;  %v4540_v11 = vor.u32 %v3856_v1, %v3587_v61  ;;  %v3589_v19 = vld [vmem:[#allocation7 + $0xd0] sm:$0xf0] }
  0x4e   :  { %945 = vmatpush.bf16.msrb.mxu1 %v4484_v40  ;;  %973 = vmatpush.bf16.msra.mxu3 %v4494_v59  ;;  %6123 = vst [vmem:[#allocation56_spill] sm:$0xff] %v4530_v44  ;;  %v3707_v20 = vld [vmem:[#allocation7 + $0x1a8] sm:$0xf]  ;;  %v3885_v29 = vld [vmem:[#allocation7 + $0x1b4] sm:$0xf0]  ;;  %v4542_v31 = vor.u32 %v3854_v32, %v3589_v19 }
  0x4f   :  { %6124 = vst [vmem:[#allocation57_spill] sm:$0xff] %v4532_v51  ;;  %v4544_v42 = vor.u32 %v3885_v29, %v3707_v20  ;;  %v3883_v53 = vld [vmem:[#allocation7 + $0x1ac] sm:$0xf]  ;;  %v3709_v55 = vld [vmem:[#allocation7 + $0x1b8] sm:$0xf0]  ;;  %932 = vmatpush.bf16.msrb.mxu0 %v4540_v11 }
  0x50   :  { %6125 = vst [vmem:[#allocation58_spill] sm:$0xff] %v4535_v58  ;;  %v4547_v44 = vor.u32 %v3883_v53, %v3709_v55  ;;  %958 = vmatpush.bf16.msra.mxu2 %v4542_v31  ;;  %v3571_v21 = vld [vmem:[#allocation7 + $0xa0] sm:$0xf]  ;;  %v3852_v45 = vld [vmem:[#allocation7 + $0xac] sm:$0xf0] }
  0x51   :  { %6126 = vst [vmem:[#allocation59_spill] sm:$0xff] %v4540_v11  ;;  %v3850_v16 = vld [vmem:[#allocation7 + $0xa4] sm:$0xf]  ;;  %v4552_v61 = vor.u32 %v3852_v45, %v3571_v21  ;;  %v3573_v32 = vld [vmem:[#allocation7 + $0xb0] sm:$0xf0] }
  0x52   :  { %946 = vmatpush.bf16.msrb.mxu1 %v4489_v46  ;;  %974 = vmatpush.bf16.msra.mxu3 %v4500_v6  ;;  %6127 = vst [vmem:[#allocation60_spill] sm:$0xff] %v4542_v31  ;;  %v3691_v1 = vld [vmem:[#allocation7 + $0x188] sm:$0xf]  ;;  %v3881_v19 = vld [vmem:[#allocation7 + $0x194] sm:$0xf0]  ;;  %v4554_v20 = vor.u32 %v3850_v16, %v3573_v32 }
  0x53   :  { %6128 = vst [vmem:[#allocation61_spill] sm:$0xff] %v4544_v42  ;;  %v4556_v29 = vor.u32 %v3881_v19, %v3691_v1  ;;  %v3879_v53 = vld [vmem:[#allocation7 + $0x18c] sm:$0xf]  ;;  %v3693_v55 = vld [vmem:[#allocation7 + $0x198] sm:$0xf0]  ;;  %933 = vmatpush.bf16.msrb.mxu0 %v4552_v61 }
  0x54   :  { %6129 = vst [vmem:[#allocation62_spill] sm:$0xff] %v4547_v44  ;;  %v4561_v31 = vor.u32 %v3879_v53, %v3693_v55  ;;  %959 = vmatpush.bf16.msra.mxu2 %v4554_v20  ;;  %v3555_v30 = vld [vmem:[#allocation7 + $0x80] sm:$0xf]  ;;  %v3848_v45 = vld [vmem:[#allocation7 + $0x8c] sm:$0xf0] }
  0x55   :  { %6130 = vst [vmem:[#allocation63_spill] sm:$0xff] %v4552_v61  ;;  %v3846_v21 = vld [vmem:[#allocation7 + $0x84] sm:$0xf]  ;;  %v4566_v16 = vor.u32 %v3848_v45, %v3555_v30  ;;  %v3557_v32 = vld [vmem:[#allocation7 + $0x90] sm:$0xf0] }
  0x56   :  { %947 = vmatpush.bf16.msrb.mxu1 %v4492_v54  ;;  %975 = vmatpush.bf16.msra.mxu3 %v4506_v22  ;;  %6131 = vst [vmem:[#allocation64_spill] sm:$0xff] %v4554_v20  ;;  %v3675_v1 = vld [vmem:[#allocation7 + $0x168] sm:$0xf]  ;;  %v3877_v19 = vld [vmem:[#allocation7 + $0x174] sm:$0xf0]  ;;  %v4568_v62 = vor.u32 %v3846_v21, %v3557_v32 }
  0x57   :  { %6132 = vst [vmem:[#allocation65_spill] sm:$0xff] %v4556_v29  ;;  %v4570_v17 = vor.u32 %v3877_v19, %v3675_v1  ;;  %v3875_v53 = vld [vmem:[#allocation7 + $0x16c] sm:$0xf]  ;;  %v3677_v55 = vld [vmem:[#allocation7 + $0x178] sm:$0xf0]  ;;  %934 = vmatpush.bf16.msrb.mxu0 %v4566_v16 }
  0x58   :  { %6133 = vst [vmem:[#allocation66_spill] sm:$0xff] %v4561_v31  ;;  %v4573_v20 = vor.u32 %v3875_v53, %v3677_v55  ;;  %960 = vmatpush.bf16.msra.mxu2 %v4568_v62  ;;  %v3539_v61 = vld [vmem:[#allocation7 + $0x60] sm:$0xf]  ;;  %v3844_v49 = vld [vmem:[#allocation7 + $0x6c] sm:$0xf0] }
  0x59   :  { %6134 = vst [vmem:[#allocation67_spill] sm:$0xff] %v4566_v16  ;;  %v3842_v4 = vld [vmem:[#allocation7 + $0x64] sm:$0xf]  ;;  %v4578_v30 = vor.u32 %v3844_v49, %v3539_v61  ;;  %v3541_v45 = vld [vmem:[#allocation7 + $0x70] sm:$0xf0] }
  0x5a   :  { %948 = vmatpush.bf16.msrb.mxu1 %v4497_v2  ;;  %976 = vmatpush.bf16.msra.mxu3 %v4512_v37  ;;  %6135 = vst [vmem:[#allocation68_spill] sm:$0xff] %v4568_v62  ;;  %v3659_v21 = vld [vmem:[#allocation7 + $0x148] sm:$0xf]  ;;  %v3873_v32 = vld [vmem:[#allocation7 + $0x154] sm:$0xf0]  ;;  %v4580_v1 = vor.u32 %v3842_v4, %v3541_v45 }
  0x5b   :  { %6136 = vst [vmem:[#allocation69_spill] sm:$0xff] %v4570_v17  ;;  %v4582_v19 = vor.u32 %v3873_v32, %v3659_v21  ;;  %v3871_v53 = vld [vmem:[#allocation7 + $0x14c] sm:$0xf]  ;;  %v3661_v55 = vld [vmem:[#allocation7 + $0x158] sm:$0xf0]  ;;  %935 = vmatpush.bf16.msrb.mxu0 %v4578_v30 }
  0x5c   :  { %6137 = vst [vmem:[#allocation70_spill] sm:$0xff] %v4573_v20  ;;  %v4587_v62 = vor.u32 %v3871_v53, %v3661_v55  ;;  %961 = vmatpush.bf16.msra.mxu2 %v4580_v1  ;;  %v3523_v49 = vld [vmem:[#allocation7 + $0x40] sm:$0xf]  ;;  %v3840_v61 = vld [vmem:[#allocation7 + $0x4c] sm:$0xf0] }
  0x5d   :  { %6138 = vst [vmem:[#allocation71_spill] sm:$0xff] %v4578_v30  ;;  %v3838_v4 = vld [vmem:[#allocation7 + $0x44] sm:$0xf]  ;;  %v4592_v45 = vor.u32 %v3840_v61, %v3523_v49  ;;  %v3525_v21 = vld [vmem:[#allocation7 + $0x50] sm:$0xf0] }
  0x5e   :  { %949 = vmatpush.bf16.msrb.mxu1 %v4504_v15  ;;  %977 = vmatpush.bf16.msra.mxu3 %v4518_v57  ;;  %6139 = vst [vmem:[#allocation72_spill] sm:$0xff] %v4580_v1  ;;  %v3643_v32 = vld [vmem:[#allocation7 + $0x128] sm:$0xf]  ;;  %v3867_v53 = vld [vmem:[#allocation7 + $0x12c] sm:$0xf] }
  0x5f   :  { %6140 = vst [vmem:[#allocation73_spill] sm:$0xff] %v4582_v19  ;;  %v3645_v55 = vld [vmem:[#allocation7 + $0x138] sm:$0xf0]  ;;  %v4601_v1 = vld [vmem:[%s5864_s3] sm:$0xf]  ;;  %936 = vmatpush.bf16.msrb.mxu0 %v4592_v45 }
  0x60   :  { %6142 = vst [vmem:[#allocation75_spill] sm:$0xff] %v4587_v62  ;;  %v4604_v30 = vor.u32 %v3867_v53, %v3645_v55  ;;  %v3507_v49 = vld [vmem:[#allocation7 + $0x20] sm:$0xf]  ;;  %v3836_v61 = vld [vmem:[#allocation7 + $0x2c] sm:$0xf0] }
  0x61   :  { %6143 = vst [vmem:[#allocation76_spill] sm:$0xff] %v4592_v45  ;;  %v3629_v45 = vld [vmem:[#allocation7 + $0x118] sm:$0xf0]  ;;  %v3830_v33 = vld [vmem:[#allocation7 + $0x4] sm:$0xf] }
  0x62   :  { %950 = vmatpush.bf16.msrb.mxu1 %v4509_v36  ;;  %1022 = vmatpush.bf16.msrb.mxu3 %v4523_v10  ;;  %6146 = vst [vmem:[#allocation79_spill] sm:$0xff] %v4601_v1 }
  0x63   :  { %6147 = vst [vmem:[#allocation80_spill] sm:$0xff] %v4604_v30 }
  0x66   :  { %951 = vmatpush.bf16.msrb.mxu1 %v4516_v47  ;;  %1023 = vmatpush.bf16.msrb.mxu3 %v4535_v58 }
  0x6a   :  { %996 = vmatpush.bf16.msra.mxu1 %v4521_v8  ;;  %1024 = vmatpush.bf16.msrb.mxu3 %v4547_v44 }
  0x6e   :  { %997 = vmatpush.bf16.msra.mxu1 %v4532_v51  ;;  %1025 = vmatpush.bf16.msrb.mxu3 %v4561_v31 }
  0x72   :  { %998 = vmatpush.bf16.msra.mxu1 %v4544_v42  ;;  %1026 = vmatpush.bf16.msrb.mxu3 %v4573_v20  ;;  %v3869_v20 = vld [vmem:[#allocation7 + $0x134] sm:$0xf0] }
  0x76   :  { %999 = vmatpush.bf16.msra.mxu1 %v4556_v29  ;;  %1027 = vmatpush.bf16.msrb.mxu3 %v4587_v62  ;;  %v3627_v62 = vld [vmem:[#allocation7 + $0x108] sm:$0xf] }
  0x7a   :  { %1000 = vmatpush.bf16.msra.mxu1 %v4570_v17  ;;  %v4594_v17 = vor.u32 %v3838_v4, %v3525_v21  ;;  %v3834_v4 = vld [vmem:[#allocation7 + $0x24] sm:$0xf]  ;;  %1028 = vmatpush.bf16.msrb.mxu3 %v4604_v30  ;;  %v4611_v21 = vor.u32 %v3836_v61, %v3507_v49  ;;  %v5930_v49 = vmov 0.0|0.0   ;;  %v3491_v61 = vld [vmem:[#allocation7] sm:$0xf] }
  0x7b   :  { %952 = vmatmul.bf16.vlgmr.msrb.gmra.mxu1 %v5930_v49  ;;  %v3832_v30 = vld [vmem:[#allocation7 + $0xc] sm:$0xf0]  ;;  %978 = vmatmul.bf16.vlgmr.msra.gmra.mxu3 %v5930_v49 }
  0x7c   :  { %6144 = vst [vmem:[#allocation77_spill] sm:$0xff] %v4594_v17  ;;  %962 = vmatpush.bf16.msra.mxu2 %v4594_v17  ;;  %v3863_v17 = vld [vmem:[#allocation7 + $0x10c] sm:$0xf]  ;;  %937 = vmatpush.bf16.msrb.mxu0 %v4611_v21 }
  0x7d   :  { %6148 = vst [vmem:[#allocation81_spill] sm:$0xff] %v4611_v21  ;;  %v4621_v29 = vor.u32 %v3863_v17, %v3629_v45 }
  0x7e   :  { %1001 = vmatpush.bf16.msra.mxu1 %v4582_v19  ;;  %v3865_v19 = vld [vmem:[#allocation7 + $0x114] sm:$0xf0] }
  0x7f   :  { %v4617_v55 = vor.u32 %v3865_v19, %v3627_v62  ;;  %6151 = vst [vmem:[#allocation84_spill] sm:$0xff] %v4621_v29  ;;  %v4627_v62 = vor.u32 %v3832_v30, %v3491_v61  ;;  %v3493_v19 = vld [vmem:[#allocation7 + $0x10] sm:$0xf0]  ;;  %1029 = vmatpush.bf16.msrb.mxu3 %v4621_v29  ;;  %v6156_v30 = vperm.slane %v4601_v1, 0 }
  0x80   :  { %v4631_v17 = vor.u32 %v3830_v33, %v3493_v19  ;;  %v3595_v19 = vld [vmem:[#allocation7 + $0xc8] sm:$0xf] }
  0x81   :  { %6150 = vst [vmem:[#allocation83_spill] sm:$0xff] %v4617_v55  ;;  %938 = vmatpush.bf16.msrb.mxu0 %v4627_v62 }
  0x82   :  { %6152 = vst [vmem:[#allocation85_spill] sm:$0xff] %v4627_v62 }
  0x83   :  { %6153 = vst [vmem:[#allocation86_spill] sm:$0xff] %v4631_v17  ;;  %1137 = vmatpush.bf16.msra.mxu3 %v4365_v26 }
  0x87   :  { %1138 = vmatpush.bf16.msra.mxu3 %v4381_v43  ;;  %v3847_v43 = vld [vmem:[#allocation7 + $0x8c] sm:$0xf] }
  0x8b   :  { %1139 = vmatpush.bf16.msra.mxu3 %v4395_v60 }
  0x8f   :  { %1140 = vmatpush.bf16.msra.mxu3 %v4407_v13 }
  0x93   :  { %1141 = vmatpush.bf16.msra.mxu3 %v4421_v23 }
  0x97   :  { %1142 = vmatpush.bf16.msra.mxu3 %v4433_v38 }
  0x9b   :  { %1143 = vmatpush.bf16.msra.mxu3 %v4447_v50 }
  0x9e   :  { %v4558_v11 = vpop.f32.mrf.mxu1 }
  0x9f   :  { %v4642_v61 = vadd.f32 %v4558_v11, %v6156_v30  ;;  %v3597_v11 = vld [vmem:[#allocation7 + $0xd8] sm:$0xf0]  ;;  %1144 = vmatpush.bf16.msra.mxu3 %v4457_v63 }
  0xa1   :  { %6157 = vst [vmem:[#allocation89_spill] sm:$0xff] %v4642_v61 }
  0xa6   :  { %v4584_v16 = vpop.f32.mrf.mxu1 }
  0xa7   :  { %6141 = vst [vmem:[#allocation74_spill] sm:$0xff] %v4584_v16  ;;  %v4596_v16 = vor.u32 %v3869_v20, %v3643_v32  ;;  %v4608_v20 = vpop.f32.mrf.mxu3  ;;  %v3509_v32 = vld [vmem:[#allocation7 + $0x30] sm:$0xf0] }
  0xa8   :  { %v4615_v53 = vor.u32 %v3834_v4, %v3509_v32  ;;  %v3611_v4 = vld [vmem:[#allocation7 + $0xe8] sm:$0xf]  ;;  %v3861_v32 = vld [vmem:[#allocation7 + $0xf4] sm:$0xf0] }
  0xa9   :  { %6145 = vst [vmem:[#allocation78_spill] sm:$0xff] %v4596_v16  ;;  %1002 = vmatpush.bf16.msra.mxu1 %v4596_v16  ;;  %v4633_v45 = vor.u32 %v3861_v32, %v3611_v4  ;;  %v3859_v16 = vld [vmem:[#allocation7 + $0xec] sm:$0xf]  ;;  %v3857_v4 = vld [vmem:[#allocation7 + $0xd4] sm:$0xf0] }
  0xaa   :  { %6149 = vst [vmem:[#allocation82_spill] sm:$0xff] %v4615_v53  ;;  %963 = vmatpush.bf16.msra.mxu2 %v4615_v53  ;;  %v3613_v53 = vld [vmem:[#allocation7 + $0xf8] sm:$0xf0]  ;;  %v3855_v32 = vld [vmem:[#allocation7 + $0xcc] sm:$0xf] }
  0xab   :  { %6154 = vst [vmem:[#allocation87_spill] sm:$0xff] %v4633_v45  ;;  %v4637_v49 = vor.u32 %v3859_v16, %v3613_v53  ;;  %v4644_v21 = vpop.f32.mrf.mxu2  ;;  %983 = vmatpush.bf16.msra.mxu0 %v4633_v45  ;;  %v4651_v53 = vor.u32 %v3857_v4, %v3595_v19  ;;  %v4656_v26 = vor.u32 %v3855_v32, %v3597_v11  ;;  %v3581_v4 = vld [vmem:[#allocation7 + $0xb8] sm:$0xf0] }
  0xad   :  { %1003 = vmatpush.bf16.msra.mxu1 %v4617_v55  ;;  %6155 = vst [vmem:[#allocation88_spill] sm:$0xff] %v4637_v49 }
  0xae   :  { %v4613_v31 = vpop.f32.mrf.mxu1  ;;  %964 = vmatpush.bf16.msra.mxu2 %v4631_v17  ;;  %6158 = vst [vmem:[#allocation90_spill] sm:$0xff] %v4651_v53 }
  0xaf   :  { %v4653_v30 = vpop.f32.mrf.mxu3  ;;  %6160 = vst [vmem:[#allocation92_spill] sm:$0xff] %v4656_v26  ;;  %984 = vmatpush.bf16.msra.mxu0 %v4651_v53 }
  0xb0   :  { %6159 = vst [vmem:[#allocation91_spill] sm:$0xff] %v4653_v30  ;;  %v5950_v30 = vperm.slane %v4601_v1, 1 }
  0xb1   :  { %1111 = vmatpush.bf16.msrb.mxu1 %v4384_v48 }
  0xb2   :  { %1009 = vmatpush.bf16.msrb.mxu2 %v4637_v49  ;;  %v3579_v49 = vld [vmem:[#allocation7 + $0xa8] sm:$0xf] }
  0xb4   :  { %v490_v33 = vpop.f32.mrf.mxu0 }
  0xb5   :  { %v533_v16 = vadd.f32 %v490_v33, %v4642_v61  ;;  %1112 = vmatpush.bf16.msrb.mxu1 %v4398_v0  ;;  %v3853_v33 = vld [vmem:[#allocation7 + $0xb4] sm:$0xf0]  ;;  %v3851_v61 = vld [vmem:[#allocation7 + $0xac] sm:$0xf] }
  0xb6   :  { %v4658_v45 = vpop.f32.mrf.mxu1  ;;  %1010 = vmatpush.bf16.msrb.mxu2 %v4656_v26  ;;  %v4663_v19 = vor.u32 %v3853_v33, %v3579_v49  ;;  %v4667_v32 = vor.u32 %v3851_v61, %v3581_v4  ;;  %v3565_v33 = vld [vmem:[#allocation7 + $0x98] sm:$0xf0]  ;;  %v4680_v61 = vadd.f32 %v4613_v31, %v5950_v30 }
  0xb7   :  { %v3486_v48 = vmul.f32 -1.442695, %v533_v16  ;;  %6161 = vst [vmem:[#allocation93_spill] sm:$0xff] %v4658_v45  ;;  %v5953_v16 = vperm.slane %v4601_v1, 3  ;;  %v3563_v45 = vld [vmem:[#allocation7 + $0x88] sm:$0xf]  ;;  %v4683_v4 = vor.u32 %v3847_v43, %v3565_v33 }
  0xb8   :  { %6162 = vst [vmem:[#allocation94_spill] sm:$0xff] %v4663_v19  ;;  %985 = vmatpush.bf16.msra.mxu0 %v4663_v19  ;;  %v3547_v43 = vld [vmem:[#allocation7 + $0x68] sm:$0xf]  ;;  %v3845_v33 = vld [vmem:[#allocation7 + $0x74] sm:$0xf0] }
  0xb9   :  { %3906 = vpow2.f32 %v3486_v48  ;;  %1113 = vmatpush.bf16.msrb.mxu1 %v4412_v14  ;;  %6163 = vst [vmem:[#allocation95_spill] sm:$0xff] %v4667_v32  ;;  %v3849_v48 = vld [vmem:[#allocation7 + $0x94] sm:$0xf0]  ;;  %v4672_v14 = vpop.f32.mrf.mxu2  ;;  %v4688_v60 = vadd.f32 %v4608_v20, %v5953_v16  ;;  %v4699_v20 = vor.u32 %v3845_v33, %v3547_v43  ;;  %v3843_v16 = vld [vmem:[#allocation7 + $0x6c] sm:$0xf] }
  0xba   :  { %1011 = vmatpush.bf16.msrb.mxu2 %v4667_v32  ;;  %6164 = vst [vmem:[#allocation96_spill] sm:$0xff] %v4672_v14  ;;  %v4675_v49 = vor.u32 %v3849_v48, %v3563_v45  ;;  %v6169_v45 = vmov 0.0|0.0   ;;  %v3839_v43 = vld [vmem:[#allocation7 + $0x4c] sm:$0xf]  ;;  %v3533_v33 = vld [vmem:[#allocation7 + $0x58] sm:$0xf0] }
  0xbb   :  { %6166 = vst [vmem:[#allocation98_spill] sm:$0xff] %v4680_v61  ;;  %1004 = vmatmul.bf16.vlgmr.msra.gmra.mxu1 %v6169_v45  ;;  %1030 = vmatmul.bf16.vlgmr.msrb.gmra.mxu3 %v6169_v45  ;;  %v3531_v45 = vld [vmem:[#allocation7 + $0x48] sm:$0xf] }
  0xbc   :  { %v492_v11 = vpop.f32.mrf.mxu0  ;;  %6165 = vst [vmem:[#allocation97_spill] sm:$0xff] %v4675_v49  ;;  %986 = vmatpush.bf16.msra.mxu0 %v4675_v49  ;;  %1282 = vmatpush.bf16.msrb.mxu3 %v4462_v9 }
  0xbd   :  { %1114 = vmatpush.bf16.msrb.mxu1 %v4424_v27  ;;  %6167 = vst [vmem:[#allocation99_spill] sm:$0xff] %v4683_v4  ;;  %v3549_v27 = vld [vmem:[#allocation7 + $0x78] sm:$0xf0] }
  0xbe   :  { %6168 = vst [vmem:[#allocation100_spill] sm:$0xff] %v4688_v60  ;;  %1012 = vmatpush.bf16.msrb.mxu2 %v4683_v4  ;;  %v4704_v0 = vor.u32 %v3843_v16, %v3549_v27 }
  0xbf   :  { %v3907_v11 = vpop.eup %3906  ;;  %6170 = vst [vmem:[#allocation101_spill] sm:$0xff] %v4699_v20 }
  0xc0   :  { %v4692_v48 = vadd.f32 1.0, %v3907_v11  ;;  %987 = vmatpush.bf16.msra.mxu0 %v4699_v20  ;;  %6171 = vst [vmem:[#allocation102_spill] sm:$0xff] %v4704_v0  ;;  %1283 = vmatpush.bf16.msrb.mxu3 %v4472_v25 }
  0xc1   :  { %1115 = vmatpush.bf16.msrb.mxu1 %v4436_v41  ;;  %v3835_v41 = vld [vmem:[#allocation7 + $0x2c] sm:$0xf] }
  0xc2   :  { %3908 = vrcp.f32 %v4692_v48  ;;  %1013 = vmatpush.bf16.msrb.mxu2 %v4704_v0  ;;  %v3833_v0 = vld [vmem:[#allocation7 + $0x14] sm:$0xf0]  ;;  %vm546_vm3 = vweird.f32 %v4692_v48 }
  0xc4   :  { %v529_v30 = vpop.f32.mrf.mxu3  ;;  %1284 = vmatpush.bf16.msrb.mxu3 %v4481_v39 }
  0xc5   :  { %v536_v13 = vadd.f32 %v529_v30, %v4688_v60  ;;  %1116 = vmatpush.bf16.msrb.mxu1 %v4450_v34 }
  0xc6   :  { %v503_v14 = vpop.f32.mrf.mxu1 }
  0xc7   :  { %v534_v31 = vadd.f32 %v503_v14, %v4680_v61  ;;  %v3488_v14 = vmul.f32 -1.442695, %v536_v13  ;;  %v3841_v61 = vld [vmem:[#allocation7 + $0x54] sm:$0xf0] }
  0xc8   :  { %v4708_v30 = vor.u32 %v3841_v61, %v3531_v45  ;;  %v4714_v27 = vpop.eup %3908  ;;  %1285 = vmatpush.bf16.msrb.mxu3 %v4494_v59 }
  0xc9   :  { %v3487_v11 = vmul.f32 -1.442695, %v534_v31  ;;  %v4711_v31 = vor.u32 %v3839_v43, %v3533_v33  ;;  %v542_v61 = vmul.f32 %v4714_v27, %v4692_v48  ;;  %1117 = vmatpush.bf16.msrb.mxu1 %v4460_v7  ;;  %v3517_v43 = vld [vmem:[#allocation7 + $0x38] sm:$0xf0]  ;;  %vm547_vm2 = vweird.f32 %v4714_v27 }
  0xca   :  { %6172 = vst [vmem:[#allocation103_spill] sm:$0xff] %v4708_v30  ;;  %v516_v13 = vpop.f32.mrf.mxu2  ;;  %988 = vmatpush.bf16.msra.mxu0 %v4708_v30  ;;  %vm548_vm4 = vmor %vm546_vm3, %vm547_vm2 }
  0xcb   :  { %3910 = vpow2.f32 %v3487_v11  ;;  %6173 = vst [vmem:[#allocation104_spill] sm:$0xff] %v4711_v31  ;;  %v3515_v11 = vld [vmem:[#allocation7 + $0x28] sm:$0xf]  ;;  %1014 = vmatpush.bf16.msrb.mxu2 %v4711_v31  ;;  %v543_v60 = vsub.f32 1.0, %v542_v61 }
  0xcc   :  { %3912 = vpow2.f32 %v3488_v14  ;;  %v531_v16 = vpop.f32.mrf.mxu3  ;;  %v3837_v14 = vld [vmem:[#allocation7 + $0x34] sm:$0xf0]  ;;  %v3499_v31 = vld [vmem:[#allocation7 + $0x8] sm:$0xf]  ;;  %1286 = vmatpush.bf16.msrb.mxu3 %v4500_v6 }
  0xcd   :  { %v4720_v45 = vor.u32 %v3837_v14, %v3515_v11  ;;  %v5980_v16 = vperm.slane %v4601_v1, 2  ;;  %1118 = vmatpush.bf16.msrb.mxu1 %v4469_v24  ;;  %v3831_v11 = vld [vmem:[#allocation7 + $0xc] sm:$0xf]  ;;  %v3501_v14 = vld [vmem:[#allocation7 + $0x18] sm:$0xf0]  ;;  %v4739_v61 = vor.u32 %v3833_v0, %v3499_v31 }
  0xce   :  { %v505_v23 = vpop.f32.mrf.mxu1 }
  0xcf   :  { %6174 = vst [vmem:[#allocation105_spill] sm:$0xff] %v4720_v45  ;;  %v4723_v23 = vor.u32 %v3835_v41, %v3517_v43  ;;  %989 = vmatpush.bf16.msra.mxu0 %v4720_v45  ;;  %v544_v43 = vmul.f32 %v4714_v27, %v543_v60 }
  0xd0   :  { %6177 = vst [vmem:[#allocation108_spill] sm:$0xff] %v4739_v61  ;;  %1287 = vmatpush.bf16.msrb.mxu3 %v4506_v22 }
  0xd1   :  { %v3911_v33 = vpop.eup %3910  ;;  %6175 = vst [vmem:[#allocation106_spill] sm:$0xff] %v4723_v23  ;;  %1015 = vmatpush.bf16.msrb.mxu2 %v4723_v23  ;;  %1256 = vmatpush.bf16.msra.mxu1 %v4474_v28  ;;  %v545_v31 = vadd.f32 %v4714_v27, %v544_v43 }
  0xd2   :  { %v3913_v38 = vpop.eup %3912  ;;  %v559_v34 = vadd.f32 1.0, %v3911_v33  ;;  %v518_v41 = vpop.f32.mrf.mxu2  ;;  %v4743_v33 = vor.u32 %v3831_v11, %v3501_v14  ;;  %v552_v11 = vand.u32 2147483648, %v4692_v48 }
  0xd3   :  { %v4727_v30 = vadd.f32 1.0, %v3913_v38  ;;  %v4737_v38 = vadd.f32 %v4644_v21, %v5980_v16  ;;  %990 = vmatpush.bf16.msra.mxu0 %v4739_v61  ;;  %v550_v41 = vand.u32 2147483647, %v4692_v48  ;;  %v549_v43 = vsel %vm548_vm4, %v4714_v27, %v545_v31 }
  0xd4   :  { %3914 = vrcp.f32 %v559_v34  ;;  %6178 = vst [vmem:[#allocation109_spill] sm:$0xff] %v4743_v33  ;;  %v569_v25 = vand.u32 2147483647, %v559_v34  ;;  %v553_v9 = vor.u32 1.1754944e-38, %v552_v11  ;;  %vm565_vm6 = vweird.f32 %v559_v34  ;;  %1288 = vmatpush.bf16.msrb.mxu3 %v4512_v37  ;;  %v6181_v11 = vld [vmem:[#allocation66_spill] sm:$0xff] }
  0xd5   :  { %3916 = vrcp.f32 %v4727_v30  ;;  %6176 = vst [vmem:[#allocation107_spill] sm:$0xff] %v4737_v38  ;;  %1016 = vmatpush.bf16.msrb.mxu2 %v4743_v33  ;;  %1257 = vmatpush.bf16.msra.mxu1 %v4484_v40  ;;  %v535_v1 = vadd.f32 %v516_v13, %v4737_v38  ;;  %v571_v13 = vand.u32 2147483648, %v559_v34  ;;  %vm551_vm7 = vcmp.eq.f32.partialorder %v550_v41, 8.507059e+37  ;;  %v6182_v41 = vld [vmem:[#allocation20_spill] sm:$0xff] }
  0xd6   :  { %v554_v63 = vsel %vm551_vm7, %v553_v9, %v549_v43  ;;  %vm570_vm9 = vcmp.eq.f32.partialorder %v569_v25, 8.507059e+37  ;;  %v591_v9 = vand.u32 2147483648, %v4727_v30  ;;  %vm585_vm11 = vweird.f32 %v4727_v30  ;;  %v6184_v43 = vld [vmem:[#allocation69_spill] sm:$0xff] }
  0xd7   :  { %3918 = vtanh.f32 %v535_v1  ;;  %v572_v48 = vor.u32 1.1754944e-38, %v571_v13  ;;  %v589_v25 = vand.u32 2147483647, %v4727_v30  ;;  %v6183_v13 = vld [vmem:[#allocation31_spill] sm:$0xff] }
  0xd8   :  { %1289 = vmatpush.bf16.msrb.mxu3 %v4518_v57 }
  0xd9   :  { %1258 = vmatpush.bf16.msra.mxu1 %v4489_v46  ;;  %vm590_vm13 = vcmp.eq.f32.partialorder %v589_v25, 8.507059e+37  ;;  %v6193_v25 = vld [vmem:[#allocation80_spill] sm:$0xff] }
  0xda   :  { %v3915_v28 = vpop.eup %3914 }
  0xdb   :  { %v3917_v21 = vpop.eup %3916  ;;  %v561_v0 = vmul.f32 %v3915_v28, %v559_v34  ;;  %vm566_vm5 = vweird.f32 %v3915_v28 }
  0xdc   :  { %v581_v60 = vmul.f32 %v3917_v21, %v4727_v30  ;;  %vm567_vm8 = vmor %vm565_vm6, %vm566_vm5  ;;  %vm586_vm10 = vweird.f32 %v3917_v21  ;;  %v6179_v30 = vld [vmem:[#allocation27_spill] sm:$0xff] }
  0xdd   :  { %v562_v14 = vsub.f32 1.0, %v561_v0  ;;  %1259 = vmatpush.bf16.msra.mxu1 %v4492_v54  ;;  %v3919_v39 = vpop.eup %3918  ;;  %vm587_vm12 = vmor %vm585_vm11, %vm586_vm10 }
  0xde   :  { %v582_v40 = vsub.f32 1.0, %v581_v60  ;;  %v596_v31 = vmul.f32 %v3919_v39, %v554_v63 }
  0xdf   :  { %v563_v16 = vmul.f32 %v3915_v28, %v562_v14 }
  0xe0   :  { %v583_v14 = vmul.f32 %v3917_v21, %v582_v40 }
  0xe1   :  { %v564_v0 = vadd.f32 %v3915_v28, %v563_v16  ;;  %1260 = vmatpush.bf16.msra.mxu1 %v4497_v2 }
  0xe2   :  { %v584_v16 = vadd.f32 %v3917_v21, %v583_v14  ;;  %v6188_v14 = vld [vmem:[#allocation73_spill] sm:$0xff] }
  0xe3   :  { %v568_v1 = vsel %vm567_vm8, %v3915_v28, %v564_v0  ;;  %v592_v28 = vor.u32 1.1754944e-38, %v591_v9  ;;  %v6185_v0 = vld [vmem:[#allocation70_spill] sm:$0xff] }
  0xe4   :  { %v573_v46 = vsel %vm570_vm9, %v572_v48, %v568_v1  ;;  %v588_v63 = vsel %vm587_vm12, %v3917_v21, %v584_v16  ;;  %v6180_v21 = vld [vmem:[#allocation65_spill] sm:$0xff]  ;;  %v6186_v48 = vld [vmem:[#allocation23_spill] sm:$0xff]  ;;  %v6191_v16 = vld [vmem:[#allocation36_spill] sm:$0xff] }
  0xe5   :  { %v595_v27 = vmul.f32 0.0, %v573_v46  ;;  %1261 = vmatpush.bf16.msra.mxu1 %v4504_v15  ;;  %v593_v40 = vsel %vm590_vm13, %v592_v28, %v588_v63  ;;  %v6187_v1 = vld [vmem:[#allocation33_spill] sm:$0xff]  ;;  %v6192_v9 = vld [vmem:[#allocation78_spill] sm:$0xff]  ;;  %v6195_v28 = vld [vmem:[#allocation39_spill] sm:$0xff] }
  0xe6   :  { %v6194_v63 = vld [vmem:[#allocation30_spill] sm:$0xff] }
  0xe7   :  { %v4763_v34 = vadd.f32 %v596_v31, %v595_v27  ;;  %v6189_v27 = vld [vmem:[#allocation75_spill] sm:$0xff]  ;;  %v6190_v31 = vld [vmem:[#allocation26_spill] sm:$0xff] }
  0xe9   :  { %3920 = vtanh.f32 %v4763_v34  ;;  %1262 = vmatpush.bf16.msra.mxu1 %v4509_v36 }
  0xed   :  { %1263 = vmatpush.bf16.msra.mxu1 %v4516_v47 }
  0xef   :  { %v3921_v39 = vpop.eup %3920 }
  0xf0   :  { %v599_v46 = vmul.f32 %v3921_v39, %v593_v40  ;;  %v6196_v39 = vld [vmem:[#allocation55_spill] sm:$0xff]  ;;  %v6197_v40 = vld [vmem:[#allocation56_spill] sm:$0xff] }
  0xf2   :  { %v600_v60 = vpack.c.bf16 %v599_v46, %v599_v46  ;;  %v6198_v46 = vld [vmem:[#allocation59_spill] sm:$0xff] }
  0xf4   :  { %939 = vmatmul.bf16.vlgmr.msrb.gmra.mxu0 %v600_v60  ;;  %965 = vmatmul.bf16.vlgmr.msra.gmra.mxu2 %v600_v60 }
  0xf5   :  { %1119 = vmatmul.bf16.vlgmr.msrb.gmra.mxu1 %v600_v60  ;;  %1145 = vmatmul.bf16.vlgmr.msra.gmra.mxu3 %v600_v60 }
  0xf6   :  { %1098 = vmatpush.bf16.msrb.mxu0 %v4358_v3  ;;  %1124 = vmatpush.bf16.msra.mxu2 %v4392_v56 }
  0xf7   :  { %1308 = vmatpush.bf16.msrb.mxu1 %v4521_v8  ;;  %1334 = vmatpush.bf16.msra.mxu3 %v4523_v10 }
  0xfa   :  { %1099 = vmatpush.bf16.msrb.mxu0 %v4361_v12  ;;  %1125 = vmatpush.bf16.msra.mxu2 %v4404_v5 }
  0xfb   :  { %1309 = vmatpush.bf16.msrb.mxu1 %v4532_v51  ;;  %1335 = vmatpush.bf16.msra.mxu3 %v4535_v58  ;;  %v953_v58 = vpop.f32.mrf.mxu1 }
  0xfe   :  { %1100 = vmatpush.bf16.msrb.mxu0 %v4377_v35  ;;  %1126 = vmatpush.bf16.msra.mxu2 %v4418_v18 }
  0xff   :  { %1310 = vmatpush.bf16.msrb.mxu1 %v4544_v42  ;;  %1336 = vmatpush.bf16.msra.mxu3 %v4547_v44  ;;  %v6210_v44 = vld [vmem:[#allocation87_spill] sm:$0xff]  ;;  %v6211_v42 = vld [vmem:[#allocation88_spill] sm:$0xff] }
 0x102   :  { %1101 = vmatpush.bf16.msrb.mxu0 %v4388_v52  ;;  %1127 = vmatpush.bf16.msra.mxu2 %v6179_v30 }
 0x103   :  { %1311 = vmatpush.bf16.msrb.mxu1 %v6180_v21  ;;  %1337 = vmatpush.bf16.msra.mxu3 %v6181_v11  ;;  %v6205_v11 = vld [vmem:[#allocation72_spill] sm:$0xff]  ;;  %v6209_v21 = vld [vmem:[#allocation82_spill] sm:$0xff] }
 0x104   :  { %991 = vmatmul.bf16.vlgmr.msra.gmra.mxu0 %v600_v60  ;;  %1017 = vmatmul.bf16.vlgmr.msrb.gmra.mxu2 %v600_v60 }
 0x106   :  { %1102 = vmatpush.bf16.msrb.mxu0 %v6182_v41  ;;  %1128 = vmatpush.bf16.msra.mxu2 %v6183_v13 }
 0x107   :  { %1312 = vmatpush.bf16.msrb.mxu1 %v6184_v43  ;;  %1338 = vmatpush.bf16.msra.mxu3 %v6185_v0  ;;  %v6203_v0 = vld [vmem:[#allocation68_spill] sm:$0xff]  ;;  %v6204_v43 = vld [vmem:[#allocation71_spill] sm:$0xff] }
 0x10a   :  { %1103 = vmatpush.bf16.msrb.mxu0 %v6186_v48  ;;  %1129 = vmatpush.bf16.msra.mxu2 %v6187_v1 }
 0x10b   :  { %1313 = vmatpush.bf16.msrb.mxu1 %v6188_v14  ;;  %1339 = vmatpush.bf16.msra.mxu3 %v6189_v27  ;;  %v6199_v27 = vld [vmem:[#allocation60_spill] sm:$0xff]  ;;  %v6202_v14 = vld [vmem:[#allocation67_spill] sm:$0xff] }
 0x10e   :  { %1104 = vmatpush.bf16.msrb.mxu0 %v6190_v31  ;;  %1130 = vmatpush.bf16.msra.mxu2 %v6191_v16 }
 0x10f   :  { %1314 = vmatpush.bf16.msrb.mxu1 %v6192_v9  ;;  %1340 = vmatpush.bf16.msra.mxu3 %v6193_v25  ;;  %v6200_v9 = vld [vmem:[#allocation63_spill] sm:$0xff]  ;;  %v6201_v25 = vld [vmem:[#allocation64_spill] sm:$0xff] }
 0x112   :  { %1105 = vmatpush.bf16.msrb.mxu0 %v6194_v63  ;;  %1131 = vmatpush.bf16.msra.mxu2 %v6195_v28 }
 0x113   :  { %1315 = vmatpush.bf16.msrb.mxu1 %v4617_v55  ;;  %1341 = vmatpush.bf16.msra.mxu3 %v4621_v29  ;;  %v6206_v55 = vld [vmem:[#allocation76_spill] sm:$0xff]  ;;  %v6207_v29 = vld [vmem:[#allocation77_spill] sm:$0xff] }
 0x115   :  { %1106 = vmatmul.bf16.vlgmr.msrb.gmra.mxu0 %v600_v60  ;;  %1132 = vmatmul.bf16.vlgmr.msra.gmra.mxu2 %v600_v60  ;;  %v6208_v60 = vld [vmem:[#allocation81_spill] sm:$0xff] }
 0x116   :  { %1243 = vmatpush.bf16.msra.mxu0 %v6196_v39  ;;  %1269 = vmatpush.bf16.msrb.mxu2 %v6197_v40 }
 0x11a   :  { %1244 = vmatpush.bf16.msra.mxu0 %v6198_v46  ;;  %1270 = vmatpush.bf16.msrb.mxu2 %v6199_v27 }
 0x11e   :  { %1245 = vmatpush.bf16.msra.mxu0 %v6200_v9  ;;  %1271 = vmatpush.bf16.msrb.mxu2 %v6201_v25 }
 0x122   :  { %1246 = vmatpush.bf16.msra.mxu0 %v6202_v14  ;;  %1272 = vmatpush.bf16.msrb.mxu2 %v6203_v0 }
 0x126   :  { %1247 = vmatpush.bf16.msra.mxu0 %v6204_v43  ;;  %1273 = vmatpush.bf16.msrb.mxu2 %v6205_v11  ;;  %v6217_v43 = vld [vmem:[#allocation98_spill] sm:$0xff] }
 0x12a   :  { %1248 = vmatpush.bf16.msra.mxu0 %v6206_v55  ;;  %1274 = vmatpush.bf16.msrb.mxu2 %v6207_v29  ;;  %v955_v29 = vpop.f32.mrf.mxu1 }
 0x12e   :  { %1249 = vmatpush.bf16.msra.mxu0 %v6208_v60  ;;  %1275 = vmatpush.bf16.msrb.mxu2 %v6209_v21  ;;  %v979_v60 = vpop.f32.mrf.mxu3 }
 0x132   :  { %1250 = vmatpush.bf16.msra.mxu0 %v4627_v62  ;;  %1276 = vmatpush.bf16.msrb.mxu2 %v4631_v17  ;;  %v6213_v62 = vld [vmem:[#allocation103_spill] sm:$0xff] }
 0x136   :  { %1295 = vmatpush.bf16.msrb.mxu0 %v6210_v44  ;;  %1321 = vmatpush.bf16.msra.mxu2 %v6211_v42  ;;  %v6212_v44 = vld [vmem:[#allocation102_spill] sm:$0xff]  ;;  %v981_v42 = vpop.f32.mrf.mxu3 }
 0x137   :  { %v320_v42 = vld [vmem:[%s5866_s5] sm:$0xf] }
 0x138   :  { %v1005_v17 = vpop.f32.mrf.mxu1 }
 0x13a   :  { %1296 = vmatpush.bf16.msrb.mxu0 %v4651_v53  ;;  %1322 = vmatpush.bf16.msra.mxu2 %v4656_v26  ;;  %v6214_v53 = vld [vmem:[#allocation104_spill] sm:$0xff] }
 0x13e   :  { %1297 = vmatpush.bf16.msrb.mxu0 %v4663_v19  ;;  %1323 = vmatpush.bf16.msra.mxu2 %v4667_v32  ;;  %v1031_v32 = vpop.f32.mrf.mxu3 }
 0x140   :  { %v1007_v29 = vpop.f32.mrf.mxu1 }
 0x142   :  { %1298 = vmatpush.bf16.msrb.mxu0 %v4675_v49  ;;  %1324 = vmatpush.bf16.msra.mxu2 %v4683_v4  ;;  %v4845_v49 = vperm.slane %v320_v42, 1 }
 0x144   :  { %6216 = vst [vmem:[#allocation20_spill] sm:$0xff] %v4845_v49 }
 0x146   :  { %1299 = vmatpush.bf16.msrb.mxu0 %v4699_v20  ;;  %1325 = vmatpush.bf16.msra.mxu2 %v6212_v44  ;;  %v1033_v4 = vpop.f32.mrf.mxu3  ;;  %v4842_v44 = vperm.slane %v320_v42, 0 }
 0x148   :  { %6215 = vst [vmem:[#allocation27_spill] sm:$0xff] %v4842_v44 }
 0x14a   :  { %1300 = vmatpush.bf16.msrb.mxu0 %v6213_v62  ;;  %1326 = vmatpush.bf16.msra.mxu2 %v6214_v53 }
 0x14e   :  { %1301 = vmatpush.bf16.msrb.mxu0 %v4720_v45  ;;  %1327 = vmatpush.bf16.msra.mxu2 %v4723_v23 }
 0x152   :  { %1302 = vmatpush.bf16.msrb.mxu0 %v4739_v61  ;;  %1328 = vmatpush.bf16.msra.mxu2 %v4743_v33 }
 0x171   :  { %v940_v62 = vpop.f32.mrf.mxu0 }
 0x172   :  { %v941_v53 = vadd.f32 %v940_v62, %v4842_v44  ;;  %v1120_v20 = vpop.f32.mrf.mxu1 }
 0x173   :  { %v1155_v19 = vrot.slane %v1120_v20, 6 }
 0x174   :  { %v954_v45 = vadd.f32 %v953_v58, %v941_v53  ;;  %v4849_v58 = vperm.slane %v320_v42, 2 }
 0x175   :  { %v1163_v51 = vadd.f32 %v1155_v19, %v6217_v43  ;;  %v6220_v43 = vld [vmem:[#allocation100_spill] sm:$0xff] }
 0x176   :  { %v3745_v23 = vmul.f32 -1.442695, %v954_v45  ;;  %6218 = vst [vmem:[#allocation31_spill] sm:$0xff] %v4849_v58 }
 0x177   :  { %v966_v29 = vpop.f32.mrf.mxu2 }
 0x178   :  { %3922 = vpow2.f32 %v3745_v23  ;;  %v967_v61 = vadd.f32 %v966_v29, %v4845_v49  ;;  %v1146_v33 = vpop.f32.mrf.mxu3  ;;  %v3749_v23 = vmul.f32 -1.442695, %v1163_v51 }
 0x179   :  { %v942_v4 = vpop.f32.mrf.mxu0 }
 0x17a   :  { %v980_v26 = vadd.f32 %v979_v60, %v967_v61  ;;  %v1122_v21 = vpop.f32.mrf.mxu1  ;;  %v4852_v61 = vperm.slane %v320_v42, 3 }
 0x17b   :  { %v1157_v21 = vrot.slane %v1146_v33, 6 }
 0x17c   :  { %v3746_v55 = vmul.f32 -1.442695, %v980_v26  ;;  %6219 = vst [vmem:[#allocation23_spill] sm:$0xff] %v4852_v61 }
 0x17e   :  { %v3923_v11 = vpop.eup %3922  ;;  %3924 = vpow2.f32 %v3746_v55 }
 0x17f   :  { %v1038_v62 = vadd.f32 1.0, %v3923_v11  ;;  %v968_v44 = vpop.f32.mrf.mxu2 }
 0x180   :  { %v1148_v53 = vpop.f32.mrf.mxu3 }
 0x181   :  { %3926 = vrcp.f32 %v1038_v62  ;;  %v992_v45 = vpop.f32.mrf.mxu0  ;;  %v1050_v60 = vand.u32 2147483648, %v1038_v62  ;;  %vm1044_vm15 = vweird.f32 %v1038_v62 }
 0x182   :  { %v993_v29 = vadd.f32 %v992_v45, %v4849_v58  ;;  %3928 = vpow2.f32 %v3749_v23  ;;  %v1165_v45 = vadd.f32 %v1157_v21, %v6220_v43 }
 0x183   :  { %v1051_v33 = vor.u32 1.1754944e-38, %v1050_v60 }
 0x184   :  { %v3925_v49 = vpop.eup %3924  ;;  %v1006_v26 = vadd.f32 %v1005_v17, %v993_v29  ;;  %v3750_v14 = vmul.f32 -1.442695, %v1165_v45 }
 0x185   :  { %v1057_v4 = vadd.f32 1.0, %v3925_v49  ;;  %v1048_v49 = vand.u32 2147483647, %v1038_v62 }
 0x187   :  { %v3927_v20 = vpop.eup %3926  ;;  %3930 = vrcp.f32 %v1057_v4  ;;  %v1018_v19 = vpop.f32.mrf.mxu2  ;;  %vm1049_vm1 = vcmp.eq.f32.partialorder %v1048_v49, 8.507059e+37  ;;  %v1069_v21 = vand.u32 2147483648, %v1057_v4  ;;  %vm1063_vm3 = vweird.f32 %v1057_v4 }
 0x188   :  { %v1040_v55 = vmul.f32 %v3927_v20, %v1038_v62  ;;  %3932 = vtanh.f32 %v1006_v26  ;;  %v1019_v53 = vadd.f32 %v1018_v19, %v4852_v61  ;;  %v3929_v51 = vpop.eup %3928  ;;  %vm1045_vm14 = vweird.f32 %v3927_v20 }
 0x189   :  { %v994_v44 = vpop.f32.mrf.mxu0  ;;  %v4856_v29 = vadd.f32 1.0, %v3929_v51  ;;  %vm1046_vm0 = vmor %vm1044_vm15, %vm1045_vm14  ;;  %v1070_v60 = vor.u32 1.1754944e-38, %v1069_v21  ;;  %v6221_v51 = vld [vmem:[#allocation89_spill] sm:$0xff] }
 0x18a   :  { %v1041_v11 = vsub.f32 1.0, %v1040_v55  ;;  %v1032_v0 = vadd.f32 %v1031_v32, %v1019_v53  ;;  %v1067_v32 = vand.u32 2147483647, %v1057_v4 }
 0x18b   :  { %vm1194_vm11 = vweird.f32 %v4856_v29 }
 0x18c   :  { %v1042_v58 = vmul.f32 %v3927_v20, %v1041_v11  ;;  %v3747_v55 = vmul.f32 -1.442695, %v1032_v0  ;;  %vm1068_vm5 = vcmp.eq.f32.partialorder %v1067_v32, 8.507059e+37 }
 0x18d   :  { %v3931_v23 = vpop.eup %3930 }
 0x18e   :  { %v1059_v17 = vmul.f32 %v3931_v23, %v1057_v4  ;;  %v1043_v42 = vadd.f32 %v3927_v20, %v1042_v58  ;;  %v3933_v61 = vpop.eup %3932  ;;  %3934 = vpow2.f32 %v3747_v55  ;;  %vm1064_vm2 = vweird.f32 %v3931_v23 }
 0x18f   :  { %v1020_v44 = vpop.f32.mrf.mxu2  ;;  %3936 = vrcp.f32 %v4856_v29  ;;  %vm1065_vm4 = vmor %vm1063_vm3, %vm1064_vm2 }
 0x190   :  { %v1060_v26 = vsub.f32 1.0, %v1059_v17  ;;  %v1047_v19 = vsel %vm1046_vm0, %v3927_v20, %v1043_v42  ;;  %3938 = vpow2.f32 %v3750_v14 }
 0x191   :  { %v1052_v11 = vsel %vm1049_vm1, %v1051_v33, %v1047_v19 }
 0x192   :  { %v1061_v43 = vmul.f32 %v3931_v23, %v1060_v26  ;;  %v1094_v53 = vmul.f32 %v3933_v61, %v1052_v11  ;;  %v1107_v58 = vpop.f32.mrf.mxu0 }
 0x193   :  { %v1154_v62 = vrot.slane %v1107_v58, 6 }
 0x194   :  { %v1062_v0 = vadd.f32 %v3931_v23, %v1061_v43  ;;  %v3935_v49 = vpop.eup %3934 }
 0x195   :  { %v1162_v20 = vadd.f32 %v1154_v62, %v6221_v51  ;;  %v1077_v55 = vadd.f32 1.0, %v3935_v49  ;;  %v3937_v61 = vpop.eup %3936 }
 0x196   :  { %v1066_v45 = vsel %vm1065_vm4, %v3931_v23, %v1062_v0  ;;  %v3939_v26 = vpop.eup %3938  ;;  %v1190_v43 = vmul.f32 %v3937_v61, %v4856_v29  ;;  %vm1195_vm8 = vweird.f32 %v3937_v61 }
 0x197   :  { %v1071_v17 = vsel %vm1068_vm5, %v1070_v60, %v1066_v45  ;;  %v3748_v42 = vmul.f32 -1.442695, %v1162_v20  ;;  %v4863_v4 = vadd.f32 1.0, %v3939_v26  ;;  %v1089_v20 = vand.u32 2147483648, %v1077_v55  ;;  %vm4874_vm12 = vmor %vm1194_vm11, %vm1195_vm8 }
 0x198   :  { %v1093_v33 = vmul.f32 0.0, %v1071_v17  ;;  %v1133_v44 = vpop.f32.mrf.mxu2  ;;  %v1191_v11 = vsub.f32 1.0, %v1190_v43  ;;  %v1087_v49 = vand.u32 2147483647, %v1077_v55  ;;  %vm1083_vm7 = vweird.f32 %v1077_v55 }
 0x199   :  { %3940 = vpow2.f32 %v3748_v42  ;;  %v1090_v43 = vor.u32 1.1754944e-38, %v1089_v20  ;;  %vm1214_vm3 = vweird.f32 %v4863_v4 }
 0x19a   :  { %v4860_v19 = vadd.f32 %v1094_v53, %v1093_v33  ;;  %3942 = vrcp.f32 %v1077_v55  ;;  %v1109_v14 = vpop.f32.mrf.mxu0  ;;  %v1192_v60 = vmul.f32 %v3937_v61, %v1191_v11  ;;  %v1156_v53 = vrot.slane %v1133_v44, 6 }
 0x19b   :  { %3944 = vrcp.f32 %v4863_v4  ;;  %vm1088_vm10 = vcmp.eq.f32.partialorder %v1087_v49, 8.507059e+37  ;;  %v1200_v44 = vand.u32 2147483648, %v4856_v29 }
 0x19c   :  { %6222 = vst [vmem:[#allocation110_spill] sm:$0xff] %v4860_v19  ;;  %v1164_v26 = vadd.f32 %v1156_v53, %v4737_v38  ;;  %v1193_v14 = vadd.f32 %v3937_v61, %v1192_v60  ;;  %v1198_v60 = vand.u32 2147483647, %v4856_v29  ;;  %v1225_v29 = vrot.slane %v4763_v34, 6 }
 0x19d   :  { %v1220_v34 = vand.u32 2147483648, %v4863_v4 }
 0x19e   :  { %vm1199_vm15 = vcmp.eq.f32.partialorder %v1198_v60, 8.507059e+37 }
 0x19f   :  { %v3941_v21 = vpop.eup %3940  ;;  %v1221_v60 = vor.u32 1.1754944e-38, %v1220_v34  ;;  %v6243_v34 = vld [vmem:[#allocation40_spill] sm:$0xff] }
 0x1a0   :  { %v3943_v23 = vpop.eup %3942  ;;  %v1169_v32 = vadd.f32 1.0, %v3941_v21  ;;  %v1135_v58 = vpop.f32.mrf.mxu2 }
 0x1a1   :  { %v1079_v62 = vmul.f32 %v3943_v23, %v1077_v55  ;;  %vm1084_vm6 = vweird.f32 %v3943_v23  ;;  %v4867_v17 = vpop.eup %3944 }
 0x1a2   :  { %3946 = vrcp.f32 %v1169_v32  ;;  %vm1085_vm9 = vmor %vm1083_vm7, %vm1084_vm6  ;;  %vm1175_vm14 = vweird.f32 %v1169_v32  ;;  %vm1215_vm2 = vweird.f32 %v4867_v17 }
 0x1a3   :  { %v1080_v0 = vsub.f32 1.0, %v1079_v62  ;;  %3948 = vtanh.f32 %v4860_v19  ;;  %v1210_v62 = vmul.f32 %v4867_v17, %v4863_v4  ;;  %v1201_v19 = vor.u32 1.1754944e-38, %v1200_v44  ;;  %v6225_v44 = vld [vmem:[#allocation17_spill] sm:$0xff]  ;;  %vm1216_vm4 = vmor %vm1214_vm3, %vm1215_vm2 }
 0x1a4   :  { %3950 = vtanh.f32 %v1164_v26 }
 0x1a5   :  { %v1081_v45 = vmul.f32 %v3943_v23, %v1080_v0  ;;  %v1211_v51 = vsub.f32 1.0, %v1210_v62 }
 0x1a7   :  { %v1082_v42 = vadd.f32 %v3943_v23, %v1081_v45  ;;  %v1181_v45 = vand.u32 2147483648, %v1169_v32  ;;  %v1212_v26 = vmul.f32 %v4867_v17, %v1211_v51  ;;  %v6227_v51 = vld [vmem:[#allocation19_spill] sm:$0xff] }
 0x1a8   :  { %v3947_v33 = vpop.eup %3946 }
 0x1a9   :  { %v1171_v21 = vmul.f32 %v3947_v33, %v1169_v32  ;;  %v1086_v11 = vsel %vm1085_vm9, %v3943_v23, %v1082_v42  ;;  %v3949_v58 = vpop.eup %3948  ;;  %v1197_v23 = vsel %vm4874_vm12, %v3937_v61, %v1193_v14  ;;  %vm1176_vm13 = vweird.f32 %v3947_v33 }
 0x1aa   :  { %v1091_v0 = vsel %vm1088_vm10, %v1090_v43, %v1086_v11  ;;  %v1179_v42 = vand.u32 2147483647, %v1169_v32  ;;  %vm1177_vm0 = vmor %vm1175_vm14, %vm1176_vm13  ;;  %v1202_v10 = vsel %vm1199_vm15, %v1201_v19, %v1197_v23  ;;  %v3951_v61 = vpop.eup %3950  ;;  %v6226_v32 = vld [vmem:[#allocation15_spill] sm:$0xff]  ;;  %v1213_v19 = vadd.f32 %v4867_v17, %v1212_v26  ;;  %v6238_v26 = vld [vmem:[#allocation38_spill] sm:$0xff] }
 0x1ab   :  { %v1172_v53 = vsub.f32 1.0, %v1171_v21  ;;  %v1097_v20 = vmul.f32 %v3949_v58, %v1091_v0  ;;  %v1182_v21 = vor.u32 1.1754944e-38, %v1181_v45  ;;  %v1227_v55 = vmul.f32 %v1225_v29, %v1202_v10  ;;  %v6230_v45 = vld [vmem:[#allocation18_spill] sm:$0xff]  ;;  %v6233_v29 = vld [vmem:[#allocation29_spill] sm:$0xff] }
 0x1ac   :  { %vm1180_vm1 = vcmp.eq.f32.partialorder %v1179_v42, 8.507059e+37  ;;  %v1218_v10 = vand.u32 2147483647, %v4863_v4  ;;  %v1217_v62 = vsel %vm1216_vm4, %v4867_v17, %v1213_v19  ;;  %v6232_v4 = vld [vmem:[#allocation21_spill] sm:$0xff]  ;;  %v6234_v17 = vld [vmem:[#allocation24_spill] sm:$0xff]  ;;  %v6242_v19 = vld [vmem:[#allocation42_spill] sm:$0xff] }
 0x1ad   :  { %v1173_v49 = vmul.f32 %v3947_v33, %v1172_v53  ;;  %v1233_v38 = vrot.slane %v1097_v20, 6  ;;  %v6229_v20 = vld [vmem:[#allocation22_spill] sm:$0xff] }
 0x1ae   :  { %vm1219_vm5 = vcmp.eq.f32.partialorder %v1218_v10, 8.507059e+37  ;;  %v6244_v10 = vld [vmem:[#allocation54_spill] sm:$0xff] }
 0x1af   :  { %v1174_v43 = vadd.f32 %v3947_v33, %v1173_v49  ;;  %v1236_v11 = vpack.c.bf16 %v1233_v38, %v1233_v38  ;;  %v1222_v49 = vsel %vm1219_vm5, %v1221_v60, %v1217_v62  ;;  %v6245_v62 = vld [vmem:[#allocation67_spill] sm:$0xff]  ;;  %v6246_v60 = vld [vmem:[#allocation68_spill] sm:$0xff] }
 0x1b1   :  { %v1178_v58 = vsel %vm1177_vm0, %v3947_v33, %v1174_v43  ;;  %v1240_v0 = vrot.slane %v1236_v11, 1  ;;  %v6228_v33 = vld [vmem:[#allocation16_spill] sm:$0xff]  ;;  %v6231_v11 = vld [vmem:[#allocation25_spill] sm:$0xff] }
 0x1b2   :  { %v1183_v14 = vsel %vm1180_vm1, %v1182_v21, %v1178_v58  ;;  %v6235_v58 = vld [vmem:[#allocation32_spill] sm:$0xff] }
 0x1b3   :  { %v1228_v53 = vmul.f32 %v3951_v61, %v1183_v14  ;;  %1264 = vmatmul.bf16.vlgmr.msra.gmra.mxu1 %v1240_v0  ;;  %1290 = vmatmul.bf16.vlgmr.msrb.gmra.mxu3 %v1240_v0  ;;  %v6236_v61 = vld [vmem:[#allocation28_spill] sm:$0xff]  ;;  %v6239_v14 = vld [vmem:[#allocation35_spill] sm:$0xff] }
 0x1b4   :  { %1423 = vmatpush.bf16.msra.mxu1 %v6225_v44  ;;  %1449 = vmatpush.bf16.msrb.mxu3 %v6226_v32 }
 0x1b5   :  { %v4885_v38 = vadd.f32 %v1228_v53, %v1227_v55  ;;  %v6240_v55 = vld [vmem:[#allocation41_spill] sm:$0xff] }
 0x1b6   :  { %v6241_v53 = vld [vmem:[#allocation37_spill] sm:$0xff] }
 0x1b7   :  { %3952 = vtanh.f32 %v4885_v38 }
 0x1b8   :  { %1424 = vmatpush.bf16.msra.mxu1 %v6227_v51  ;;  %1450 = vmatpush.bf16.msrb.mxu3 %v6228_v33 }
 0x1bc   :  { %1425 = vmatpush.bf16.msra.mxu1 %v6229_v20  ;;  %1451 = vmatpush.bf16.msrb.mxu3 %v6230_v45 }
 0x1bd   :  { %v3953_v23 = vpop.eup %3952 }
 0x1be   :  { %v1231_v42 = vmul.f32 %v3953_v23, %v1222_v49  ;;  %v6247_v23 = vld [vmem:[#allocation57_spill] sm:$0xff]  ;;  %v6248_v49 = vld [vmem:[#allocation58_spill] sm:$0xff] }
 0x1c0   :  { %v1235_v43 = vpack.c.bf16 %v1231_v42, %v1231_v42  ;;  %1426 = vmatpush.bf16.msra.mxu1 %v6231_v11  ;;  %1452 = vmatpush.bf16.msrb.mxu3 %v6232_v4  ;;  %v6249_v42 = vld [vmem:[#allocation71_spill] sm:$0xff] }
 0x1c2   :  { %v1239_v21 = vrot.slane %v1235_v43, 1  ;;  %v6250_v43 = vld [vmem:[#allocation72_spill] sm:$0xff] }
 0x1c3   :  { %1316 = vmatmul.bf16.vlgmr.msrb.gmra.mxu1 %v1240_v0  ;;  %1342 = vmatmul.bf16.vlgmr.msra.gmra.mxu3 %v1240_v0  ;;  %v6237_v0 = vld [vmem:[#allocation34_spill] sm:$0xff] }
 0x1c4   :  { %1427 = vmatpush.bf16.msra.mxu1 %v6233_v29  ;;  %1453 = vmatpush.bf16.msrb.mxu3 %v6234_v17 }
 0x1c5   :  { %1251 = vmatmul.bf16.vlgmr.msra.gmra.mxu0 %v1239_v21  ;;  %1277 = vmatmul.bf16.vlgmr.msrb.gmra.mxu2 %v1239_v21 }
 0x1c6   :  { %1410 = vmatpush.bf16.msra.mxu0 %v4358_v3  ;;  %1436 = vmatpush.bf16.msrb.mxu2 %v4392_v56 }
 0x1c8   :  { %1428 = vmatpush.bf16.msra.mxu1 %v6235_v58  ;;  %1454 = vmatpush.bf16.msrb.mxu3 %v6236_v61 }
 0x1ca   :  { %1411 = vmatpush.bf16.msra.mxu0 %v4361_v12  ;;  %1437 = vmatpush.bf16.msrb.mxu2 %v4404_v5 }
 0x1cc   :  { %1429 = vmatpush.bf16.msra.mxu1 %v4460_v7  ;;  %1455 = vmatpush.bf16.msrb.mxu3 %v4447_v50 }
 0x1ce   :  { %1412 = vmatpush.bf16.msra.mxu0 %v4377_v35  ;;  %1438 = vmatpush.bf16.msrb.mxu2 %v4418_v18 }
 0x1d0   :  { %1430 = vmatpush.bf16.msra.mxu1 %v4469_v24  ;;  %1456 = vmatpush.bf16.msrb.mxu3 %v6237_v0 }
 0x1d2   :  { %1413 = vmatpush.bf16.msra.mxu0 %v4388_v52  ;;  %1439 = vmatpush.bf16.msrb.mxu2 %v6179_v30 }
 0x1d3   :  { %1431 = vmatmul.bf16.vlgmr.msra.gmra.mxu1 %v1239_v21  ;;  %1457 = vmatmul.bf16.vlgmr.msrb.gmra.mxu3 %v1239_v21 }
 0x1d4   :  { %1568 = vmatpush.bf16.msrb.mxu1 %v6238_v26  ;;  %1594 = vmatpush.bf16.msra.mxu3 %v6239_v14 }
 0x1d5   :  { %1303 = vmatmul.bf16.vlgmr.msrb.gmra.mxu0 %v1239_v21  ;;  %1329 = vmatmul.bf16.vlgmr.msra.gmra.mxu2 %v1239_v21 }
 0x1d6   :  { %1414 = vmatpush.bf16.msra.mxu0 %v6182_v41  ;;  %1440 = vmatpush.bf16.msrb.mxu2 %v6183_v13 }
 0x1d8   :  { %1569 = vmatpush.bf16.msrb.mxu1 %v6240_v55  ;;  %1595 = vmatpush.bf16.msra.mxu3 %v6241_v53 }
 0x1da   :  { %1415 = vmatpush.bf16.msra.mxu0 %v6186_v48  ;;  %1441 = vmatpush.bf16.msrb.mxu2 %v6187_v1 }
 0x1dc   :  { %1570 = vmatpush.bf16.msrb.mxu1 %v6242_v19  ;;  %1596 = vmatpush.bf16.msra.mxu3 %v6243_v34 }
 0x1de   :  { %1416 = vmatpush.bf16.msra.mxu0 %v6190_v31  ;;  %1442 = vmatpush.bf16.msrb.mxu2 %v6191_v16 }
 0x1e0   :  { %1571 = vmatpush.bf16.msrb.mxu1 %v4492_v54  ;;  %1597 = vmatpush.bf16.msra.mxu3 %v4494_v59 }
 0x1e2   :  { %1417 = vmatpush.bf16.msra.mxu0 %v6194_v63  ;;  %1443 = vmatpush.bf16.msrb.mxu2 %v6195_v28 }
 0x1e4   :  { %1572 = vmatpush.bf16.msrb.mxu1 %v4497_v2  ;;  %1598 = vmatpush.bf16.msra.mxu3 %v4500_v6 }
 0x1e5   :  { %1418 = vmatmul.bf16.vlgmr.msra.gmra.mxu0 %v1239_v21  ;;  %1444 = vmatmul.bf16.vlgmr.msrb.gmra.mxu2 %v1239_v21  ;;  %v6251_v21 = vld [vmem:[#allocation61_spill] sm:$0xff] }
 0x1e6   :  { %1555 = vmatpush.bf16.msrb.mxu0 %v6196_v39  ;;  %1581 = vmatpush.bf16.msra.mxu2 %v6197_v40 }
 0x1e8   :  { %1573 = vmatpush.bf16.msrb.mxu1 %v4504_v15  ;;  %1599 = vmatpush.bf16.msra.mxu3 %v4506_v22 }
 0x1ea   :  { %1556 = vmatpush.bf16.msrb.mxu0 %v6198_v46  ;;  %1582 = vmatpush.bf16.msra.mxu2 %v6199_v27 }
 0x1ec   :  { %1574 = vmatpush.bf16.msrb.mxu1 %v4509_v36  ;;  %1600 = vmatpush.bf16.msra.mxu3 %v4512_v37  ;;  %v6285_v37 = vld [vmem:[#allocation27_spill] sm:$0xff] }
 0x1ee   :  { %1557 = vmatpush.bf16.msrb.mxu0 %v6200_v9  ;;  %1583 = vmatpush.bf16.msra.mxu2 %v6201_v25 }
 0x1f0   :  { %1575 = vmatpush.bf16.msrb.mxu1 %v4516_v47  ;;  %1601 = vmatpush.bf16.msra.mxu3 %v4518_v57  ;;  %v6252_v47 = vld [vmem:[#allocation62_spill] sm:$0xff]  ;;  %v6253_v57 = vld [vmem:[#allocation76_spill] sm:$0xff] }
 0x1f2   :  { %1558 = vmatpush.bf16.msrb.mxu0 %v6245_v62  ;;  %1584 = vmatpush.bf16.msra.mxu2 %v6246_v60  ;;  %v6256_v62 = vld [vmem:[#allocation66_spill] sm:$0xff]  ;;  %v6257_v60 = vld [vmem:[#allocation81_spill] sm:$0xff] }
 0x1f4   :  { %1620 = vmatpush.bf16.msra.mxu1 %v4521_v8  ;;  %1646 = vmatpush.bf16.msrb.mxu3 %v6244_v10  ;;  %v6254_v8 = vld [vmem:[#allocation77_spill] sm:$0xff] }
 0x1f5   :  { %v6255_v10 = vld [vmem:[#allocation65_spill] sm:$0xff] }
 0x1f6   :  { %1559 = vmatpush.bf16.msrb.mxu0 %v6249_v42  ;;  %1585 = vmatpush.bf16.msra.mxu2 %v6250_v43  ;;  %v6260_v42 = vld [vmem:[#allocation70_spill] sm:$0xff]  ;;  %v6261_v43 = vld [vmem:[#allocation85_spill] sm:$0xff] }
 0x1f8   :  { %1621 = vmatpush.bf16.msra.mxu1 %v6247_v23  ;;  %1647 = vmatpush.bf16.msrb.mxu3 %v6248_v49  ;;  %v6258_v23 = vld [vmem:[#allocation82_spill] sm:$0xff]  ;;  %v6259_v49 = vld [vmem:[#allocation69_spill] sm:$0xff] }
 0x1fa   :  { %1560 = vmatpush.bf16.msrb.mxu0 %v6253_v57  ;;  %1586 = vmatpush.bf16.msra.mxu2 %v6254_v8  ;;  %v6264_v57 = vld [vmem:[#allocation88_spill] sm:$0xff]  ;;  %v6265_v8 = vld [vmem:[#allocation73_spill] sm:$0xff] }
 0x1fc   :  { %1622 = vmatpush.bf16.msra.mxu1 %v6251_v21  ;;  %1648 = vmatpush.bf16.msrb.mxu3 %v6252_v47  ;;  %v6262_v21 = vld [vmem:[#allocation86_spill] sm:$0xff]  ;;  %v6263_v47 = vld [vmem:[#allocation87_spill] sm:$0xff] }
 0x1fe   :  { %1561 = vmatpush.bf16.msrb.mxu0 %v6257_v60  ;;  %1587 = vmatpush.bf16.msra.mxu2 %v6258_v23  ;;  %v6268_v60 = vld [vmem:[#allocation92_spill] sm:$0xff]  ;;  %v6269_v23 = vld [vmem:[#allocation78_spill] sm:$0xff] }
 0x200   :  { %1623 = vmatpush.bf16.msra.mxu1 %v6255_v10  ;;  %1649 = vmatpush.bf16.msrb.mxu3 %v6256_v62  ;;  %v6266_v10 = vld [vmem:[#allocation75_spill] sm:$0xff]  ;;  %v6267_v62 = vld [vmem:[#allocation90_spill] sm:$0xff] }
 0x202   :  { %1562 = vmatpush.bf16.msrb.mxu0 %v6261_v43  ;;  %1588 = vmatpush.bf16.msra.mxu2 %v6262_v21  ;;  %v6272_v43 = vld [vmem:[#allocation95_spill] sm:$0xff] }
 0x203   :  { %v6273_v21 = vld [vmem:[#allocation83_spill] sm:$0xff] }
 0x204   :  { %1624 = vmatpush.bf16.msra.mxu1 %v6259_v49  ;;  %1650 = vmatpush.bf16.msrb.mxu3 %v6260_v42  ;;  %v6270_v49 = vld [vmem:[#allocation80_spill] sm:$0xff]  ;;  %v6271_v42 = vld [vmem:[#allocation94_spill] sm:$0xff] }
 0x206   :  { %1607 = vmatpush.bf16.msra.mxu0 %v6263_v47  ;;  %1633 = vmatpush.bf16.msrb.mxu2 %v6264_v57  ;;  %v6274_v47 = vld [vmem:[#allocation84_spill] sm:$0xff]  ;;  %v6275_v57 = vld [vmem:[#allocation97_spill] sm:$0xff] }
 0x208   :  { %1625 = vmatpush.bf16.msra.mxu1 %v6265_v8  ;;  %1651 = vmatpush.bf16.msrb.mxu3 %v6266_v10  ;;  %v6276_v8 = vld [vmem:[#allocation99_spill] sm:$0xff]  ;;  %v6277_v10 = vld [vmem:[#allocation101_spill] sm:$0xff] }
 0x20a   :  { %1608 = vmatpush.bf16.msra.mxu0 %v6267_v62  ;;  %1634 = vmatpush.bf16.msrb.mxu2 %v6268_v60  ;;  %v6278_v62 = vld [vmem:[#allocation102_spill] sm:$0xff]  ;;  %v6279_v60 = vld [vmem:[#allocation103_spill] sm:$0xff] }
 0x20c   :  { %1626 = vmatpush.bf16.msra.mxu1 %v6269_v23  ;;  %1652 = vmatpush.bf16.msrb.mxu3 %v6270_v49  ;;  %v6280_v23 = vld [vmem:[#allocation104_spill] sm:$0xff]  ;;  %v6281_v49 = vld [vmem:[#allocation105_spill] sm:$0xff] }
 0x20e   :  { %1609 = vmatpush.bf16.msra.mxu0 %v6271_v42  ;;  %1635 = vmatpush.bf16.msrb.mxu2 %v6272_v43  ;;  %v6282_v42 = vld [vmem:[#allocation106_spill] sm:$0xff]  ;;  %v6283_v43 = vld [vmem:[#allocation108_spill] sm:$0xff] }
 0x210   :  { %1627 = vmatpush.bf16.msra.mxu1 %v6273_v21  ;;  %1653 = vmatpush.bf16.msrb.mxu3 %v6274_v47  ;;  %v6284_v21 = vld [vmem:[#allocation109_spill] sm:$0xff] }
 0x212   :  { %1610 = vmatpush.bf16.msra.mxu0 %v6275_v57  ;;  %1636 = vmatpush.bf16.msrb.mxu2 %v6276_v8 }
 0x216   :  { %1611 = vmatpush.bf16.msra.mxu0 %v6277_v10  ;;  %1637 = vmatpush.bf16.msrb.mxu2 %v6278_v62 }
 0x21a   :  { %1612 = vmatpush.bf16.msra.mxu0 %v6279_v60  ;;  %1638 = vmatpush.bf16.msrb.mxu2 %v6280_v23 }
 0x21e   :  { %1613 = vmatpush.bf16.msra.mxu0 %v6281_v49  ;;  %1639 = vmatpush.bf16.msrb.mxu2 %v6282_v42  ;;  %v6286_v49 = vld [vmem:[#allocation20_spill] sm:$0xff] }
 0x222   :  { %1614 = vmatpush.bf16.msra.mxu0 %v6283_v43  ;;  %1640 = vmatpush.bf16.msrb.mxu2 %v6284_v21 }
 0x230   :  { %v1265_v47 = vpop.f32.mrf.mxu1 }
 0x236   :  { %v1291_v57 = vpop.f32.mrf.mxu3 }
 0x238   :  { %v1267_v25 = vpop.f32.mrf.mxu1 }
 0x23e   :  { %v1293_v8 = vpop.f32.mrf.mxu3 }
 0x240   :  { %v1317_v9 = vpop.f32.mrf.mxu1 }
 0x242   :  { %v1252_v10 = vpop.f32.mrf.mxu0 }
 0x243   :  { %v1253_v62 = vadd.f32 %v1252_v10, %v6285_v37 }
 0x245   :  { %v1266_v36 = vadd.f32 %v1265_v47, %v1253_v62 }
 0x246   :  { %v1343_v60 = vpop.f32.mrf.mxu3 }
 0x247   :  { %v3751_v27 = vmul.f32 -1.442695, %v1266_v36  ;;  %v6287_v36 = vld [vmem:[#allocation98_spill] sm:$0xff] }
 0x248   :  { %v1319_v23 = vpop.f32.mrf.mxu1  ;;  %v1278_v46 = vpop.f32.mrf.mxu2 }
 0x249   :  { %3954 = vpow2.f32 %v3751_v27  ;;  %v1279_v42 = vadd.f32 %v1278_v46, %v6286_v49  ;;  %v6289_v49 = vld [vmem:[#allocation100_spill] sm:$0xff] }
 0x24a   :  { %v1254_v22 = vpop.f32.mrf.mxu0 }
 0x24b   :  { %v1292_v43 = vadd.f32 %v1291_v57, %v1279_v42 }
 0x24d   :  { %v3752_v15 = vmul.f32 -1.442695, %v1292_v43  ;;  %v6288_v43 = vld [vmem:[#allocation23_spill] sm:$0xff] }
 0x24e   :  { %v1345_v21 = vpop.f32.mrf.mxu3 }
 0x24f   :  { %v3955_v40 = vpop.eup %3954  ;;  %3956 = vpow2.f32 %v3752_v15 }
 0x250   :  { %v4990_v25 = vadd.f32 1.0, %v3955_v40  ;;  %v1432_v8 = vpop.f32.mrf.mxu1  ;;  %v1280_v39 = vpop.f32.mrf.mxu2 }
 0x251   :  { %v1467_v6 = vrot.slane %v1432_v8, 4 }
 0x252   :  { %3958 = vrcp.f32 %v4990_v25  ;;  %v1304_v47 = vpop.f32.mrf.mxu0  ;;  %vm1356_vm10 = vweird.f32 %v4990_v25 }
 0x253   :  { %v1475_v10 = vadd.f32 %v1467_v6, %v6287_v36 }
 0x255   :  { %v3957_v62 = vpop.eup %3956  ;;  %v3755_v27 = vmul.f32 -1.442695, %v1475_v10  ;;  %v6290_v10 = vld [vmem:[#allocation31_spill] sm:$0xff] }
 0x256   :  { %v1369_v23 = vadd.f32 1.0, %v3957_v62  ;;  %v1458_v46 = vpop.f32.mrf.mxu3  ;;  %v1305_v62 = vadd.f32 %v1304_v47, %v6290_v10  ;;  %v1362_v47 = vand.u32 2147483648, %v4990_v25 }
 0x257   :  { %3960 = vpow2.f32 %v3755_v27  ;;  %v1469_v57 = vrot.slane %v1458_v46, 4 }
 0x258   :  { %v3959_v22 = vpop.eup %3958  ;;  %3962 = vrcp.f32 %v1369_v23  ;;  %v1434_v42 = vpop.f32.mrf.mxu1  ;;  %vm1375_vm8 = vweird.f32 %v1369_v23 }
 0x259   :  { %v1330_v15 = vpop.f32.mrf.mxu2  ;;  %v1352_v40 = vmul.f32 %v3959_v22, %v4990_v25  ;;  %v1477_v37 = vadd.f32 %v1469_v57, %v6289_v49  ;;  %vm1357_vm7 = vweird.f32 %v3959_v22 }
 0x25a   :  { %v1331_v39 = vadd.f32 %v1330_v15, %v6288_v43  ;;  %v1306_v21 = vpop.f32.mrf.mxu0  ;;  %v1381_v15 = vand.u32 2147483648, %v1369_v23  ;;  %vm5009_vm11 = vmor %vm1356_vm10, %vm1357_vm7 }
 0x25b   :  { %v1353_v8 = vsub.f32 1.0, %v1352_v40  ;;  %v3756_v42 = vmul.f32 -1.442695, %v1477_v37  ;;  %v1318_v21 = vadd.f32 %v1317_v9, %v1305_v62  ;;  %v6291_v37 = vld [vmem:[#allocation89_spill] sm:$0xff] }
 0x25c   :  { %v1344_v2 = vadd.f32 %v1343_v60, %v1331_v39 }
 0x25d   :  { %v3961_v6 = vpop.eup %3960  ;;  %v1354_v46 = vmul.f32 %v3959_v22, %v1353_v8 }
 0x25e   :  { %v3963_v36 = vpop.eup %3962  ;;  %v3753_v28 = vmul.f32 -1.442695, %v1344_v2  ;;  %v1460_v27 = vpop.f32.mrf.mxu3  ;;  %v4998_v59 = vadd.f32 1.0, %v3961_v6  ;;  %v1379_v2 = vand.u32 2147483647, %v1369_v23 }
 0x25f   :  { %v1371_v63 = vmul.f32 %v3963_v36, %v1369_v23  ;;  %vm1376_vm6 = vweird.f32 %v3963_v36  ;;  %v1355_v57 = vadd.f32 %v3959_v22, %v1354_v46 }
 0x260   :  { %3964 = vpow2.f32 %v3753_v28  ;;  %vm5003_vm9 = vmor %vm1375_vm8, %vm1376_vm6  ;;  %v1382_v28 = vor.u32 1.1754944e-38, %v1381_v15  ;;  %vm1380_vm12 = vcmp.eq.f32.partialorder %v1379_v2, 8.507059e+37  ;;  %vm1506_vm3 = vweird.f32 %v4998_v59 }
 0x261   :  { %v1332_v54 = vpop.f32.mrf.mxu2  ;;  %v1372_v16 = vsub.f32 1.0, %v1371_v63  ;;  %3966 = vrcp.f32 %v4998_v59  ;;  %v1359_v6 = vsel %vm5009_vm11, %v3959_v22, %v1355_v57 }
 0x262   :  { %v1419_v40 = vpop.f32.mrf.mxu0  ;;  %3968 = vpow2.f32 %v3756_v42 }
 0x263   :  { %v1373_v43 = vmul.f32 %v3963_v36, %v1372_v16  ;;  %v1466_v60 = vrot.slane %v1419_v40, 4  ;;  %v1360_v16 = vand.u32 2147483647, %v4990_v25  ;;  %3970 = vtanh.f32 %v1318_v21  ;;  %v6296_v21 = vld [vmem:[#allocation110_spill] sm:$0xff] }
 0x264   :  { %v1363_v25 = vor.u32 1.1754944e-38, %v1362_v47 }
 0x265   :  { %v1374_v39 = vadd.f32 %v3963_v36, %v1373_v43  ;;  %v1474_v54 = vadd.f32 %v1466_v60, %v6291_v37  ;;  %vm1361_vm13 = vcmp.eq.f32.partialorder %v1360_v16, 8.507059e+37 }
 0x266   :  { %v3965_v9 = vpop.eup %3964  ;;  %v1364_v60 = vsel %vm1361_vm13, %v1363_v25, %v1359_v6 }
 0x267   :  { %v1378_v23 = vsel %vm5003_vm9, %v3963_v36, %v1374_v39  ;;  %v3754_v43 = vmul.f32 -1.442695, %v1474_v54  ;;  %v1389_v62 = vadd.f32 1.0, %v3965_v9  ;;  %v5017_v46 = vpop.eup %3966 }
 0x268   :  { %v1383_v42 = vsel %vm1380_vm12, %v1382_v28, %v1378_v23  ;;  %v3969_v15 = vpop.eup %3968  ;;  %v1502_v36 = vmul.f32 %v5017_v46, %v4998_v59  ;;  %vm1507_vm0 = vweird.f32 %v5017_v46 }
 0x269   :  { %v1445_v27 = vpop.f32.mrf.mxu2  ;;  %3972 = vpow2.f32 %v3754_v43  ;;  %v1405_v39 = vmul.f32 %v1383_v42, %v6296_v21  ;;  %v3971_v54 = vpop.eup %3970  ;;  %v5022_v22 = vadd.f32 1.0, %v3969_v15  ;;  %v1401_v25 = vand.u32 2147483648, %v1389_v62  ;;  %v6298_v21 = vld [vmem:[#allocation107_spill] sm:$0xff]  ;;  %vm5038_vm4 = vmor %vm1506_vm3, %vm1507_vm0 }
 0x26a   :  { %3974 = vrcp.f32 %v1389_v62  ;;  %v1421_v40 = vpop.f32.mrf.mxu0  ;;  %v1406_v57 = vmul.f32 %v3971_v54, %v1364_v60  ;;  %v1503_v9 = vsub.f32 1.0, %v1502_v36  ;;  %v1468_v6 = vrot.slane %v1445_v27, 4 }
 0x26b   :  { %3976 = vrcp.f32 %v5022_v22  ;;  %v1399_v15 = vand.u32 2147483647, %v1389_v62  ;;  %vm1395_vm15 = vweird.f32 %v1389_v62  ;;  %vm1526_vm11 = vweird.f32 %v5022_v22 }
 0x26c   :  { %v5024_v47 = vadd.f32 %v1406_v57, %v1405_v39  ;;  %v1504_v43 = vmul.f32 %v5017_v46, %v1503_v9  ;;  %v1476_v39 = vadd.f32 %v1468_v6, %v6298_v21  ;;  %v1402_v57 = vor.u32 1.1754944e-38, %v1401_v25 }
 0x26d   :  { %vm1400_vm2 = vcmp.eq.f32.partialorder %v1399_v15, 8.507059e+37 }
 0x26e   :  { %6297 = vst [vmem:[#allocation17_spill] sm:$0xff] %v5024_v47  ;;  %v1505_v54 = vadd.f32 %v5017_v46, %v1504_v43  ;;  %v1510_v43 = vand.u32 2147483647, %v4998_v59 }
 0x26f   :  { %v3973_v2 = vpop.eup %3972 }
 0x270   :  { %v3975_v63 = vpop.eup %3974  ;;  %v1481_v28 = vadd.f32 1.0, %v3973_v2  ;;  %vm1511_vm7 = vcmp.eq.f32.partialorder %v1510_v43, 8.507059e+37 }
 0x271   :  { %v1447_v8 = vpop.f32.mrf.mxu2  ;;  %v1391_v16 = vmul.f32 %v3975_v63, %v1389_v62  ;;  %vm1396_vm14 = vweird.f32 %v3975_v63  ;;  %v5029_v40 = vpop.eup %3976 }
 0x272   :  { %3978 = vrcp.f32 %v1481_v28  ;;  %vm1397_vm1 = vmor %vm1395_vm15, %vm1396_vm14  ;;  %v1512_v8 = vand.u32 2147483648, %v4998_v59  ;;  %v1522_v62 = vmul.f32 %v5029_v40, %v5022_v22  ;;  %vm1487_vm6 = vweird.f32 %v1481_v28 }
 0x273   :  { %v1392_v23 = vsub.f32 1.0, %v1391_v16  ;;  %3980 = vtanh.f32 %v5024_v47  ;;  %vm1527_vm10 = vweird.f32 %v5029_v40 }
 0x274   :  { %3982 = vtanh.f32 %v1476_v39  ;;  %v1513_v47 = vor.u32 1.1754944e-38, %v1512_v8  ;;  %vm1528_vm12 = vmor %vm1526_vm11, %vm1527_vm10 }
 0x275   :  { %v1393_v42 = vmul.f32 %v3975_v63, %v1392_v23 }
 0x277   :  { %v1394_v60 = vadd.f32 %v3975_v63, %v1393_v42  ;;  %v1493_v42 = vand.u32 2147483648, %v1481_v28 }
 0x278   :  { %v3979_v36 = vpop.eup %3978 }
 0x279   :  { %v1483_v2 = vmul.f32 %v3979_v36, %v1481_v28  ;;  %v1398_v9 = vsel %vm1397_vm1, %v3975_v63, %v1394_v60  ;;  %v3981_v27 = vpop.eup %3980  ;;  %v1509_v63 = vsel %vm5038_vm4, %v5017_v46, %v1505_v54  ;;  %vm1488_vm5 = vweird.f32 %v3979_v36 }
 0x27a   :  { %v1403_v16 = vsel %vm1400_vm2, %v1402_v57, %v1398_v9  ;;  %v1491_v60 = vand.u32 2147483647, %v1481_v28  ;;  %v1523_v57 = vsub.f32 1.0, %v1522_v62  ;;  %vm1489_vm8 = vmor %vm1487_vm6, %vm1488_vm5  ;;  %v1514_v59 = vsel %vm1511_vm7, %v1513_v47, %v1509_v63  ;;  %v3983_v46 = vpop.eup %3982  ;;  %v6302_v63 = vld [vmem:[#allocation43_spill] sm:$0xff] }
 0x27b   :  { %v1484_v6 = vsub.f32 1.0, %v1483_v2  ;;  %v1409_v25 = vmul.f32 %v3981_v27, %v1403_v16  ;;  %v1494_v2 = vor.u32 1.1754944e-38, %v1493_v42  ;;  %v1537_v27 = vrot.slane %v4885_v38, 6 }
 0x27c   :  { %vm1492_vm9 = vcmp.eq.f32.partialorder %v1491_v60, 8.507059e+37  ;;  %v1524_v39 = vmul.f32 %v5029_v40, %v1523_v57  ;;  %v1532_v38 = vand.u32 2147483648, %v5022_v22  ;;  %v6304_v60 = vld [vmem:[#allocation30_spill] sm:$0xff]  ;;  %v6305_v57 = vld [vmem:[#allocation39_spill] sm:$0xff] }
 0x27d   :  { %v1485_v15 = vmul.f32 %v3979_v36, %v1484_v6  ;;  %v1545_v21 = vrot.slane %v1409_v25, 4  ;;  %v1539_v6 = vmul.f32 %v1537_v27, %v1514_v59  ;;  %v6308_v59 = vld [vmem:[#allocation55_spill] sm:$0xff]  ;;  %v6309_v27 = vld [vmem:[#allocation56_spill] sm:$0xff] }
 0x27e   :  { %v1525_v47 = vadd.f32 %v5029_v40, %v1524_v39  ;;  %v6313_v39 = vld [vmem:[#allocation60_spill] sm:$0xff] }
 0x27f   :  { %v1486_v9 = vadd.f32 %v3979_v36, %v1485_v15  ;;  %v1548_v37 = vpack.c.bf16 %v1545_v21, %v1545_v21  ;;  %v1533_v21 = vor.u32 1.1754944e-38, %v1532_v38  ;;  %v6303_v15 = vld [vmem:[#allocation44_spill] sm:$0xff]  ;;  %v6318_v38 = vld [vmem:[#allocation51_spill] sm:$0xff] }
 0x281   :  { %v1490_v16 = vsel %vm1489_vm8, %v3979_v36, %v1486_v9  ;;  %v1552_v23 = vrot.slane %v1548_v37, 2  ;;  %v1530_v37 = vand.u32 2147483647, %v5022_v22  ;;  %v1529_v36 = vsel %vm1528_vm12, %v5029_v40, %v1525_v47  ;;  %v6301_v40 = vld [vmem:[#allocation36_spill] sm:$0xff]  ;;  %v6306_v9 = vld [vmem:[#allocation45_spill] sm:$0xff] }
 0x282   :  { %v1495_v54 = vsel %vm1492_vm9, %v1494_v2, %v1490_v16  ;;  %v6307_v2 = vld [vmem:[#allocation46_spill] sm:$0xff]  ;;  %v6310_v16 = vld [vmem:[#allocation47_spill] sm:$0xff]  ;;  %v6317_v47 = vld [vmem:[#allocation64_spill] sm:$0xff] }
 0x283   :  { %v1540_v25 = vmul.f32 %v3983_v46, %v1495_v54  ;;  %1576 = vmatmul.bf16.vlgmr.msrb.gmra.mxu1 %v1552_v23  ;;  %1602 = vmatmul.bf16.vlgmr.msra.gmra.mxu3 %v1552_v23  ;;  %vm1531_vm13 = vcmp.eq.f32.partialorder %v1530_v37, 8.507059e+37  ;;  %v6312_v46 = vld [vmem:[#allocation59_spill] sm:$0xff]  ;;  %v6314_v54 = vld [vmem:[#allocation49_spill] sm:$0xff]  ;;  %v6319_v37 = vld [vmem:[#allocation52_spill] sm:$0xff] }
 0x284   :  { %1735 = vmatpush.bf16.msrb.mxu1 %v6225_v44  ;;  %1761 = vmatpush.bf16.msra.mxu3 %v6226_v32  ;;  %v1534_v62 = vsel %vm1531_vm13, %v1533_v21, %v1529_v36  ;;  %v6320_v36 = vld [vmem:[#allocation53_spill] sm:$0xff]  ;;  %v6321_v21 = vld [vmem:[#allocation54_spill] sm:$0xff] }
 0x285   :  { %v5050_v28 = vadd.f32 %v1540_v25, %v1539_v6  ;;  %v6315_v6 = vld [vmem:[#allocation50_spill] sm:$0xff]  ;;  %v6316_v25 = vld [vmem:[#allocation63_spill] sm:$0xff] }
 0x287   :  { %3984 = vtanh.f32 %v5050_v28 }
 0x288   :  { %1736 = vmatpush.bf16.msrb.mxu1 %v6227_v51  ;;  %1762 = vmatpush.bf16.msra.mxu3 %v6228_v33 }
 0x28c   :  { %1737 = vmatpush.bf16.msrb.mxu1 %v6229_v20  ;;  %1763 = vmatpush.bf16.msra.mxu3 %v6230_v45 }
 0x28d   :  { %v3985_v8 = vpop.eup %3984 }
 0x28e   :  { %v1543_v43 = vmul.f32 %v3985_v8, %v1534_v62  ;;  %v6322_v8 = vld [vmem:[#allocation67_spill] sm:$0xff]  ;;  %v6323_v62 = vld [vmem:[#allocation68_spill] sm:$0xff] }
 0x290   :  { %v1547_v42 = vpack.c.bf16 %v1543_v43, %v1543_v43  ;;  %1738 = vmatpush.bf16.msrb.mxu1 %v6231_v11  ;;  %1764 = vmatpush.bf16.msra.mxu3 %v6232_v4  ;;  %v6324_v43 = vld [vmem:[#allocation57_spill] sm:$0xff] }
 0x292   :  { %v1551_v22 = vrot.slane %v1547_v42, 2  ;;  %v6325_v42 = vld [vmem:[#allocation58_spill] sm:$0xff] }
 0x293   :  { %1628 = vmatmul.bf16.vlgmr.msra.gmra.mxu1 %v1552_v23  ;;  %1654 = vmatmul.bf16.vlgmr.msrb.gmra.mxu3 %v1552_v23  ;;  %v6311_v23 = vld [vmem:[#allocation48_spill] sm:$0xff] }
 0x294   :  { %1739 = vmatpush.bf16.msrb.mxu1 %v6233_v29  ;;  %1765 = vmatpush.bf16.msra.mxu3 %v6234_v17 }
 0x295   :  { %1563 = vmatmul.bf16.vlgmr.msrb.gmra.mxu0 %v1551_v22  ;;  %1589 = vmatmul.bf16.vlgmr.msra.gmra.mxu2 %v1551_v22 }
 0x296   :  { %1722 = vmatpush.bf16.msrb.mxu0 %v4358_v3  ;;  %1748 = vmatpush.bf16.msra.mxu2 %v4392_v56 }
 0x298   :  { %1740 = vmatpush.bf16.msrb.mxu1 %v6235_v58  ;;  %1766 = vmatpush.bf16.msra.mxu3 %v6236_v61 }
 0x29a   :  { %1723 = vmatpush.bf16.msrb.mxu0 %v4361_v12  ;;  %1749 = vmatpush.bf16.msra.mxu2 %v4404_v5 }
 0x29c   :  { %1741 = vmatpush.bf16.msrb.mxu1 %v4460_v7  ;;  %1767 = vmatpush.bf16.msra.mxu3 %v4447_v50 }
 0x29e   :  { %1724 = vmatpush.bf16.msrb.mxu0 %v4377_v35  ;;  %1750 = vmatpush.bf16.msra.mxu2 %v4418_v18 }
 0x2a0   :  { %1742 = vmatpush.bf16.msrb.mxu1 %v4469_v24  ;;  %1768 = vmatpush.bf16.msra.mxu3 %v6237_v0 }
 0x2a2   :  { %1725 = vmatpush.bf16.msrb.mxu0 %v4388_v52  ;;  %1751 = vmatpush.bf16.msra.mxu2 %v6179_v30 }
 0x2a3   :  { %1743 = vmatmul.bf16.vlgmr.msrb.gmra.mxu1 %v1551_v22  ;;  %1769 = vmatmul.bf16.vlgmr.msra.gmra.mxu3 %v1551_v22 }
 0x2a4   :  { %1880 = vmatpush.bf16.msra.mxu1 %v6238_v26  ;;  %1906 = vmatpush.bf16.msrb.mxu3 %v6239_v14 }
 0x2a5   :  { %1615 = vmatmul.bf16.vlgmr.msra.gmra.mxu0 %v1551_v22  ;;  %1641 = vmatmul.bf16.vlgmr.msrb.gmra.mxu2 %v1551_v22 }
 0x2a6   :  { %1726 = vmatpush.bf16.msrb.mxu0 %v6182_v41  ;;  %1752 = vmatpush.bf16.msra.mxu2 %v6183_v13 }
 0x2a8   :  { %1881 = vmatpush.bf16.msra.mxu1 %v6240_v55  ;;  %1907 = vmatpush.bf16.msrb.mxu3 %v6241_v53 }
 0x2aa   :  { %1727 = vmatpush.bf16.msrb.mxu0 %v6186_v48  ;;  %1753 = vmatpush.bf16.msra.mxu2 %v6187_v1 }
 0x2ac   :  { %1882 = vmatpush.bf16.msra.mxu1 %v6242_v19  ;;  %1908 = vmatpush.bf16.msrb.mxu3 %v6243_v34 }
 0x2ae   :  { %1728 = vmatpush.bf16.msrb.mxu0 %v6190_v31  ;;  %1754 = vmatpush.bf16.msra.mxu2 %v6301_v40 }
 0x2b0   :  { %1883 = vmatpush.bf16.msra.mxu1 %v6302_v63  ;;  %1909 = vmatpush.bf16.msrb.mxu3 %v6303_v15 }
 0x2b2   :  { %1729 = vmatpush.bf16.msrb.mxu0 %v6304_v60  ;;  %1755 = vmatpush.bf16.msra.mxu2 %v6305_v57 }
 0x2b4   :  { %1884 = vmatpush.bf16.msra.mxu1 %v6306_v9  ;;  %1910 = vmatpush.bf16.msrb.mxu3 %v6307_v2 }
 0x2b5   :  { %1730 = vmatmul.bf16.vlgmr.msrb.gmra.mxu0 %v1551_v22  ;;  %1756 = vmatmul.bf16.vlgmr.msra.gmra.mxu2 %v1551_v22  ;;  %v6326_v22 = vld [vmem:[#allocation71_spill] sm:$0xff] }
 0x2b6   :  { %1867 = vmatpush.bf16.msra.mxu0 %v6308_v59  ;;  %1893 = vmatpush.bf16.msrb.mxu2 %v6309_v27 }
 0x2b8   :  { %1885 = vmatpush.bf16.msra.mxu1 %v6310_v16  ;;  %1911 = vmatpush.bf16.msrb.mxu3 %v6311_v23 }
 0x2ba   :  { %1868 = vmatpush.bf16.msra.mxu0 %v6312_v46  ;;  %1894 = vmatpush.bf16.msrb.mxu2 %v6313_v39  ;;  %v6362_v39 = vld [vmem:[#allocation27_spill] sm:$0xff] }
 0x2bc   :  { %1886 = vmatpush.bf16.msra.mxu1 %v6314_v54  ;;  %1912 = vmatpush.bf16.msrb.mxu3 %v6315_v6 }
 0x2be   :  { %1869 = vmatpush.bf16.msra.mxu0 %v6316_v25  ;;  %1895 = vmatpush.bf16.msrb.mxu2 %v6317_v47  ;;  %v6327_v25 = vld [vmem:[#allocation72_spill] sm:$0xff]  ;;  %v6328_v47 = vld [vmem:[#allocation61_spill] sm:$0xff] }
 0x2c0   :  { %1887 = vmatpush.bf16.msra.mxu1 %v6318_v38  ;;  %1913 = vmatpush.bf16.msrb.mxu3 %v6319_v37  ;;  %v6329_v38 = vld [vmem:[#allocation62_spill] sm:$0xff]  ;;  %v6330_v37 = vld [vmem:[#allocation76_spill] sm:$0xff] }
 0x2c2   :  { %1870 = vmatpush.bf16.msra.mxu0 %v6322_v8  ;;  %1896 = vmatpush.bf16.msrb.mxu2 %v6323_v62  ;;  %v6333_v8 = vld [vmem:[#allocation66_spill] sm:$0xff]  ;;  %v6334_v62 = vld [vmem:[#allocation81_spill] sm:$0xff] }
 0x2c4   :  { %1932 = vmatpush.bf16.msrb.mxu1 %v6320_v36  ;;  %1958 = vmatpush.bf16.msra.mxu3 %v6321_v21  ;;  %v6331_v36 = vld [vmem:[#allocation77_spill] sm:$0xff] }
 0x2c5   :  { %v6332_v21 = vld [vmem:[#allocation65_spill] sm:$0xff] }
 0x2c6   :  { %1871 = vmatpush.bf16.msra.mxu0 %v6326_v22  ;;  %1897 = vmatpush.bf16.msrb.mxu2 %v6327_v25  ;;  %v6337_v22 = vld [vmem:[#allocation70_spill] sm:$0xff]  ;;  %v6338_v25 = vld [vmem:[#allocation85_spill] sm:$0xff] }
 0x2c8   :  { %1933 = vmatpush.bf16.msrb.mxu1 %v6324_v43  ;;  %1959 = vmatpush.bf16.msra.mxu3 %v6325_v42  ;;  %v6335_v43 = vld [vmem:[#allocation82_spill] sm:$0xff]  ;;  %v6336_v42 = vld [vmem:[#allocation69_spill] sm:$0xff] }
 0x2ca   :  { %1872 = vmatpush.bf16.msra.mxu0 %v6330_v37  ;;  %1898 = vmatpush.bf16.msrb.mxu2 %v6331_v36  ;;  %v6341_v37 = vld [vmem:[#allocation88_spill] sm:$0xff]  ;;  %v6342_v36 = vld [vmem:[#allocation73_spill] sm:$0xff] }
 0x2cc   :  { %1934 = vmatpush.bf16.msrb.mxu1 %v6328_v47  ;;  %1960 = vmatpush.bf16.msra.mxu3 %v6329_v38  ;;  %v6339_v47 = vld [vmem:[#allocation86_spill] sm:$0xff]  ;;  %v6340_v38 = vld [vmem:[#allocation87_spill] sm:$0xff] }
 0x2ce   :  { %1873 = vmatpush.bf16.msra.mxu0 %v6334_v62  ;;  %1899 = vmatpush.bf16.msrb.mxu2 %v6335_v43  ;;  %v6345_v62 = vld [vmem:[#allocation92_spill] sm:$0xff]  ;;  %v6346_v43 = vld [vmem:[#allocation78_spill] sm:$0xff] }
 0x2d0   :  { %1935 = vmatpush.bf16.msrb.mxu1 %v6332_v21  ;;  %1961 = vmatpush.bf16.msra.mxu3 %v6333_v8  ;;  %v6343_v21 = vld [vmem:[#allocation75_spill] sm:$0xff]  ;;  %v6344_v8 = vld [vmem:[#allocation90_spill] sm:$0xff] }
 0x2d2   :  { %1874 = vmatpush.bf16.msra.mxu0 %v6338_v25  ;;  %1900 = vmatpush.bf16.msrb.mxu2 %v6339_v47  ;;  %v6349_v25 = vld [vmem:[#allocation95_spill] sm:$0xff] }
 0x2d3   :  { %v6350_v47 = vld [vmem:[#allocation83_spill] sm:$0xff] }
 0x2d4   :  { %1936 = vmatpush.bf16.msrb.mxu1 %v6336_v42  ;;  %1962 = vmatpush.bf16.msra.mxu3 %v6337_v22  ;;  %v6347_v42 = vld [vmem:[#allocation80_spill] sm:$0xff]  ;;  %v6348_v22 = vld [vmem:[#allocation94_spill] sm:$0xff] }
 0x2d6   :  { %1919 = vmatpush.bf16.msrb.mxu0 %v6340_v38  ;;  %1945 = vmatpush.bf16.msra.mxu2 %v6341_v37  ;;  %v6351_v38 = vld [vmem:[#allocation84_spill] sm:$0xff]  ;;  %v6352_v37 = vld [vmem:[#allocation97_spill] sm:$0xff] }
 0x2d8   :  { %1937 = vmatpush.bf16.msrb.mxu1 %v6342_v36  ;;  %1963 = vmatpush.bf16.msra.mxu3 %v6343_v21  ;;  %v6353_v36 = vld [vmem:[#allocation99_spill] sm:$0xff]  ;;  %v6354_v21 = vld [vmem:[#allocation101_spill] sm:$0xff] }
 0x2da   :  { %1920 = vmatpush.bf16.msrb.mxu0 %v6344_v8  ;;  %1946 = vmatpush.bf16.msra.mxu2 %v6345_v62  ;;  %v6355_v8 = vld [vmem:[#allocation102_spill] sm:$0xff]  ;;  %v6356_v62 = vld [vmem:[#allocation103_spill] sm:$0xff] }
 0x2dc   :  { %1938 = vmatpush.bf16.msrb.mxu1 %v6346_v43  ;;  %1964 = vmatpush.bf16.msra.mxu3 %v6347_v42  ;;  %v6357_v43 = vld [vmem:[#allocation104_spill] sm:$0xff]  ;;  %v6358_v42 = vld [vmem:[#allocation105_spill] sm:$0xff] }
 0x2de   :  { %1921 = vmatpush.bf16.msrb.mxu0 %v6348_v22  ;;  %1947 = vmatpush.bf16.msra.mxu2 %v6349_v25  ;;  %v6359_v22 = vld [vmem:[#allocation106_spill] sm:$0xff]  ;;  %v6360_v25 = vld [vmem:[#allocation108_spill] sm:$0xff] }
 0x2e0   :  { %1939 = vmatpush.bf16.msrb.mxu1 %v6350_v47  ;;  %1965 = vmatpush.bf16.msra.mxu3 %v6351_v38  ;;  %v6361_v47 = vld [vmem:[#allocation109_spill] sm:$0xff] }
 0x2e2   :  { %1922 = vmatpush.bf16.msrb.mxu0 %v6352_v37  ;;  %1948 = vmatpush.bf16.msra.mxu2 %v6353_v36 }
 0x2e6   :  { %1923 = vmatpush.bf16.msrb.mxu0 %v6354_v21  ;;  %1949 = vmatpush.bf16.msra.mxu2 %v6355_v8 }
 0x2ea   :  { %1924 = vmatpush.bf16.msrb.mxu0 %v6356_v62  ;;  %1950 = vmatpush.bf16.msra.mxu2 %v6357_v43 }
 0x2ee   :  { %1925 = vmatpush.bf16.msrb.mxu0 %v6358_v42  ;;  %1951 = vmatpush.bf16.msra.mxu2 %v6359_v22  ;;  %v6363_v42 = vld [vmem:[#allocation20_spill] sm:$0xff] }
 0x2f2   :  { %1926 = vmatpush.bf16.msrb.mxu0 %v6360_v25  ;;  %1952 = vmatpush.bf16.msra.mxu2 %v6361_v47 }
 0x300   :  { %v1577_v38 = vpop.f32.mrf.mxu1 }
 0x306   :  { %v1603_v37 = vpop.f32.mrf.mxu3 }
 0x308   :  { %v1579_v6 = vpop.f32.mrf.mxu1 }
 0x30e   :  { %v1605_v36 = vpop.f32.mrf.mxu3 }
 0x310   :  { %v1629_v54 = vpop.f32.mrf.mxu1 }
 0x312   :  { %v1564_v21 = vpop.f32.mrf.mxu0 }
 0x313   :  { %v1565_v8 = vadd.f32 %v1564_v21, %v6362_v39 }
 0x315   :  { %v1578_v46 = vadd.f32 %v1577_v38, %v1565_v8 }
 0x316   :  { %v1655_v62 = vpop.f32.mrf.mxu3 }
 0x317   :  { %v3757_v23 = vmul.f32 -1.442695, %v1578_v46  ;;  %v6364_v46 = vld [vmem:[#allocation98_spill] sm:$0xff] }
 0x318   :  { %v1631_v43 = vpop.f32.mrf.mxu1  ;;  %v1590_v16 = vpop.f32.mrf.mxu2 }
 0x319   :  { %3986 = vpow2.f32 %v3757_v23  ;;  %v1591_v22 = vadd.f32 %v1590_v16, %v6363_v42 }
 0x31a   :  { %v1566_v27 = vpop.f32.mrf.mxu0 }
 0x31b   :  { %v1604_v25 = vadd.f32 %v1603_v37, %v1591_v22  ;;  %v6365_v37 = vld [vmem:[#allocation23_spill] sm:$0xff] }
 0x31d   :  { %v3758_v59 = vmul.f32 -1.442695, %v1604_v25 }
 0x31e   :  { %v1657_v47 = vpop.f32.mrf.mxu3 }
 0x31f   :  { %v3987_v2 = vpop.eup %3986  ;;  %3988 = vpow2.f32 %v3758_v59 }
 0x320   :  { %v5155_v6 = vadd.f32 1.0, %v3987_v2  ;;  %v1744_v36 = vpop.f32.mrf.mxu1  ;;  %v1592_v9 = vpop.f32.mrf.mxu2 }
 0x321   :  { %v1779_v57 = vrot.slane %v1744_v36, 2 }
 0x322   :  { %3990 = vrcp.f32 %v5155_v6  ;;  %v1616_v38 = vpop.f32.mrf.mxu0  ;;  %vm1668_vm2 = vweird.f32 %v5155_v6 }
 0x323   :  { %v1787_v21 = vadd.f32 %v1779_v57, %v6364_v46 }
 0x325   :  { %v3989_v8 = vpop.eup %3988  ;;  %v3761_v23 = vmul.f32 -1.442695, %v1787_v21  ;;  %v1617_v21 = vadd.f32 %v1616_v38, %v6290_v10  ;;  %v1674_v38 = vand.u32 2147483648, %v5155_v6 }
 0x326   :  { %v1681_v43 = vadd.f32 1.0, %v3989_v8  ;;  %v1770_v16 = vpop.f32.mrf.mxu3 }
 0x327   :  { %3992 = vpow2.f32 %v3761_v23  ;;  %v1781_v25 = vrot.slane %v1770_v16, 2 }
 0x328   :  { %v3991_v27 = vpop.eup %3990  ;;  %3994 = vrcp.f32 %v1681_v43  ;;  %v1746_v47 = vpop.f32.mrf.mxu1  ;;  %vm1687_vm0 = vweird.f32 %v1681_v43 }
 0x329   :  { %v1642_v59 = vpop.f32.mrf.mxu2  ;;  %v1664_v2 = vmul.f32 %v3991_v27, %v5155_v6  ;;  %v1789_v42 = vadd.f32 %v1781_v25, %v6289_v49  ;;  %vm1669_vm15 = vweird.f32 %v3991_v27 }
 0x32a   :  { %v1643_v9 = vadd.f32 %v1642_v59, %v6365_v37  ;;  %v1618_v22 = vpop.f32.mrf.mxu0  ;;  %v1693_v59 = vand.u32 2147483648, %v1681_v43  ;;  %vm5174_vm3 = vmor %vm1668_vm2, %vm1669_vm15 }
 0x32b   :  { %v1665_v36 = vsub.f32 1.0, %v1664_v2  ;;  %v3762_v47 = vmul.f32 -1.442695, %v1789_v42  ;;  %v1630_v22 = vadd.f32 %v1629_v54, %v1617_v21  ;;  %v6366_v42 = vld [vmem:[#allocation89_spill] sm:$0xff] }
 0x32c   :  { %v1656_v39 = vadd.f32 %v1655_v62, %v1643_v9  ;;  %v1694_v9 = vor.u32 1.1754944e-38, %v1693_v59 }
 0x32d   :  { %v3993_v57 = vpop.eup %3992  ;;  %v1666_v16 = vmul.f32 %v3991_v27, %v1665_v36 }
 0x32e   :  { %v3995_v46 = vpop.eup %3994  ;;  %v3759_v8 = vmul.f32 -1.442695, %v1656_v39  ;;  %v1772_v23 = vpop.f32.mrf.mxu3  ;;  %v5163_v15 = vadd.f32 1.0, %v3993_v57  ;;  %v1691_v39 = vand.u32 2147483647, %v1681_v43 }
 0x32f   :  { %v1683_v60 = vmul.f32 %v3995_v46, %v1681_v43  ;;  %vm1688_vm14 = vweird.f32 %v3995_v46  ;;  %v1667_v62 = vadd.f32 %v3991_v27, %v1666_v16 }
 0x330   :  { %3996 = vpow2.f32 %v3759_v8  ;;  %vm5168_vm1 = vmor %vm1687_vm0, %vm1688_vm14  ;;  %vm1692_vm4 = vcmp.eq.f32.partialorder %v1691_v39, 8.507059e+37  ;;  %vm1818_vm11 = vweird.f32 %v5163_v15 }
 0x331   :  { %v1644_v63 = vpop.f32.mrf.mxu2  ;;  %v1684_v40 = vsub.f32 1.0, %v1683_v60  ;;  %3998 = vrcp.f32 %v5163_v15  ;;  %v1671_v57 = vsel %vm5174_vm3, %v3991_v27, %v1667_v62 }
 0x332   :  { %v1731_v2 = vpop.f32.mrf.mxu0  ;;  %4000 = vpow2.f32 %v3762_v47 }
 0x333   :  { %v1685_v37 = vmul.f32 %v3995_v46, %v1684_v40  ;;  %v1778_v49 = vrot.slane %v1731_v2, 2  ;;  %v1672_v40 = vand.u32 2147483647, %v5155_v6  ;;  %4002 = vtanh.f32 %v1630_v22  ;;  %v6371_v22 = vld [vmem:[#allocation17_spill] sm:$0xff] }
 0x334   :  { %v1675_v6 = vor.u32 1.1754944e-38, %v1674_v38 }
 0x335   :  { %v1686_v25 = vadd.f32 %v3995_v46, %v1685_v37  ;;  %v1786_v63 = vadd.f32 %v1778_v49, %v6366_v42  ;;  %vm1673_vm5 = vcmp.eq.f32.partialorder %v1672_v40, 8.507059e+37 }
 0x336   :  { %v3997_v54 = vpop.eup %3996  ;;  %v1676_v2 = vsel %vm1673_vm5, %v1675_v6, %v1671_v57 }
 0x337   :  { %v1690_v43 = vsel %vm5168_vm1, %v3995_v46, %v1686_v25  ;;  %v3760_v37 = vmul.f32 -1.442695, %v1786_v63  ;;  %v1701_v21 = vadd.f32 1.0, %v3997_v54  ;;  %v5182_v23 = vpop.eup %3998 }
 0x338   :  { %v1695_v16 = vsel %vm1692_vm4, %v1694_v9, %v1690_v43  ;;  %v4001_v47 = vpop.eup %4000  ;;  %v1814_v46 = vmul.f32 %v5182_v23, %v5163_v15  ;;  %vm1819_vm8 = vweird.f32 %v5182_v23 }
 0x339   :  { %v1757_v8 = vpop.f32.mrf.mxu2  ;;  %4004 = vpow2.f32 %v3760_v37  ;;  %v1717_v49 = vmul.f32 %v1695_v16, %v6371_v22  ;;  %v4003_v25 = vpop.eup %4002  ;;  %v5187_v27 = vadd.f32 1.0, %v4001_v47  ;;  %v1713_v43 = vand.u32 2147483648, %v1701_v21  ;;  %vm5203_vm12 = vmor %vm1818_vm11, %vm1819_vm8 }
 0x33a   :  { %4006 = vrcp.f32 %v1701_v21  ;;  %v1733_v59 = vpop.f32.mrf.mxu0  ;;  %v1718_v62 = vmul.f32 %v4003_v25, %v1676_v2  ;;  %v1815_v63 = vsub.f32 1.0, %v1814_v46  ;;  %v1780_v37 = vrot.slane %v1757_v8, 2  ;;  %v6372_v46 = vld [vmem:[#allocation107_spill] sm:$0xff] }
 0x33b   :  { %4008 = vrcp.f32 %v5187_v27  ;;  %v1711_v6 = vand.u32 2147483647, %v1701_v21  ;;  %vm1707_vm7 = vweird.f32 %v1701_v21  ;;  %v1714_v2 = vor.u32 1.1754944e-38, %v1713_v43 }
 0x33c   :  { %v5189_v38 = vadd.f32 %v1718_v62, %v1717_v49  ;;  %v1816_v36 = vmul.f32 %v5182_v23, %v1815_v63  ;;  %v1788_v22 = vadd.f32 %v1780_v37, %v6372_v46  ;;  %vm1838_vm3 = vweird.f32 %v5187_v27 }
 0x33d   :  { %vm1712_vm10 = vcmp.eq.f32.partialorder %v1711_v6, 8.507059e+37 }
 0x33e   :  { %v1817_v49 = vadd.f32 %v5182_v23, %v1816_v36 }
 0x33f   :  { %v4005_v39 = vpop.eup %4004 }
 0x340   :  { %v4007_v42 = vpop.eup %4006  ;;  %v1793_v60 = vadd.f32 1.0, %v4005_v39  ;;  %v1824_v39 = vand.u32 2147483648, %v5163_v15 }
 0x341   :  { %v1759_v54 = vpop.f32.mrf.mxu2  ;;  %v1703_v40 = vmul.f32 %v4007_v42, %v1701_v21  ;;  %vm1708_vm6 = vweird.f32 %v4007_v42  ;;  %v5194_v16 = vpop.eup %4008 }
 0x342   :  { %4010 = vrcp.f32 %v1793_v60  ;;  %vm1709_vm9 = vmor %vm1707_vm7, %vm1708_vm6  ;;  %v1834_v21 = vmul.f32 %v5194_v16, %v5187_v27  ;;  %v1805_v43 = vand.u32 2147483648, %v1793_v60  ;;  %vm1799_vm14 = vweird.f32 %v1793_v60 }
 0x343   :  { %v1704_v9 = vsub.f32 1.0, %v1703_v40  ;;  %4012 = vtanh.f32 %v5189_v38  ;;  %vm1839_vm2 = vweird.f32 %v5194_v16 }
 0x344   :  { %4014 = vtanh.f32 %v1788_v22  ;;  %vm1840_vm4 = vmor %vm1838_vm3, %vm1839_vm2 }
 0x345   :  { %v1705_v57 = vmul.f32 %v4007_v42, %v1704_v9  ;;  %v1822_v9 = vand.u32 2147483647, %v5163_v15 }
 0x347   :  { %v1706_v47 = vadd.f32 %v4007_v42, %v1705_v57  ;;  %v1803_v57 = vand.u32 2147483647, %v1793_v60  ;;  %vm1823_vm15 = vcmp.eq.f32.partialorder %v1822_v9, 8.507059e+37 }
 0x348   :  { %v4011_v59 = vpop.eup %4010 }
 0x349   :  { %v1795_v25 = vmul.f32 %v4011_v59, %v1793_v60  ;;  %v1710_v62 = vsel %vm1709_vm9, %v4007_v42, %v1706_v47  ;;  %v4013_v8 = vpop.eup %4012  ;;  %v1821_v42 = vsel %vm5203_vm12, %v5182_v23, %v1817_v49  ;;  %vm1800_vm13 = vweird.f32 %v4011_v59 }
 0x34a   :  { %v1715_v63 = vsel %vm1712_vm10, %v1714_v2, %v1710_v62  ;;  %v1825_v47 = vor.u32 1.1754944e-38, %v1824_v39  ;;  %v1835_v2 = vsub.f32 1.0, %v1834_v21  ;;  %vm1801_vm0 = vmor %vm1799_vm14, %vm1800_vm13  ;;  %vm1804_vm1 = vcmp.eq.f32.partialorder %v1803_v57, 8.507059e+37  ;;  %v4015_v23 = vpop.eup %4014 }
 0x34b   :  { %v1796_v40 = vsub.f32 1.0, %v1795_v25  ;;  %v1721_v36 = vmul.f32 %v4013_v8, %v1715_v63  ;;  %v1806_v25 = vor.u32 1.1754944e-38, %v1805_v43  ;;  %v1849_v8 = vrot.slane %v5050_v28, 6 }
 0x34c   :  { %v1826_v15 = vsel %vm1823_vm15, %v1825_v47, %v1821_v42  ;;  %v1836_v22 = vmul.f32 %v5194_v16, %v1835_v2  ;;  %v1844_v28 = vand.u32 2147483648, %v5187_v27  ;;  %v6377_v47 = vld [vmem:[#allocation44_spill] sm:$0xff]  ;;  %v6378_v2 = vld [vmem:[#allocation30_spill] sm:$0xff] }
 0x34d   :  { %v1797_v37 = vmul.f32 %v4011_v59, %v1796_v40  ;;  %v1857_v6 = vrot.slane %v1721_v36, 2  ;;  %v1851_v40 = vmul.f32 %v1849_v8, %v1826_v15  ;;  %v6382_v15 = vld [vmem:[#allocation55_spill] sm:$0xff]  ;;  %v6383_v8 = vld [vmem:[#allocation56_spill] sm:$0xff] }
 0x34e   :  { %v1837_v39 = vadd.f32 %v5194_v16, %v1836_v22  ;;  %v1845_v9 = vor.u32 1.1754944e-38, %v1844_v28  ;;  %v6387_v22 = vld [vmem:[#allocation60_spill] sm:$0xff]  ;;  %v6392_v28 = vld [vmem:[#allocation51_spill] sm:$0xff] }
 0x34f   :  { %v1798_v46 = vadd.f32 %v4011_v59, %v1797_v37  ;;  %v1860_v62 = vpack.c.bf16 %v1857_v6, %v1857_v6  ;;  %v6376_v6 = vld [vmem:[#allocation43_spill] sm:$0xff] }
 0x350   :  { %v1841_v21 = vsel %vm1840_vm4, %v5194_v16, %v1837_v39  ;;  %v6375_v16 = vld [vmem:[#allocation36_spill] sm:$0xff] }
 0x351   :  { %v1802_v63 = vsel %vm1801_vm0, %v4011_v59, %v1798_v46  ;;  %v1864_v54 = vrot.slane %v1860_v62, 3  ;;  %v1842_v59 = vand.u32 2147483647, %v5187_v27  ;;  %v6379_v46 = vld [vmem:[#allocation39_spill] sm:$0xff]  ;;  %v6380_v62 = vld [vmem:[#allocation45_spill] sm:$0xff]  ;;  %v6391_v39 = vld [vmem:[#allocation64_spill] sm:$0xff] }
 0x352   :  { %v1807_v49 = vsel %vm1804_vm1, %v1806_v25, %v1802_v63  ;;  %v6381_v25 = vld [vmem:[#allocation46_spill] sm:$0xff]  ;;  %v6384_v63 = vld [vmem:[#allocation47_spill] sm:$0xff] }
 0x353   :  { %v1852_v36 = vmul.f32 %v4015_v23, %v1807_v49  ;;  %1888 = vmatmul.bf16.vlgmr.msra.gmra.mxu1 %v1864_v54  ;;  %1914 = vmatmul.bf16.vlgmr.msrb.gmra.mxu3 %v1864_v54  ;;  %vm1843_vm5 = vcmp.eq.f32.partialorder %v1842_v59, 8.507059e+37  ;;  %v6386_v23 = vld [vmem:[#allocation59_spill] sm:$0xff]  ;;  %v6388_v49 = vld [vmem:[#allocation49_spill] sm:$0xff]  ;;  %v6393_v59 = vld [vmem:[#allocation52_spill] sm:$0xff] }
 0x354   :  { %2047 = vmatpush.bf16.msra.mxu1 %v6225_v44  ;;  %2073 = vmatpush.bf16.msrb.mxu3 %v6226_v32  ;;  %v1846_v42 = vsel %vm1843_vm5, %v1845_v9, %v1841_v21  ;;  %v6394_v21 = vld [vmem:[#allocation53_spill] sm:$0xff]  ;;  %v6395_v9 = vld [vmem:[#allocation54_spill] sm:$0xff] }
 0x355   :  { %v5215_v60 = vadd.f32 %v1852_v36, %v1851_v40  ;;  %v6389_v40 = vld [vmem:[#allocation50_spill] sm:$0xff]  ;;  %v6390_v36 = vld [vmem:[#allocation63_spill] sm:$0xff] }
 0x357   :  { %4016 = vtanh.f32 %v5215_v60 }
 0x358   :  { %2048 = vmatpush.bf16.msra.mxu1 %v6227_v51  ;;  %2074 = vmatpush.bf16.msrb.mxu3 %v6228_v33 }
 0x35c   :  { %2049 = vmatpush.bf16.msra.mxu1 %v6229_v20  ;;  %2075 = vmatpush.bf16.msrb.mxu3 %v6230_v45 }
 0x35d   :  { %v4017_v43 = vpop.eup %4016 }
 0x35e   :  { %v1855_v37 = vmul.f32 %v4017_v43, %v1846_v42  ;;  %v6396_v43 = vld [vmem:[#allocation67_spill] sm:$0xff]  ;;  %v6397_v42 = vld [vmem:[#allocation68_spill] sm:$0xff] }
 0x360   :  { %v1859_v57 = vpack.c.bf16 %v1855_v37, %v1855_v37  ;;  %2050 = vmatpush.bf16.msra.mxu1 %v6231_v11  ;;  %2076 = vmatpush.bf16.msrb.mxu3 %v6232_v4  ;;  %v6398_v37 = vld [vmem:[#allocation57_spill] sm:$0xff] }
 0x362   :  { %v1863_v27 = vrot.slane %v1859_v57, 3  ;;  %v6399_v57 = vld [vmem:[#allocation58_spill] sm:$0xff] }
 0x363   :  { %1940 = vmatmul.bf16.vlgmr.msrb.gmra.mxu1 %v1864_v54  ;;  %1966 = vmatmul.bf16.vlgmr.msra.gmra.mxu3 %v1864_v54  ;;  %v6385_v54 = vld [vmem:[#allocation48_spill] sm:$0xff] }
 0x364   :  { %2051 = vmatpush.bf16.msra.mxu1 %v6233_v29  ;;  %2077 = vmatpush.bf16.msrb.mxu3 %v6234_v17 }
 0x365   :  { %1875 = vmatmul.bf16.vlgmr.msra.gmra.mxu0 %v1863_v27  ;;  %1901 = vmatmul.bf16.vlgmr.msrb.gmra.mxu2 %v1863_v27 }
 0x366   :  { %2034 = vmatpush.bf16.msra.mxu0 %v4358_v3  ;;  %2060 = vmatpush.bf16.msrb.mxu2 %v4392_v56 }
 0x368   :  { %2052 = vmatpush.bf16.msra.mxu1 %v6235_v58  ;;  %2078 = vmatpush.bf16.msrb.mxu3 %v6236_v61 }
 0x36a   :  { %2035 = vmatpush.bf16.msra.mxu0 %v4361_v12  ;;  %2061 = vmatpush.bf16.msrb.mxu2 %v4404_v5 }
 0x36c   :  { %2053 = vmatpush.bf16.msra.mxu1 %v4460_v7  ;;  %2079 = vmatpush.bf16.msrb.mxu3 %v4447_v50 }
 0x36e   :  { %2036 = vmatpush.bf16.msra.mxu0 %v4377_v35  ;;  %2062 = vmatpush.bf16.msrb.mxu2 %v4418_v18 }
 0x370   :  { %2054 = vmatpush.bf16.msra.mxu1 %v4469_v24  ;;  %2080 = vmatpush.bf16.msrb.mxu3 %v6237_v0 }
 0x372   :  { %2037 = vmatpush.bf16.msra.mxu0 %v4388_v52  ;;  %2063 = vmatpush.bf16.msrb.mxu2 %v6179_v30 }
 0x373   :  { %2055 = vmatmul.bf16.vlgmr.msra.gmra.mxu1 %v1863_v27  ;;  %2081 = vmatmul.bf16.vlgmr.msrb.gmra.mxu3 %v1863_v27 }
 0x374   :  { %2171 = vmatpush.bf16.msrb.mxu1 %v6238_v26  ;;  %2197 = vmatpush.bf16.msra.mxu3 %v6239_v14 }
 0x375   :  { %1927 = vmatmul.bf16.vlgmr.msrb.gmra.mxu0 %v1863_v27  ;;  %1953 = vmatmul.bf16.vlgmr.msra.gmra.mxu2 %v1863_v27 }
 0x376   :  { %2038 = vmatpush.bf16.msra.mxu0 %v6182_v41  ;;  %2064 = vmatpush.bf16.msrb.mxu2 %v6183_v13 }
 0x378   :  { %2172 = vmatpush.bf16.msrb.mxu1 %v6240_v55  ;;  %2198 = vmatpush.bf16.msra.mxu3 %v6241_v53 }
 0x37a   :  { %2039 = vmatpush.bf16.msra.mxu0 %v6186_v48  ;;  %2065 = vmatpush.bf16.msrb.mxu2 %v6187_v1 }
 0x37c   :  { %2173 = vmatpush.bf16.msrb.mxu1 %v6242_v19  ;;  %2199 = vmatpush.bf16.msra.mxu3 %v6243_v34 }
 0x37e   :  { %2040 = vmatpush.bf16.msra.mxu0 %v6190_v31  ;;  %2066 = vmatpush.bf16.msrb.mxu2 %v6375_v16 }
 0x380   :  { %2174 = vmatpush.bf16.msrb.mxu1 %v6376_v6  ;;  %2200 = vmatpush.bf16.msra.mxu3 %v6377_v47 }
 0x382   :  { %2041 = vmatpush.bf16.msra.mxu0 %v6378_v2  ;;  %2067 = vmatpush.bf16.msrb.mxu2 %v6379_v46  ;;  %v6438_v2 = vld [vmem:[#allocation79_spill] sm:$0xff] }
 0x383   :  { %v6445_v6 = vperm.slane %v6438_v2, 0 }
 0x384   :  { %2175 = vmatpush.bf16.msrb.mxu1 %v6380_v62  ;;  %2201 = vmatpush.bf16.msra.mxu3 %v6381_v25 }
 0x385   :  { %2042 = vmatmul.bf16.vlgmr.msra.gmra.mxu0 %v1863_v27  ;;  %2068 = vmatmul.bf16.vlgmr.msrb.gmra.mxu2 %v1863_v27  ;;  %v6400_v27 = vld [vmem:[#allocation71_spill] sm:$0xff] }
 0x386   :  { %2158 = vmatpush.bf16.msrb.mxu0 %v6382_v15  ;;  %2184 = vmatpush.bf16.msra.mxu2 %v6383_v8 }
 0x388   :  { %2176 = vmatpush.bf16.msrb.mxu1 %v6384_v63  ;;  %2202 = vmatpush.bf16.msra.mxu3 %v6385_v54 }
 0x38a   :  { %2159 = vmatpush.bf16.msrb.mxu0 %v6386_v23  ;;  %2185 = vmatpush.bf16.msra.mxu2 %v6387_v22  ;;  %v6436_v22 = vld [vmem:[#allocation27_spill] sm:$0xff] }
 0x38c   :  { %2177 = vmatpush.bf16.msrb.mxu1 %v6388_v49  ;;  %2203 = vmatpush.bf16.msra.mxu3 %v6389_v40 }
 0x38e   :  { %2160 = vmatpush.bf16.msrb.mxu0 %v6390_v36  ;;  %2186 = vmatpush.bf16.msra.mxu2 %v6391_v39  ;;  %v6401_v36 = vld [vmem:[#allocation72_spill] sm:$0xff]  ;;  %v6402_v39 = vld [vmem:[#allocation61_spill] sm:$0xff] }
 0x390   :  { %2178 = vmatpush.bf16.msrb.mxu1 %v6392_v28  ;;  %2204 = vmatpush.bf16.msra.mxu3 %v6393_v59  ;;  %v6403_v28 = vld [vmem:[#allocation62_spill] sm:$0xff]  ;;  %v6404_v59 = vld [vmem:[#allocation76_spill] sm:$0xff] }
 0x392   :  { %2161 = vmatpush.bf16.msrb.mxu0 %v6396_v43  ;;  %2187 = vmatpush.bf16.msra.mxu2 %v6397_v42  ;;  %v6407_v43 = vld [vmem:[#allocation66_spill] sm:$0xff]  ;;  %v6408_v42 = vld [vmem:[#allocation81_spill] sm:$0xff] }
 0x394   :  { %2223 = vmatpush.bf16.msra.mxu1 %v6394_v21  ;;  %2249 = vmatpush.bf16.msrb.mxu3 %v6395_v9  ;;  %v6405_v21 = vld [vmem:[#allocation77_spill] sm:$0xff] }
 0x395   :  { %v6406_v9 = vld [vmem:[#allocation65_spill] sm:$0xff] }
 0x396   :  { %2162 = vmatpush.bf16.msrb.mxu0 %v6400_v27  ;;  %2188 = vmatpush.bf16.msra.mxu2 %v6401_v36  ;;  %v6411_v27 = vld [vmem:[#allocation70_spill] sm:$0xff]  ;;  %v6412_v36 = vld [vmem:[#allocation85_spill] sm:$0xff] }
 0x398   :  { %2224 = vmatpush.bf16.msra.mxu1 %v6398_v37  ;;  %2250 = vmatpush.bf16.msrb.mxu3 %v6399_v57  ;;  %v6409_v37 = vld [vmem:[#allocation82_spill] sm:$0xff]  ;;  %v6410_v57 = vld [vmem:[#allocation69_spill] sm:$0xff] }
 0x39a   :  { %2163 = vmatpush.bf16.msrb.mxu0 %v6404_v59  ;;  %2189 = vmatpush.bf16.msra.mxu2 %v6405_v21  ;;  %v6415_v59 = vld [vmem:[#allocation88_spill] sm:$0xff]  ;;  %v6416_v21 = vld [vmem:[#allocation73_spill] sm:$0xff] }
 0x39c   :  { %2225 = vmatpush.bf16.msra.mxu1 %v6402_v39  ;;  %2251 = vmatpush.bf16.msrb.mxu3 %v6403_v28  ;;  %v6413_v39 = vld [vmem:[#allocation86_spill] sm:$0xff]  ;;  %v6414_v28 = vld [vmem:[#allocation87_spill] sm:$0xff] }
 0x39e   :  { %2164 = vmatpush.bf16.msrb.mxu0 %v6408_v42  ;;  %2190 = vmatpush.bf16.msra.mxu2 %v6409_v37  ;;  %v6419_v42 = vld [vmem:[#allocation92_spill] sm:$0xff]  ;;  %v6420_v37 = vld [vmem:[#allocation78_spill] sm:$0xff] }
 0x3a0   :  { %2226 = vmatpush.bf16.msra.mxu1 %v6406_v9  ;;  %2252 = vmatpush.bf16.msrb.mxu3 %v6407_v43  ;;  %v6417_v9 = vld [vmem:[#allocation75_spill] sm:$0xff]  ;;  %v6418_v43 = vld [vmem:[#allocation90_spill] sm:$0xff] }
 0x3a2   :  { %2165 = vmatpush.bf16.msrb.mxu0 %v6412_v36  ;;  %2191 = vmatpush.bf16.msra.mxu2 %v6413_v39  ;;  %v6423_v36 = vld [vmem:[#allocation95_spill] sm:$0xff] }
 0x3a3   :  { %v6424_v39 = vld [vmem:[#allocation83_spill] sm:$0xff] }
 0x3a4   :  { %2227 = vmatpush.bf16.msra.mxu1 %v6410_v57  ;;  %2253 = vmatpush.bf16.msrb.mxu3 %v6411_v27  ;;  %v6421_v57 = vld [vmem:[#allocation80_spill] sm:$0xff]  ;;  %v6422_v27 = vld [vmem:[#allocation94_spill] sm:$0xff] }
 0x3a6   :  { %2210 = vmatpush.bf16.msra.mxu0 %v6414_v28  ;;  %2236 = vmatpush.bf16.msrb.mxu2 %v6415_v59  ;;  %v6425_v28 = vld [vmem:[#allocation84_spill] sm:$0xff]  ;;  %v6426_v59 = vld [vmem:[#allocation97_spill] sm:$0xff] }
 0x3a8   :  { %2228 = vmatpush.bf16.msra.mxu1 %v6416_v21  ;;  %2254 = vmatpush.bf16.msrb.mxu3 %v6417_v9  ;;  %v6427_v21 = vld [vmem:[#allocation99_spill] sm:$0xff]  ;;  %v6428_v9 = vld [vmem:[#allocation101_spill] sm:$0xff] }
 0x3aa   :  { %2211 = vmatpush.bf16.msra.mxu0 %v6418_v43  ;;  %2237 = vmatpush.bf16.msrb.mxu2 %v6419_v42  ;;  %v6429_v43 = vld [vmem:[#allocation102_spill] sm:$0xff]  ;;  %v6430_v42 = vld [vmem:[#allocation103_spill] sm:$0xff] }
 0x3ac   :  { %2229 = vmatpush.bf16.msra.mxu1 %v6420_v37  ;;  %2255 = vmatpush.bf16.msrb.mxu3 %v6421_v57  ;;  %v6431_v37 = vld [vmem:[#allocation104_spill] sm:$0xff]  ;;  %v6432_v57 = vld [vmem:[#allocation105_spill] sm:$0xff] }
 0x3ae   :  { %2212 = vmatpush.bf16.msra.mxu0 %v6422_v27  ;;  %2238 = vmatpush.bf16.msrb.mxu2 %v6423_v36  ;;  %v6433_v27 = vld [vmem:[#allocation106_spill] sm:$0xff]  ;;  %v6434_v36 = vld [vmem:[#allocation108_spill] sm:$0xff] }
 0x3b0   :  { %2230 = vmatpush.bf16.msra.mxu1 %v6424_v39  ;;  %2256 = vmatpush.bf16.msrb.mxu3 %v6425_v28  ;;  %v6435_v39 = vld [vmem:[#allocation109_spill] sm:$0xff] }
 0x3b2   :  { %2213 = vmatpush.bf16.msra.mxu0 %v6426_v59  ;;  %2239 = vmatpush.bf16.msrb.mxu2 %v6427_v21 }
 0x3b6   :  { %2214 = vmatpush.bf16.msra.mxu0 %v6428_v9  ;;  %2240 = vmatpush.bf16.msrb.mxu2 %v6429_v43 }
 0x3ba   :  { %2215 = vmatpush.bf16.msra.mxu0 %v6430_v42  ;;  %2241 = vmatpush.bf16.msrb.mxu2 %v6431_v37 }
 0x3be   :  { %2216 = vmatpush.bf16.msra.mxu0 %v6432_v57  ;;  %2242 = vmatpush.bf16.msrb.mxu2 %v6433_v27  ;;  %v6437_v57 = vld [vmem:[#allocation20_spill] sm:$0xff] }
 0x3c2   :  { %2217 = vmatpush.bf16.msra.mxu0 %v6434_v36  ;;  %2243 = vmatpush.bf16.msrb.mxu2 %v6435_v39 }
 0x3d0   :  { %v1889_v28 = vpop.f32.mrf.mxu1 }
 0x3d6   :  { %v1915_v59 = vpop.f32.mrf.mxu3 }
 0x3d8   :  { %v1891_v40 = vpop.f32.mrf.mxu1 }
 0x3d9   :  { %v6439_v40 = vperm.slane %v6438_v2, 1 }
 0x3de   :  { %v1917_v21 = vpop.f32.mrf.mxu3 }
 0x3df   :  { %v6440_v21 = vld [vmem:[#allocation93_spill] sm:$0xff] }
 0x3e0   :  { %v1941_v49 = vpop.f32.mrf.mxu1  ;;  %v5323_v25 = vadd.f32 %v6440_v21, %v6439_v40 }
 0x3e2   :  { %v1876_v9 = vpop.f32.mrf.mxu0  ;;  %6441 = vst [vmem:[#allocation15_spill] sm:$0xff] %v5323_v25 }
 0x3e3   :  { %v1877_v43 = vadd.f32 %v1876_v9, %v6436_v22 }
 0x3e5   :  { %v1890_v23 = vadd.f32 %v1889_v28, %v1877_v43 }
 0x3e6   :  { %v1967_v42 = vpop.f32.mrf.mxu3 }
 0x3e7   :  { %v3763_v54 = vmul.f32 -1.442695, %v1890_v23 }
 0x3e8   :  { %v1943_v37 = vpop.f32.mrf.mxu1  ;;  %v1902_v63 = vpop.f32.mrf.mxu2 }
 0x3e9   :  { %4018 = vpow2.f32 %v3763_v54  ;;  %v1903_v27 = vadd.f32 %v1902_v63, %v6437_v57  ;;  %v6442_v37 = vperm.slane %v6438_v2, 3 }
 0x3ea   :  { %v1878_v8 = vpop.f32.mrf.mxu0 }
 0x3eb   :  { %v1916_v36 = vadd.f32 %v1915_v59, %v1903_v27  ;;  %v6443_v27 = vld [vmem:[#allocation91_spill] sm:$0xff] }
 0x3ec   :  { %v5332_v40 = vadd.f32 %v6443_v27, %v6442_v37 }
 0x3ed   :  { %v3764_v15 = vmul.f32 -1.442695, %v1916_v36 }
 0x3ee   :  { %v1969_v39 = vpop.f32.mrf.mxu3 }
 0x3ef   :  { %v4019_v46 = vpop.eup %4018  ;;  %4020 = vpow2.f32 %v3764_v15 }
 0x3f0   :  { %v5325_v9 = vadd.f32 1.0, %v4019_v46  ;;  %v2056_v28 = vpop.f32.mrf.mxu1  ;;  %v1904_v23 = vpop.f32.mrf.mxu2 }
 0x3f1   :  { %v2087_v43 = vadd.f32 %v2056_v28, %v5323_v25  ;;  %v6444_v28 = vld [vmem:[#allocation23_spill] sm:$0xff] }
 0x3f2   :  { %4022 = vrcp.f32 %v5325_v9  ;;  %v1928_v63 = vpop.f32.mrf.mxu0  ;;  %vm1980_vm8 = vweird.f32 %v5325_v9 }
 0x3f3   :  { %v3767_v8 = vmul.f32 -1.442695, %v2087_v43  ;;  %v1929_v62 = vadd.f32 %v1928_v63, %v6290_v10 }
 0x3f5   :  { %v4021_v54 = vpop.eup %4020  ;;  %4024 = vpow2.f32 %v3767_v8 }
 0x3f6   :  { %v1993_v36 = vadd.f32 1.0, %v4021_v54  ;;  %v2082_v39 = vpop.f32.mrf.mxu3 }
 0x3f7   :  { %v2089_v25 = vadd.f32 %v2082_v39, %v5332_v40 }
 0x3f8   :  { %v4023_v59 = vpop.eup %4022  ;;  %4026 = vrcp.f32 %v1993_v36  ;;  %v2058_v46 = vpop.f32.mrf.mxu1  ;;  %v2005_v63 = vand.u32 2147483648, %v1993_v36  ;;  %vm1999_vm9 = vweird.f32 %v1993_v36 }
 0x3f9   :  { %v1954_v15 = vpop.f32.mrf.mxu2  ;;  %v1976_v21 = vmul.f32 %v4023_v59, %v5325_v9  ;;  %v3768_v31 = vmul.f32 -1.442695, %v2089_v25  ;;  %vm1981_vm6 = vweird.f32 %v4023_v59 }
 0x3fa   :  { %v1955_v23 = vadd.f32 %v1954_v15, %v6444_v28  ;;  %v1930_v43 = vpop.f32.mrf.mxu0  ;;  %v6446_v15 = vld [vmem:[#allocation74_spill] sm:$0xff]  ;;  %vm5350_vm10 = vmor %vm1980_vm8, %vm1981_vm6 }
 0x3fb   :  { %v4025_v57 = vpop.eup %4024  ;;  %v1977_v8 = vsub.f32 1.0, %v1976_v21  ;;  %v5343_v28 = vadd.f32 %v6446_v15, %v6445_v6  ;;  %v1984_v6 = vand.u32 2147483647, %v5325_v9 }
 0x3fc   :  { %v1968_v54 = vadd.f32 %v1967_v42, %v1955_v23  ;;  %v5337_v22 = vadd.f32 1.0, %v4025_v57  ;;  %v1942_v42 = vadd.f32 %v1941_v49, %v1929_v62  ;;  %v1986_v57 = vand.u32 2147483648, %v5325_v9 }
 0x3fd   :  { %v1978_v27 = vmul.f32 %v4023_v59, %v1977_v8  ;;  %vm1985_vm13 = vcmp.eq.f32.partialorder %v1984_v6, 8.507059e+37 }
 0x3fe   :  { %v3765_v16 = vmul.f32 -1.442695, %v1968_v54  ;;  %v4027_v37 = vpop.eup %4026  ;;  %v2084_v46 = vpop.f32.mrf.mxu3  ;;  %vm2118_vm3 = vweird.f32 %v5337_v22 }
 0x3ff   :  { %v1995_v47 = vmul.f32 %v4027_v37, %v1993_v36  ;;  %v1979_v21 = vadd.f32 %v4023_v59, %v1978_v27  ;;  %vm2000_vm7 = vweird.f32 %v4027_v37 }
 0x400   :  { %4028 = vpow2.f32 %v3765_v16  ;;  %v2003_v16 = vand.u32 2147483647, %v1993_v36  ;;  %vm2001_vm11 = vmor %vm1999_vm9, %vm2000_vm7 }
 0x401   :  { %v1956_v39 = vpop.f32.mrf.mxu2  ;;  %v1996_v43 = vsub.f32 1.0, %v1995_v47  ;;  %4030 = vrcp.f32 %v5337_v22  ;;  %v1983_v27 = vsel %vm5350_vm10, %v4023_v59, %v1979_v21 }
 0x402   :  { %4032 = vpow2.f32 %v3768_v31  ;;  %v2043_v25 = vpop.f32.mrf.mxu0  ;;  %v2006_v31 = vor.u32 1.1754944e-38, %v2005_v63  ;;  %v1987_v39 = vor.u32 1.1754944e-38, %v1986_v57  ;;  %vm2004_vm12 = vcmp.eq.f32.partialorder %v2003_v16, 8.507059e+37 }
 0x403   :  { %v1997_v23 = vmul.f32 %v4027_v37, %v1996_v43  ;;  %v2086_v8 = vadd.f32 %v2043_v25, %v5343_v28  ;;  %4034 = vtanh.f32 %v1942_v42 }
 0x405   :  { %v1998_v49 = vadd.f32 %v4027_v37, %v1997_v23  ;;  %v3766_v54 = vmul.f32 -1.442695, %v2086_v8  ;;  %v1988_v23 = vsel %vm1985_vm13, %v1987_v39, %v1983_v27 }
 0x406   :  { %v4029_v47 = vpop.eup %4028 }
 0x407   :  { %v2013_v46 = vadd.f32 1.0, %v4029_v47  ;;  %v5356_v15 = vpop.eup %4030  ;;  %v2002_v43 = vsel %vm2001_vm11, %v4027_v37, %v1998_v49  ;;  %4036 = vpow2.f32 %v3766_v54 }
 0x408   :  { %v4033_v9 = vpop.eup %4032  ;;  %v2007_v36 = vsel %vm2004_vm12, %v2006_v31, %v2002_v43  ;;  %v2114_v42 = vmul.f32 %v5356_v15, %v5337_v22  ;;  %vm2119_vm0 = vweird.f32 %v5356_v15 }
 0x409   :  { %4038 = vrcp.f32 %v2013_v46  ;;  %v2069_v25 = vpop.f32.mrf.mxu2  ;;  %v2029_v63 = vmul.f32 %v2007_v36, %v5189_v38  ;;  %v4035_v59 = vpop.eup %4034  ;;  %v5361_v21 = vadd.f32 1.0, %v4033_v9  ;;  %v2025_v38 = vand.u32 2147483648, %v2013_v46  ;;  %v6450_v36 = vld [vmem:[#allocation96_spill] sm:$0xff]  ;;  %vm5382_vm4 = vmor %vm2118_vm3, %vm2119_vm0 }
 0x40a   :  { %v2045_v8 = vpop.f32.mrf.mxu0  ;;  %v2030_v47 = vmul.f32 %v4035_v59, %v1988_v23  ;;  %v2115_v16 = vsub.f32 1.0, %v2114_v42  ;;  %v2023_v43 = vand.u32 2147483647, %v2013_v46  ;;  %v6449_v9 = vperm.slane %v6438_v2, 2 }
 0x40b   :  { %4040 = vrcp.f32 %v5361_v21  ;;  %vm2019_vm15 = vweird.f32 %v2013_v46  ;;  %vm2138_vm11 = vweird.f32 %v5361_v21 }
 0x40c   :  { %v5363_v62 = vadd.f32 %v2030_v47, %v2029_v63  ;;  %v2116_v27 = vmul.f32 %v5356_v15, %v2115_v16  ;;  %v5371_v23 = vadd.f32 %v6450_v36, %v6449_v9  ;;  %vm2024_vm2 = vcmp.eq.f32.partialorder %v2023_v43, 8.507059e+37 }
 0x40d   :  { %v4037_v57 = vpop.eup %4036 }
 0x40e   :  { %v2093_v6 = vadd.f32 1.0, %v4037_v57  ;;  %6451 = vst [vmem:[#allocation19_spill] sm:$0xff] %v5371_v23  ;;  %v2088_v59 = vadd.f32 %v2069_v25, %v5371_v23  ;;  %v2117_v47 = vadd.f32 %v5356_v15, %v2116_v27  ;;  %v2026_v57 = vor.u32 1.1754944e-38, %v2025_v38 }
 0x40f   :  { %v4039_v37 = vpop.eup %4038  ;;  %v2122_v27 = vand.u32 2147483647, %v5337_v22 }
 0x410   :  { %v2015_v49 = vmul.f32 %v4039_v37, %v2013_v46  ;;  %4042 = vrcp.f32 %v2093_v6  ;;  %vm2020_vm14 = vweird.f32 %v4039_v37  ;;  %v2105_v9 = vand.u32 2147483648, %v2093_v6 }
 0x411   :  { %v2071_v54 = vpop.f32.mrf.mxu2  ;;  %4044 = vtanh.f32 %v5363_v62  ;;  %v5373_v42 = vpop.eup %4040  ;;  %vm2021_vm1 = vmor %vm2019_vm15, %vm2020_vm14  ;;  %v2103_v36 = vand.u32 2147483647, %v2093_v6  ;;  %vm2099_vm6 = vweird.f32 %v2093_v6  ;;  %vm2123_vm7 = vcmp.eq.f32.partialorder %v2122_v27, 8.507059e+37 }
 0x412   :  { %v2016_v31 = vsub.f32 1.0, %v2015_v49  ;;  %v2124_v54 = vand.u32 2147483648, %v5337_v22  ;;  %v2134_v46 = vmul.f32 %v5373_v42, %v5361_v21  ;;  %4046 = vtanh.f32 %v2088_v59 }
 0x413   :  { %v2106_v22 = vor.u32 1.1754944e-38, %v2105_v9  ;;  %vm2104_vm9 = vcmp.eq.f32.partialorder %v2103_v36, 8.507059e+37  ;;  %v2149_v59 = vrot.slane %v5215_v60, 6  ;;  %vm2139_vm10 = vweird.f32 %v5373_v42  ;;  %v6457_v36 = vld [vmem:[#allocation36_spill] sm:$0xff] }
 0x414   :  { %v2017_v39 = vmul.f32 %v4039_v37, %v2016_v31  ;;  %v2125_v23 = vor.u32 1.1754944e-38, %v2124_v54  ;;  %v2142_v60 = vand.u32 2147483647, %v5361_v21  ;;  %vm2140_vm12 = vmor %vm2138_vm11, %vm2139_vm10 }
 0x416   :  { %v2018_v63 = vadd.f32 %v4039_v37, %v2017_v39  ;;  %v4043_v8 = vpop.eup %4042  ;;  %vm2143_vm13 = vcmp.eq.f32.partialorder %v2142_v60, 8.507059e+37  ;;  %v6472_v60 = vld [vmem:[#allocation51_spill] sm:$0xff] }
 0x417   :  { %v2095_v16 = vmul.f32 %v4043_v8, %v2093_v6  ;;  %v4045_v2 = vpop.eup %4044  ;;  %vm2100_vm5 = vweird.f32 %v4043_v8 }
 0x418   :  { %v2022_v49 = vsel %vm2021_vm1, %v4039_v37, %v2018_v63  ;;  %v2121_v37 = vsel %vm5382_vm4, %v5356_v15, %v2117_v47  ;;  %vm2101_vm8 = vmor %vm2099_vm6, %vm2100_vm5  ;;  %v4047_v47 = vpop.eup %4046 }
 0x419   :  { %v2027_v31 = vsel %vm2024_vm2, %v2026_v57, %v2022_v49  ;;  %v2096_v25 = vsub.f32 1.0, %v2095_v16  ;;  %v2135_v57 = vsub.f32 1.0, %v2134_v46  ;;  %v2126_v16 = vsel %vm2123_vm7, %v2125_v23, %v2121_v37 }
 0x41a   :  { %v2033_v38 = vmul.f32 %v4045_v2, %v2027_v31  ;;  %v2151_v46 = vmul.f32 %v2149_v59, %v2126_v16  ;;  %v6462_v16 = vld [vmem:[#allocation55_spill] sm:$0xff] }
 0x41b   :  { %v2097_v43 = vmul.f32 %v4043_v8, %v2096_v25  ;;  %v2136_v2 = vmul.f32 %v5373_v42, %v2135_v57  ;;  %v6459_v57 = vld [vmem:[#allocation46_spill] sm:$0xff]  ;;  %v6464_v59 = vld [vmem:[#allocation47_spill] sm:$0xff] }
 0x41c   :  { %v2157_v63 = vpack.c.bf16 %v2033_v38, %v2033_v38 }
 0x41d   :  { %v2098_v49 = vadd.f32 %v4043_v8, %v2097_v43  ;;  %v2137_v23 = vadd.f32 %v5373_v42, %v2136_v2  ;;  %v6456_v43 = vld [vmem:[#allocation26_spill] sm:$0xff]  ;;  %v6466_v2 = vld [vmem:[#allocation59_spill] sm:$0xff] }
 0x41e   :  { %2179 = vmatmul.bf16.vlgmr.msrb.gmra.mxu1 %v2157_v63  ;;  %2205 = vmatmul.bf16.vlgmr.msra.gmra.mxu3 %v2157_v63 }
 0x41f   :  { %2338 = vmatpush.bf16.msrb.mxu1 %v6225_v44  ;;  %2364 = vmatpush.bf16.msra.mxu3 %v6226_v32  ;;  %v2102_v15 = vsel %vm2101_vm8, %v4043_v8, %v2098_v49  ;;  %v2144_v8 = vand.u32 2147483648, %v5361_v21  ;;  %v2141_v39 = vsel %vm2140_vm12, %v5373_v42, %v2137_v23  ;;  %v6454_v21 = vld [vmem:[#allocation43_spill] sm:$0xff]  ;;  %v6455_v42 = vld [vmem:[#allocation44_spill] sm:$0xff]  ;;  %v6460_v49 = vld [vmem:[#allocation30_spill] sm:$0xff] }
 0x420   :  { %v2107_v54 = vsel %vm2104_vm9, %v2106_v22, %v2102_v15  ;;  %v6461_v22 = vld [vmem:[#allocation39_spill] sm:$0xff]  ;;  %v6463_v15 = vld [vmem:[#allocation56_spill] sm:$0xff] }
 0x421   :  { %v2152_v6 = vmul.f32 %v4047_v47, %v2107_v54  ;;  %v2145_v25 = vor.u32 1.1754944e-38, %v2144_v8  ;;  %v6465_v47 = vld [vmem:[#allocation48_spill] sm:$0xff]  ;;  %v6470_v23 = vld [vmem:[#allocation63_spill] sm:$0xff] }
 0x422   :  { %v6467_v54 = vld [vmem:[#allocation60_spill] sm:$0xff] }
 0x423   :  { %2339 = vmatpush.bf16.msrb.mxu1 %v6227_v51  ;;  %2365 = vmatpush.bf16.msra.mxu3 %v6228_v33  ;;  %v5396_v31 = vadd.f32 %v2152_v6, %v2151_v46  ;;  %v2146_v38 = vsel %vm2143_vm13, %v2145_v25, %v2141_v39  ;;  %v6468_v46 = vld [vmem:[#allocation49_spill] sm:$0xff]  ;;  %v6469_v6 = vld [vmem:[#allocation50_spill] sm:$0xff]  ;;  %v6471_v8 = vld [vmem:[#allocation64_spill] sm:$0xff] }
 0x424   :  { %v6473_v39 = vld [vmem:[#allocation52_spill] sm:$0xff]  ;;  %v6474_v25 = vld [vmem:[#allocation53_spill] sm:$0xff] }
 0x425   :  { %4048 = vtanh.f32 %v5396_v31 }
 0x427   :  { %2340 = vmatpush.bf16.msrb.mxu1 %v6229_v20  ;;  %2366 = vmatpush.bf16.msra.mxu3 %v6230_v45 }
 0x42b   :  { %2341 = vmatpush.bf16.msrb.mxu1 %v6231_v11  ;;  %2367 = vmatpush.bf16.msra.mxu3 %v6232_v4  ;;  %v4049_v27 = vpop.eup %4048 }
 0x42c   :  { %v2155_v9 = vmul.f32 %v4049_v27, %v2146_v38  ;;  %v6475_v27 = vld [vmem:[#allocation54_spill] sm:$0xff]  ;;  %v6476_v38 = vld [vmem:[#allocation67_spill] sm:$0xff] }
 0x42e   :  { %2231 = vmatmul.bf16.vlgmr.msra.gmra.mxu1 %v2157_v63  ;;  %2257 = vmatmul.bf16.vlgmr.msrb.gmra.mxu3 %v2157_v63  ;;  %v2156_v37 = vpack.c.bf16 %v2155_v9, %v2155_v9  ;;  %v6458_v63 = vld [vmem:[#allocation45_spill] sm:$0xff]  ;;  %v6477_v9 = vld [vmem:[#allocation68_spill] sm:$0xff] }
 0x42f   :  { %2342 = vmatpush.bf16.msrb.mxu1 %v6233_v29  ;;  %2368 = vmatpush.bf16.msra.mxu3 %v6234_v17 }
 0x430   :  { %2166 = vmatmul.bf16.vlgmr.msrb.gmra.mxu0 %v2156_v37  ;;  %2192 = vmatmul.bf16.vlgmr.msra.gmra.mxu2 %v2156_v37 }
 0x431   :  { %2325 = vmatpush.bf16.msrb.mxu0 %v4358_v3  ;;  %2351 = vmatpush.bf16.msra.mxu2 %v4392_v56 }
 0x433   :  { %2343 = vmatpush.bf16.msrb.mxu1 %v6235_v58  ;;  %2369 = vmatpush.bf16.msra.mxu3 %v6236_v61 }
 0x435   :  { %2326 = vmatpush.bf16.msrb.mxu0 %v4361_v12  ;;  %2352 = vmatpush.bf16.msra.mxu2 %v4404_v5 }
 0x437   :  { %2344 = vmatpush.bf16.msrb.mxu1 %v4460_v7  ;;  %2370 = vmatpush.bf16.msra.mxu3 %v4447_v50 }
 0x439   :  { %2327 = vmatpush.bf16.msrb.mxu0 %v4377_v35  ;;  %2353 = vmatpush.bf16.msra.mxu2 %v4418_v18 }
 0x43b   :  { %2345 = vmatpush.bf16.msrb.mxu1 %v4469_v24  ;;  %2371 = vmatpush.bf16.msra.mxu3 %v6237_v0 }
 0x43d   :  { %2328 = vmatpush.bf16.msrb.mxu0 %v4388_v52  ;;  %2354 = vmatpush.bf16.msra.mxu2 %v6179_v30 }
 0x43e   :  { %2346 = vmatmul.bf16.vlgmr.msrb.gmra.mxu1 %v2156_v37  ;;  %2372 = vmatmul.bf16.vlgmr.msra.gmra.mxu3 %v2156_v37 }
 0x43f   :  { %2483 = vmatpush.bf16.msra.mxu1 %v6238_v26  ;;  %2509 = vmatpush.bf16.msrb.mxu3 %v6239_v14 }
 0x440   :  { %2218 = vmatmul.bf16.vlgmr.msra.gmra.mxu0 %v2156_v37  ;;  %2244 = vmatmul.bf16.vlgmr.msrb.gmra.mxu2 %v2156_v37 }
 0x441   :  { %2329 = vmatpush.bf16.msrb.mxu0 %v6182_v41  ;;  %2355 = vmatpush.bf16.msra.mxu2 %v6183_v13 }
 0x443   :  { %2484 = vmatpush.bf16.msra.mxu1 %v6240_v55  ;;  %2510 = vmatpush.bf16.msrb.mxu3 %v6241_v53 }
 0x445   :  { %2330 = vmatpush.bf16.msrb.mxu0 %v6186_v48  ;;  %2356 = vmatpush.bf16.msra.mxu2 %v6187_v1 }
 0x447   :  { %2485 = vmatpush.bf16.msra.mxu1 %v6242_v19  ;;  %2511 = vmatpush.bf16.msrb.mxu3 %v6243_v34 }
 0x449   :  { %2331 = vmatpush.bf16.msrb.mxu0 %v6456_v43  ;;  %2357 = vmatpush.bf16.msra.mxu2 %v6457_v36 }
 0x44b   :  { %2486 = vmatpush.bf16.msra.mxu1 %v6454_v21  ;;  %2512 = vmatpush.bf16.msrb.mxu3 %v6455_v42 }
 0x44d   :  { %2332 = vmatpush.bf16.msrb.mxu0 %v6460_v49  ;;  %2358 = vmatpush.bf16.msra.mxu2 %v6461_v22 }
 0x44f   :  { %2487 = vmatpush.bf16.msra.mxu1 %v6458_v63  ;;  %2513 = vmatpush.bf16.msrb.mxu3 %v6459_v57 }
 0x450   :  { %2333 = vmatmul.bf16.vlgmr.msrb.gmra.mxu0 %v2156_v37  ;;  %2359 = vmatmul.bf16.vlgmr.msra.gmra.mxu2 %v2156_v37  ;;  %v6478_v37 = vld [vmem:[#allocation57_spill] sm:$0xff] }
 0x451   :  { %2470 = vmatpush.bf16.msra.mxu0 %v6462_v16  ;;  %2496 = vmatpush.bf16.msrb.mxu2 %v6463_v15 }
 0x453   :  { %2488 = vmatpush.bf16.msra.mxu1 %v6464_v59  ;;  %2514 = vmatpush.bf16.msrb.mxu3 %v6465_v47  ;;  %v6516_v47 = vld [vmem:[#allocation27_spill] sm:$0xff] }
 0x455   :  { %2471 = vmatpush.bf16.msra.mxu0 %v6466_v2  ;;  %2497 = vmatpush.bf16.msrb.mxu2 %v6467_v54 }
 0x457   :  { %2489 = vmatpush.bf16.msra.mxu1 %v6468_v46  ;;  %2515 = vmatpush.bf16.msrb.mxu3 %v6469_v6  ;;  %v6479_v46 = vld [vmem:[#allocation58_spill] sm:$0xff]  ;;  %v6480_v6 = vld [vmem:[#allocation71_spill] sm:$0xff] }
 0x459   :  { %2472 = vmatpush.bf16.msra.mxu0 %v6470_v23  ;;  %2498 = vmatpush.bf16.msrb.mxu2 %v6471_v8  ;;  %v6481_v23 = vld [vmem:[#allocation72_spill] sm:$0xff]  ;;  %v6482_v8 = vld [vmem:[#allocation61_spill] sm:$0xff] }
 0x45b   :  { %2490 = vmatpush.bf16.msra.mxu1 %v6472_v60  ;;  %2516 = vmatpush.bf16.msrb.mxu3 %v6473_v39  ;;  %v6483_v60 = vld [vmem:[#allocation62_spill] sm:$0xff]  ;;  %v6484_v39 = vld [vmem:[#allocation76_spill] sm:$0xff] }
 0x45d   :  { %2473 = vmatpush.bf16.msra.mxu0 %v6476_v38  ;;  %2499 = vmatpush.bf16.msrb.mxu2 %v6477_v9  ;;  %v6487_v38 = vld [vmem:[#allocation66_spill] sm:$0xff]  ;;  %v6488_v9 = vld [vmem:[#allocation81_spill] sm:$0xff] }
 0x45f   :  { %2535 = vmatpush.bf16.msrb.mxu1 %v6474_v25  ;;  %2561 = vmatpush.bf16.msra.mxu3 %v6475_v27  ;;  %v6485_v25 = vld [vmem:[#allocation77_spill] sm:$0xff] }
 0x460   :  { %v6486_v27 = vld [vmem:[#allocation65_spill] sm:$0xff] }
 0x461   :  { %2474 = vmatpush.bf16.msra.mxu0 %v6480_v6  ;;  %2500 = vmatpush.bf16.msrb.mxu2 %v6481_v23  ;;  %v6491_v6 = vld [vmem:[#allocation70_spill] sm:$0xff]  ;;  %v6492_v23 = vld [vmem:[#allocation85_spill] sm:$0xff] }
 0x463   :  { %2536 = vmatpush.bf16.msrb.mxu1 %v6478_v37  ;;  %2562 = vmatpush.bf16.msra.mxu3 %v6479_v46  ;;  %v6489_v37 = vld [vmem:[#allocation82_spill] sm:$0xff]  ;;  %v6490_v46 = vld [vmem:[#allocation69_spill] sm:$0xff] }
 0x465   :  { %2475 = vmatpush.bf16.msra.mxu0 %v6484_v39  ;;  %2501 = vmatpush.bf16.msrb.mxu2 %v6485_v25  ;;  %v6495_v39 = vld [vmem:[#allocation88_spill] sm:$0xff]  ;;  %v6496_v25 = vld [vmem:[#allocation73_spill] sm:$0xff] }
 0x467   :  { %2537 = vmatpush.bf16.msrb.mxu1 %v6482_v8  ;;  %2563 = vmatpush.bf16.msra.mxu3 %v6483_v60  ;;  %v6493_v8 = vld [vmem:[#allocation86_spill] sm:$0xff]  ;;  %v6494_v60 = vld [vmem:[#allocation87_spill] sm:$0xff] }
 0x469   :  { %2476 = vmatpush.bf16.msra.mxu0 %v6488_v9  ;;  %2502 = vmatpush.bf16.msrb.mxu2 %v6489_v37  ;;  %v6499_v9 = vld [vmem:[#allocation92_spill] sm:$0xff]  ;;  %v6500_v37 = vld [vmem:[#allocation78_spill] sm:$0xff] }
 0x46b   :  { %2538 = vmatpush.bf16.msrb.mxu1 %v6486_v27  ;;  %2564 = vmatpush.bf16.msra.mxu3 %v6487_v38  ;;  %v6497_v27 = vld [vmem:[#allocation75_spill] sm:$0xff]  ;;  %v6498_v38 = vld [vmem:[#allocation90_spill] sm:$0xff] }
 0x46d   :  { %2477 = vmatpush.bf16.msra.mxu0 %v6492_v23  ;;  %2503 = vmatpush.bf16.msrb.mxu2 %v6493_v8  ;;  %v6503_v23 = vld [vmem:[#allocation95_spill] sm:$0xff] }
 0x46e   :  { %v6504_v8 = vld [vmem:[#allocation83_spill] sm:$0xff] }
 0x46f   :  { %2539 = vmatpush.bf16.msrb.mxu1 %v6490_v46  ;;  %2565 = vmatpush.bf16.msra.mxu3 %v6491_v6  ;;  %v6501_v46 = vld [vmem:[#allocation80_spill] sm:$0xff]  ;;  %v6502_v6 = vld [vmem:[#allocation94_spill] sm:$0xff] }
 0x471   :  { %2522 = vmatpush.bf16.msrb.mxu0 %v6494_v60  ;;  %2548 = vmatpush.bf16.msra.mxu2 %v6495_v39  ;;  %v6505_v60 = vld [vmem:[#allocation84_spill] sm:$0xff]  ;;  %v6506_v39 = vld [vmem:[#allocation97_spill] sm:$0xff] }
 0x473   :  { %2540 = vmatpush.bf16.msrb.mxu1 %v6496_v25  ;;  %2566 = vmatpush.bf16.msra.mxu3 %v6497_v27  ;;  %v6507_v25 = vld [vmem:[#allocation99_spill] sm:$0xff]  ;;  %v6508_v27 = vld [vmem:[#allocation101_spill] sm:$0xff] }
 0x475   :  { %2523 = vmatpush.bf16.msrb.mxu0 %v6498_v38  ;;  %2549 = vmatpush.bf16.msra.mxu2 %v6499_v9  ;;  %v6509_v38 = vld [vmem:[#allocation102_spill] sm:$0xff]  ;;  %v6510_v9 = vld [vmem:[#allocation103_spill] sm:$0xff] }
 0x477   :  { %2541 = vmatpush.bf16.msrb.mxu1 %v6500_v37  ;;  %2567 = vmatpush.bf16.msra.mxu3 %v6501_v46  ;;  %v6511_v37 = vld [vmem:[#allocation104_spill] sm:$0xff]  ;;  %v6512_v46 = vld [vmem:[#allocation105_spill] sm:$0xff] }
 0x479   :  { %2524 = vmatpush.bf16.msrb.mxu0 %v6502_v6  ;;  %2550 = vmatpush.bf16.msra.mxu2 %v6503_v23  ;;  %v6513_v6 = vld [vmem:[#allocation106_spill] sm:$0xff]  ;;  %v6514_v23 = vld [vmem:[#allocation108_spill] sm:$0xff] }
 0x47b   :  { %2542 = vmatpush.bf16.msrb.mxu1 %v6504_v8  ;;  %2568 = vmatpush.bf16.msra.mxu3 %v6505_v60  ;;  %v6515_v8 = vld [vmem:[#allocation109_spill] sm:$0xff] }
 0x47d   :  { %2525 = vmatpush.bf16.msrb.mxu0 %v6506_v39  ;;  %2551 = vmatpush.bf16.msra.mxu2 %v6507_v25 }
 0x481   :  { %2526 = vmatpush.bf16.msrb.mxu0 %v6508_v27  ;;  %2552 = vmatpush.bf16.msra.mxu2 %v6509_v38 }
 0x485   :  { %2527 = vmatpush.bf16.msrb.mxu0 %v6510_v9  ;;  %2553 = vmatpush.bf16.msra.mxu2 %v6511_v37 }
 0x489   :  { %2528 = vmatpush.bf16.msrb.mxu0 %v6512_v46  ;;  %2554 = vmatpush.bf16.msra.mxu2 %v6513_v6  ;;  %v6517_v46 = vld [vmem:[#allocation20_spill] sm:$0xff] }
 0x48d   :  { %2529 = vmatpush.bf16.msrb.mxu0 %v6514_v23  ;;  %2555 = vmatpush.bf16.msra.mxu2 %v6515_v8 }
 0x49b   :  { %v2180_v60 = vpop.f32.mrf.mxu1 }
 0x4a1   :  { %v2206_v39 = vpop.f32.mrf.mxu3 }
 0x4a3   :  { %v2182_v54 = vpop.f32.mrf.mxu1 }
 0x4a9   :  { %v2208_v25 = vpop.f32.mrf.mxu3 }
 0x4ab   :  { %v2232_v2 = vpop.f32.mrf.mxu1 }
 0x4ad   :  { %v2167_v27 = vpop.f32.mrf.mxu0 }
 0x4ae   :  { %v2168_v38 = vadd.f32 %v2167_v27, %v6516_v47  ;;  %v6518_v27 = vld [vmem:[#allocation15_spill] sm:$0xff] }
 0x4b0   :  { %v2181_v59 = vadd.f32 %v2180_v60, %v2168_v38 }
 0x4b1   :  { %v2258_v9 = vpop.f32.mrf.mxu3 }
 0x4b2   :  { %v3769_v15 = vmul.f32 -1.442695, %v2181_v59 }
 0x4b3   :  { %v2234_v37 = vpop.f32.mrf.mxu1  ;;  %v2193_v16 = vpop.f32.mrf.mxu2 }
 0x4b4   :  { %4050 = vpow2.f32 %v3769_v15  ;;  %v2194_v6 = vadd.f32 %v2193_v16, %v6517_v46 }
 0x4b5   :  { %v2169_v22 = vpop.f32.mrf.mxu0 }
 0x4b6   :  { %v2207_v23 = vadd.f32 %v2206_v39, %v2194_v6 }
 0x4b8   :  { %v3770_v49 = vmul.f32 -1.442695, %v2207_v23 }
 0x4b9   :  { %v2260_v8 = vpop.f32.mrf.mxu3 }
 0x4ba   :  { %v4051_v57 = vpop.eup %4050  ;;  %4052 = vpow2.f32 %v3770_v49  ;;  %v6519_v49 = vld [vmem:[#allocation23_spill] sm:$0xff] }
 0x4bb   :  { %v2347_v54 = vpop.f32.mrf.mxu1  ;;  %v2265_v25 = vadd.f32 1.0, %v4051_v57  ;;  %v2195_v36 = vpop.f32.mrf.mxu2 }
 0x4bc   :  { %v2382_v63 = vrot.slane %v2347_v54, 6 }
 0x4bd   :  { %4054 = vrcp.f32 %v2265_v25  ;;  %v2219_v38 = vpop.f32.mrf.mxu0  ;;  %vm2271_vm0 = vweird.f32 %v2265_v25 }
 0x4be   :  { %v2390_v60 = vadd.f32 %v2382_v63, %v6518_v27 }
 0x4c0   :  { %v3773_v59 = vmul.f32 -1.442695, %v2390_v60  ;;  %v4053_v37 = vpop.eup %4052  ;;  %v2220_v60 = vadd.f32 %v2219_v38, %v6290_v10  ;;  %v2275_v38 = vand.u32 2147483647, %v2265_v25 }
 0x4c1   :  { %v2284_v47 = vadd.f32 1.0, %v4053_v37  ;;  %v2373_v15 = vpop.f32.mrf.mxu3 }
 0x4c2   :  { %4056 = vpow2.f32 %v3773_v59  ;;  %v2384_v16 = vrot.slane %v2373_v15, 6  ;;  %vm2276_vm5 = vcmp.eq.f32.partialorder %v2275_v38, 8.507059e+37 }
 0x4c3   :  { %v2349_v22 = vpop.f32.mrf.mxu1  ;;  %v4055_v6 = vpop.eup %4054  ;;  %4058 = vrcp.f32 %v2284_v47  ;;  %vm2290_vm1 = vweird.f32 %v2284_v47 }
 0x4c4   :  { %v2245_v23 = vpop.f32.mrf.mxu2  ;;  %v2267_v8 = vmul.f32 %v4055_v6, %v2265_v25  ;;  %v2392_v36 = vadd.f32 %v2384_v16, %v5332_v40  ;;  %vm2272_vm14 = vweird.f32 %v4055_v6 }
 0x4c5   :  { %v2246_v39 = vadd.f32 %v2245_v23, %v6519_v49  ;;  %v2221_v57 = vpop.f32.mrf.mxu0  ;;  %v2233_v23 = vadd.f32 %v2232_v2, %v2220_v60  ;;  %vm5506_vm2 = vmor %vm2271_vm0, %vm2272_vm14 }
 0x4c6   :  { %v2268_v54 = vsub.f32 1.0, %v2267_v8  ;;  %v3774_v22 = vmul.f32 -1.442695, %v2392_v36  ;;  %v2277_v57 = vand.u32 2147483648, %v2265_v25  ;;  %v2296_v8 = vand.u32 2147483648, %v2284_v47 }
 0x4c7   :  { %v2259_v46 = vadd.f32 %v2258_v9, %v2246_v39  ;;  %v2294_v9 = vand.u32 2147483647, %v2284_v47 }
 0x4c8   :  { %v4057_v63 = vpop.eup %4056  ;;  %v2269_v43 = vmul.f32 %v4055_v6, %v2268_v54  ;;  %v2297_v54 = vor.u32 1.1754944e-38, %v2296_v8  ;;  %v2278_v36 = vor.u32 1.1754944e-38, %v2277_v57 }
 0x4c9   :  { %v3771_v27 = vmul.f32 -1.442695, %v2259_v46  ;;  %v4059_v37 = vpop.eup %4058  ;;  %v2375_v59 = vpop.f32.mrf.mxu3  ;;  %v5503_v42 = vadd.f32 1.0, %v4057_v63  ;;  %vm2295_vm4 = vcmp.eq.f32.partialorder %v2294_v9, 8.507059e+37 }
 0x4ca   :  { %v2286_v15 = vmul.f32 %v4059_v37, %v2284_v47  ;;  %v2270_v49 = vadd.f32 %v4055_v6, %v2269_v43  ;;  %vm2291_vm15 = vweird.f32 %v4059_v37 }
 0x4cb   :  { %4060 = vpow2.f32 %v3771_v27  ;;  %vm2292_vm3 = vmor %vm2290_vm1, %vm2291_vm15  ;;  %vm2421_vm11 = vweird.f32 %v5503_v42 }
 0x4cc   :  { %v2247_v21 = vpop.f32.mrf.mxu2  ;;  %v2287_v1 = vsub.f32 1.0, %v2286_v15  ;;  %4062 = vpow2.f32 %v3774_v22 }
 0x4cd   :  { %v2334_v16 = vpop.f32.mrf.mxu0  ;;  %4064 = vrcp.f32 %v5503_v42 }
 0x4ce   :  { %v2288_v39 = vmul.f32 %v4059_v37, %v2287_v1  ;;  %v2381_v46 = vrot.slane %v2334_v16, 6  ;;  %4066 = vtanh.f32 %v2233_v23  ;;  %v2274_v1 = vsel %vm5506_vm2, %v4055_v6, %v2270_v49 }
 0x4cf   :  { %v2279_v15 = vsel %vm2276_vm5, %v2278_v36, %v2274_v1 }
 0x4d0   :  { %v2289_v21 = vadd.f32 %v4059_v37, %v2288_v39  ;;  %v2389_v43 = vadd.f32 %v2381_v46, %v5343_v28 }
 0x4d1   :  { %v4061_v2 = vpop.eup %4060 }
 0x4d2   :  { %v2293_v63 = vsel %vm2292_vm3, %v4059_v37, %v2289_v21  ;;  %v2304_v60 = vadd.f32 1.0, %v4061_v2  ;;  %v3772_v25 = vmul.f32 -1.442695, %v2389_v43  ;;  %v4063_v59 = vpop.eup %4062 }
 0x4d3   :  { %v2298_v47 = vsel %vm2295_vm4, %v2297_v54, %v2293_v63  ;;  %v5513_v23 = vpop.eup %4064  ;;  %v5518_v49 = vadd.f32 1.0, %v4063_v59 }
 0x4d4   :  { %4068 = vrcp.f32 %v2304_v60  ;;  %v2360_v22 = vpop.f32.mrf.mxu2  ;;  %v2320_v16 = vmul.f32 %v2298_v47, %v5363_v62  ;;  %v4067_v39 = vpop.eup %4066  ;;  %v2417_v6 = vmul.f32 %v5513_v23, %v5503_v42  ;;  %v2316_v2 = vand.u32 2147483648, %v2304_v60 }
 0x4d5   :  { %4070 = vpow2.f32 %v3772_v25  ;;  %v2336_v8 = vpop.f32.mrf.mxu0  ;;  %v2321_v46 = vmul.f32 %v4067_v39, %v2279_v15  ;;  %v2314_v1 = vand.u32 2147483647, %v2304_v60  ;;  %v2383_v63 = vrot.slane %v2360_v22, 6  ;;  %v6522_v39 = vld [vmem:[#allocation19_spill] sm:$0xff] }
 0x4d6   :  { %v2418_v27 = vsub.f32 1.0, %v2417_v6  ;;  %4072 = vrcp.f32 %v5518_v49  ;;  %vm2310_vm7 = vweird.f32 %v2304_v60  ;;  %v2317_v59 = vor.u32 1.1754944e-38, %v2316_v2 }
 0x4d7   :  { %v5520_v37 = vadd.f32 %v2321_v46, %v2320_v16  ;;  %vm2315_vm9 = vcmp.eq.f32.partialorder %v2314_v1, 8.507059e+37  ;;  %vm2422_vm10 = vweird.f32 %v5513_v23  ;;  %v2391_v46 = vadd.f32 %v2383_v63, %v6522_v39 }
 0x4d8   :  { %v2419_v36 = vmul.f32 %v5513_v23, %v2418_v27  ;;  %vm5534_vm12 = vmor %vm2421_vm11, %vm2422_vm10  ;;  %vm2441_vm3 = vweird.f32 %v5518_v49 }
 0x4d9   :  { %4074 = vtanh.f32 %v5520_v37 }
 0x4da   :  { %v4069_v57 = vpop.eup %4068  ;;  %v2420_v6 = vadd.f32 %v5513_v23, %v2419_v36 }
 0x4db   :  { %v4071_v9 = vpop.eup %4070  ;;  %v2306_v38 = vmul.f32 %v4069_v57, %v2304_v60  ;;  %vm2311_vm6 = vweird.f32 %v4069_v57  ;;  %v2427_v60 = vand.u32 2147483648, %v5503_v42 }
 0x4dc   :  { %v2396_v21 = vadd.f32 1.0, %v4071_v9  ;;  %v2362_v43 = vpop.f32.mrf.mxu2  ;;  %v5525_v25 = vpop.eup %4072  ;;  %vm2312_vm8 = vmor %vm2310_vm7, %vm2311_vm6  ;;  %v2424_v1 = vsel %vm5534_vm12, %v5513_v23, %v2420_v6 }
 0x4dd   :  { %v2307_v62 = vsub.f32 1.0, %v2306_v38  ;;  %v2437_v22 = vmul.f32 %v5525_v25, %v5518_v49  ;;  %vm2442_vm2 = vweird.f32 %v5525_v25 }
 0x4de   :  { %4076 = vrcp.f32 %v2396_v21  ;;  %v2406_v63 = vand.u32 2147483647, %v2396_v21  ;;  %vm2402_vm14 = vweird.f32 %v2396_v21  ;;  %vm2443_vm4 = vmor %vm2441_vm3, %vm2442_vm2 }
 0x4df   :  { %v2308_v54 = vmul.f32 %v4069_v57, %v2307_v62  ;;  %v4075_v15 = vpop.eup %4074  ;;  %v2425_v62 = vand.u32 2147483647, %v5503_v42  ;;  %4078 = vtanh.f32 %v2391_v46 }
 0x4e0   :  { %vm2407_vm1 = vcmp.eq.f32.partialorder %v2406_v63, 8.507059e+37  ;;  %v6527_v63 = vld [vmem:[#allocation44_spill] sm:$0xff] }
 0x4e1   :  { %v2309_v47 = vadd.f32 %v4069_v57, %v2308_v54  ;;  %v2408_v54 = vand.u32 2147483648, %v2396_v21  ;;  %vm2426_vm15 = vcmp.eq.f32.partialorder %v2425_v62, 8.507059e+37 }
 0x4e3   :  { %v2313_v16 = vsel %vm2312_vm8, %v4069_v57, %v2309_v47 }
 0x4e4   :  { %v4077_v8 = vpop.eup %4076  ;;  %v2318_v9 = vsel %vm2315_vm9, %v2317_v59, %v2313_v16  ;;  %v2428_v59 = vor.u32 1.1754944e-38, %v2427_v60 }
 0x4e5   :  { %v2398_v38 = vmul.f32 %v4077_v8, %v2396_v21  ;;  %v2324_v27 = vmul.f32 %v4075_v15, %v2318_v9  ;;  %vm2403_vm13 = vweird.f32 %v4077_v8  ;;  %v2438_v15 = vsub.f32 1.0, %v2437_v22  ;;  %v4079_v23 = vpop.eup %4078 }
 0x4e6   :  { %vm2404_vm0 = vmor %vm2402_vm14, %vm2403_vm13  ;;  %v2429_v42 = vsel %vm2426_vm15, %v2428_v59, %v2424_v1  ;;  %v6529_v59 = vld [vmem:[#allocation36_spill] sm:$0xff] }
 0x4e7   :  { %v2399_v43 = vsub.f32 1.0, %v2398_v38  ;;  %v2460_v2 = vrot.slane %v2324_v27, 6  ;;  %v2409_v38 = vor.u32 1.1754944e-38, %v2408_v54  ;;  %v2452_v27 = vrot.slane %v5396_v31, 6 }
 0x4e8   :  { %v2439_v46 = vmul.f32 %v5525_v25, %v2438_v15  ;;  %v2447_v31 = vand.u32 2147483648, %v5518_v49  ;;  %v6530_v15 = vld [vmem:[#allocation45_spill] sm:$0xff] }
 0x4e9   :  { %v2400_v36 = vmul.f32 %v4077_v8, %v2399_v43  ;;  %v2463_v47 = vpack.c.bf16 %v2460_v2, %v2460_v2  ;;  %v2454_v21 = vmul.f32 %v2452_v27, %v2429_v42  ;;  %v6534_v42 = vld [vmem:[#allocation55_spill] sm:$0xff]  ;;  %v6535_v27 = vld [vmem:[#allocation56_spill] sm:$0xff] }
 0x4ea   :  { %v2440_v57 = vadd.f32 %v5525_v25, %v2439_v46  ;;  %v2448_v43 = vor.u32 1.1754944e-38, %v2447_v31  ;;  %v6537_v46 = vld [vmem:[#allocation48_spill] sm:$0xff]  ;;  %v6542_v31 = vld [vmem:[#allocation63_spill] sm:$0xff] }
 0x4eb   :  { %v2401_v16 = vadd.f32 %v4077_v8, %v2400_v36  ;;  %v2467_v9 = vrot.slane %v2463_v47, 1  ;;  %v6526_v36 = vld [vmem:[#allocation43_spill] sm:$0xff]  ;;  %v6528_v47 = vld [vmem:[#allocation26_spill] sm:$0xff] }
 0x4ed   :  { %v2405_v39 = vsel %vm2404_vm0, %v4077_v8, %v2401_v16  ;;  %2491 = vmatmul.bf16.vlgmr.msra.gmra.mxu1 %v2467_v9  ;;  %2517 = vmatmul.bf16.vlgmr.msrb.gmra.mxu3 %v2467_v9  ;;  %v2445_v8 = vand.u32 2147483647, %v5518_v49  ;;  %v6531_v16 = vld [vmem:[#allocation46_spill] sm:$0xff] }
 0x4ee   :  { %v2410_v6 = vsel %vm2407_vm1, %v2409_v38, %v2405_v39  ;;  %2650 = vmatpush.bf16.msra.mxu1 %v6225_v44  ;;  %2676 = vmatpush.bf16.msrb.mxu3 %v6226_v32  ;;  %v2444_v39 = vsel %vm2443_vm4, %v5525_v25, %v2440_v57  ;;  %v6525_v25 = vld [vmem:[#allocation33_spill] sm:$0xff]  ;;  %v6533_v38 = vld [vmem:[#allocation39_spill] sm:$0xff]  ;;  %v6541_v57 = vld [vmem:[#allocation50_spill] sm:$0xff] }
 0x4ef   :  { %v2455_v60 = vmul.f32 %v4079_v23, %v2410_v6  ;;  %vm2446_vm5 = vcmp.eq.f32.partialorder %v2445_v8, 8.507059e+37  ;;  %v6536_v23 = vld [vmem:[#allocation47_spill] sm:$0xff]  ;;  %v6543_v8 = vld [vmem:[#allocation64_spill] sm:$0xff] }
 0x4f0   :  { %v2449_v2 = vsel %vm2446_vm5, %v2448_v43, %v2444_v39  ;;  %v6538_v6 = vld [vmem:[#allocation59_spill] sm:$0xff]  ;;  %v6545_v43 = vld [vmem:[#allocation52_spill] sm:$0xff] }
 0x4f1   :  { %v5546_v22 = vadd.f32 %v2455_v60, %v2454_v21  ;;  %v6539_v21 = vld [vmem:[#allocation60_spill] sm:$0xff]  ;;  %v6540_v60 = vld [vmem:[#allocation49_spill] sm:$0xff]  ;;  %v6544_v39 = vld [vmem:[#allocation51_spill] sm:$0xff] }
 0x4f2   :  { %2651 = vmatpush.bf16.msra.mxu1 %v6227_v51  ;;  %2677 = vmatpush.bf16.msrb.mxu3 %v6228_v33 }
 0x4f3   :  { %4080 = vtanh.f32 %v5546_v22 }
 0x4f6   :  { %2652 = vmatpush.bf16.msra.mxu1 %v6229_v20  ;;  %2678 = vmatpush.bf16.msrb.mxu3 %v6230_v45 }
 0x4f9   :  { %v4081_v62 = vpop.eup %4080 }
 0x4fa   :  { %v2458_v54 = vmul.f32 %v4081_v62, %v2449_v2  ;;  %2653 = vmatpush.bf16.msra.mxu1 %v6231_v11  ;;  %2679 = vmatpush.bf16.msrb.mxu3 %v6232_v4  ;;  %v6546_v62 = vld [vmem:[#allocation53_spill] sm:$0xff]  ;;  %v6547_v2 = vld [vmem:[#allocation54_spill] sm:$0xff] }
 0x4fc   :  { %v2462_v1 = vpack.c.bf16 %v2458_v54, %v2458_v54  ;;  %v6548_v54 = vld [vmem:[#allocation67_spill] sm:$0xff] }
 0x4fd   :  { %2543 = vmatmul.bf16.vlgmr.msrb.gmra.mxu1 %v2467_v9  ;;  %2569 = vmatmul.bf16.vlgmr.msra.gmra.mxu3 %v2467_v9  ;;  %v6532_v9 = vld [vmem:[#allocation30_spill] sm:$0xff] }
 0x4fe   :  { %v2466_v49 = vrot.slane %v2462_v1, 1  ;;  %2654 = vmatpush.bf16.msra.mxu1 %v6233_v29  ;;  %2680 = vmatpush.bf16.msrb.mxu3 %v6234_v17  ;;  %v6549_v1 = vld [vmem:[#allocation68_spill] sm:$0xff] }
 0x500   :  { %2478 = vmatmul.bf16.vlgmr.msra.gmra.mxu0 %v2466_v49  ;;  %2504 = vmatmul.bf16.vlgmr.msrb.gmra.mxu2 %v2466_v49 }
 0x501   :  { %2637 = vmatpush.bf16.msra.mxu0 %v4358_v3  ;;  %2663 = vmatpush.bf16.msrb.mxu2 %v4392_v56 }
 0x502   :  { %2655 = vmatpush.bf16.msra.mxu1 %v6235_v58  ;;  %2681 = vmatpush.bf16.msrb.mxu3 %v6236_v61 }
 0x505   :  { %2638 = vmatpush.bf16.msra.mxu0 %v4361_v12  ;;  %2664 = vmatpush.bf16.msrb.mxu2 %v4404_v5 }
 0x506   :  { %2656 = vmatpush.bf16.msra.mxu1 %v4460_v7  ;;  %2682 = vmatpush.bf16.msrb.mxu3 %v4447_v50 }
 0x509   :  { %2639 = vmatpush.bf16.msra.mxu0 %v4377_v35  ;;  %2665 = vmatpush.bf16.msrb.mxu2 %v4418_v18 }
 0x50a   :  { %2657 = vmatpush.bf16.msra.mxu1 %v4469_v24  ;;  %2683 = vmatpush.bf16.msrb.mxu3 %v6237_v0 }
 0x50d   :  { %2640 = vmatpush.bf16.msra.mxu0 %v4388_v52  ;;  %2658 = vmatmul.bf16.vlgmr.msra.gmra.mxu1 %v2466_v49 }
 0x50e   :  { %2795 = vmatpush.bf16.msrb.mxu1 %v6238_v26  ;;  %2821 = vmatpush.bf16.msra.mxu3 %v6239_v14 }
 0x50f   :  { %2666 = vmatpush.bf16.msrb.mxu2 %v6179_v30  ;;  %2684 = vmatmul.bf16.vlgmr.msrb.gmra.mxu3 %v2466_v49 }
 0x510   :  { %2530 = vmatmul.bf16.vlgmr.msrb.gmra.mxu0 %v2466_v49  ;;  %2556 = vmatmul.bf16.vlgmr.msra.gmra.mxu2 %v2466_v49 }
 0x511   :  { %2641 = vmatpush.bf16.msra.mxu0 %v6182_v41 }
 0x512   :  { %2796 = vmatpush.bf16.msrb.mxu1 %v6240_v55  ;;  %2822 = vmatpush.bf16.msra.mxu3 %v6241_v53 }
 0x513   :  { %2667 = vmatpush.bf16.msrb.mxu2 %v6183_v13 }
 0x515   :  { %2642 = vmatpush.bf16.msra.mxu0 %v6186_v48 }
 0x516   :  { %2797 = vmatpush.bf16.msrb.mxu1 %v6242_v19  ;;  %2823 = vmatpush.bf16.msra.mxu3 %v6243_v34 }
 0x517   :  { %2668 = vmatpush.bf16.msrb.mxu2 %v6525_v25 }
 0x519   :  { %2643 = vmatpush.bf16.msra.mxu0 %v6528_v47 }
 0x51a   :  { %2798 = vmatpush.bf16.msrb.mxu1 %v6526_v36  ;;  %2824 = vmatpush.bf16.msra.mxu3 %v6527_v63 }
 0x51b   :  { %2669 = vmatpush.bf16.msrb.mxu2 %v6529_v59 }
 0x51d   :  { %2644 = vmatpush.bf16.msra.mxu0 %v6532_v9 }
 0x51e   :  { %2799 = vmatpush.bf16.msrb.mxu1 %v6530_v15  ;;  %2825 = vmatpush.bf16.msra.mxu3 %v6531_v16 }
 0x51f   :  { %2670 = vmatpush.bf16.msrb.mxu2 %v6533_v38 }
 0x520   :  { %2645 = vmatmul.bf16.vlgmr.msra.gmra.mxu0 %v2466_v49 }
 0x521   :  { %2782 = vmatpush.bf16.msrb.mxu0 %v6534_v42 }
 0x522   :  { %2800 = vmatpush.bf16.msrb.mxu1 %v6536_v23  ;;  %2826 = vmatpush.bf16.msra.mxu3 %v6537_v46  ;;  %v6588_v46 = vld [vmem:[#allocation27_spill] sm:$0xff] }
 0x523   :  { %2808 = vmatpush.bf16.msra.mxu2 %v6535_v27 }
 0x524   :  { %2671 = vmatmul.bf16.vlgmr.msrb.gmra.mxu2 %v2466_v49  ;;  %v6550_v49 = vld [vmem:[#allocation57_spill] sm:$0xff] }
 0x525   :  { %2783 = vmatpush.bf16.msrb.mxu0 %v6538_v6 }
 0x526   :  { %2801 = vmatpush.bf16.msrb.mxu1 %v6540_v60  ;;  %2827 = vmatpush.bf16.msra.mxu3 %v6541_v57  ;;  %v6551_v60 = vld [vmem:[#allocation58_spill] sm:$0xff]  ;;  %v6552_v57 = vld [vmem:[#allocation71_spill] sm:$0xff] }
 0x527   :  { %2809 = vmatpush.bf16.msra.mxu2 %v6539_v21 }
 0x529   :  { %2784 = vmatpush.bf16.msrb.mxu0 %v6542_v31  ;;  %v6553_v31 = vld [vmem:[#allocation72_spill] sm:$0xff] }
 0x52a   :  { %2802 = vmatpush.bf16.msrb.mxu1 %v6544_v39  ;;  %2828 = vmatpush.bf16.msra.mxu3 %v6545_v43  ;;  %v6555_v39 = vld [vmem:[#allocation62_spill] sm:$0xff]  ;;  %v6556_v43 = vld [vmem:[#allocation76_spill] sm:$0xff] }
 0x52b   :  { %2810 = vmatpush.bf16.msra.mxu2 %v6543_v8  ;;  %v6554_v8 = vld [vmem:[#allocation61_spill] sm:$0xff] }
 0x52d   :  { %2785 = vmatpush.bf16.msrb.mxu0 %v6548_v54  ;;  %v6559_v54 = vld [vmem:[#allocation66_spill] sm:$0xff] }
 0x52e   :  { %2847 = vmatpush.bf16.msra.mxu1 %v6546_v62  ;;  %2873 = vmatpush.bf16.msrb.mxu3 %v6547_v2  ;;  %v6557_v62 = vld [vmem:[#allocation77_spill] sm:$0xff] }
 0x52f   :  { %2811 = vmatpush.bf16.msra.mxu2 %v6549_v1  ;;  %v6558_v2 = vld [vmem:[#allocation65_spill] sm:$0xff] }
 0x530   :  { %v6560_v1 = vld [vmem:[#allocation81_spill] sm:$0xff] }
 0x531   :  { %2786 = vmatpush.bf16.msrb.mxu0 %v6552_v57  ;;  %v6563_v57 = vld [vmem:[#allocation70_spill] sm:$0xff] }
 0x532   :  { %2848 = vmatpush.bf16.msra.mxu1 %v6550_v49  ;;  %2874 = vmatpush.bf16.msrb.mxu3 %v6551_v60  ;;  %v6561_v49 = vld [vmem:[#allocation82_spill] sm:$0xff]  ;;  %v6562_v60 = vld [vmem:[#allocation69_spill] sm:$0xff] }
 0x533   :  { %2812 = vmatpush.bf16.msra.mxu2 %v6553_v31  ;;  %v6564_v31 = vld [vmem:[#allocation85_spill] sm:$0xff] }
 0x535   :  { %2787 = vmatpush.bf16.msrb.mxu0 %v6556_v43  ;;  %v6567_v43 = vld [vmem:[#allocation88_spill] sm:$0xff] }
 0x536   :  { %2849 = vmatpush.bf16.msra.mxu1 %v6554_v8  ;;  %2875 = vmatpush.bf16.msrb.mxu3 %v6555_v39  ;;  %v6565_v8 = vld [vmem:[#allocation86_spill] sm:$0xff]  ;;  %v6566_v39 = vld [vmem:[#allocation87_spill] sm:$0xff] }
 0x537   :  { %2813 = vmatpush.bf16.msra.mxu2 %v6557_v62  ;;  %v6568_v62 = vld [vmem:[#allocation73_spill] sm:$0xff] }
 0x539   :  { %2788 = vmatpush.bf16.msrb.mxu0 %v6560_v1  ;;  %v6571_v1 = vld [vmem:[#allocation92_spill] sm:$0xff] }
 0x53a   :  { %2850 = vmatpush.bf16.msra.mxu1 %v6558_v2  ;;  %2876 = vmatpush.bf16.msrb.mxu3 %v6559_v54  ;;  %v6569_v2 = vld [vmem:[#allocation75_spill] sm:$0xff]  ;;  %v6570_v54 = vld [vmem:[#allocation90_spill] sm:$0xff] }
 0x53b   :  { %2814 = vmatpush.bf16.msra.mxu2 %v6561_v49  ;;  %v6572_v49 = vld [vmem:[#allocation78_spill] sm:$0xff] }
 0x53d   :  { %2789 = vmatpush.bf16.msrb.mxu0 %v6564_v31  ;;  %v6575_v31 = vld [vmem:[#allocation95_spill] sm:$0xff] }
 0x53e   :  { %2851 = vmatpush.bf16.msra.mxu1 %v6562_v60  ;;  %2877 = vmatpush.bf16.msrb.mxu3 %v6563_v57  ;;  %v6573_v60 = vld [vmem:[#allocation80_spill] sm:$0xff]  ;;  %v6574_v57 = vld [vmem:[#allocation94_spill] sm:$0xff] }
 0x53f   :  { %2815 = vmatpush.bf16.msra.mxu2 %v6565_v8  ;;  %v6576_v8 = vld [vmem:[#allocation83_spill] sm:$0xff] }
 0x541   :  { %2834 = vmatpush.bf16.msra.mxu0 %v6566_v39  ;;  %v6577_v39 = vld [vmem:[#allocation84_spill] sm:$0xff] }
 0x542   :  { %2852 = vmatpush.bf16.msra.mxu1 %v6568_v62  ;;  %2878 = vmatpush.bf16.msrb.mxu3 %v6569_v2  ;;  %v6579_v62 = vld [vmem:[#allocation99_spill] sm:$0xff]  ;;  %v6580_v2 = vld [vmem:[#allocation101_spill] sm:$0xff] }
 0x543   :  { %2860 = vmatpush.bf16.msrb.mxu2 %v6567_v43  ;;  %v6578_v43 = vld [vmem:[#allocation97_spill] sm:$0xff] }
 0x545   :  { %2835 = vmatpush.bf16.msra.mxu0 %v6570_v54  ;;  %v6581_v54 = vld [vmem:[#allocation102_spill] sm:$0xff] }
 0x546   :  { %2853 = vmatpush.bf16.msra.mxu1 %v6572_v49  ;;  %2879 = vmatpush.bf16.msrb.mxu3 %v6573_v60  ;;  %v6583_v49 = vld [vmem:[#allocation104_spill] sm:$0xff]  ;;  %v6584_v60 = vld [vmem:[#allocation105_spill] sm:$0xff] }
 0x547   :  { %2861 = vmatpush.bf16.msrb.mxu2 %v6571_v1  ;;  %v6582_v1 = vld [vmem:[#allocation103_spill] sm:$0xff] }
 0x549   :  { %2836 = vmatpush.bf16.msra.mxu0 %v6574_v57  ;;  %v6585_v57 = vld [vmem:[#allocation106_spill] sm:$0xff] }
 0x54a   :  { %2854 = vmatpush.bf16.msra.mxu1 %v6576_v8  ;;  %2880 = vmatpush.bf16.msrb.mxu3 %v6577_v39  ;;  %v6587_v8 = vld [vmem:[#allocation109_spill] sm:$0xff] }
 0x54b   :  { %2862 = vmatpush.bf16.msrb.mxu2 %v6575_v31  ;;  %v6586_v31 = vld [vmem:[#allocation108_spill] sm:$0xff] }
 0x54d   :  { %2837 = vmatpush.bf16.msra.mxu0 %v6578_v43 }
 0x54f   :  { %2863 = vmatpush.bf16.msrb.mxu2 %v6579_v62 }
 0x551   :  { %2838 = vmatpush.bf16.msra.mxu0 %v6580_v2 }
 0x553   :  { %2864 = vmatpush.bf16.msrb.mxu2 %v6581_v54 }
 0x555   :  { %2839 = vmatpush.bf16.msra.mxu0 %v6582_v1 }
 0x557   :  { %2865 = vmatpush.bf16.msrb.mxu2 %v6583_v49 }
 0x559   :  { %2840 = vmatpush.bf16.msra.mxu0 %v6584_v60  ;;  %v6589_v60 = vld [vmem:[#allocation20_spill] sm:$0xff] }
 0x55b   :  { %2866 = vmatpush.bf16.msrb.mxu2 %v6585_v57 }
 0x55d   :  { %2841 = vmatpush.bf16.msra.mxu0 %v6586_v31 }
 0x55f   :  { %2867 = vmatpush.bf16.msrb.mxu2 %v6587_v8 }
 0x56a   :  { %v2492_v39 = vpop.f32.mrf.mxu1 }
 0x570   :  { %v2518_v43 = vpop.f32.mrf.mxu3 }
 0x572   :  { %v2494_v21 = vpop.f32.mrf.mxu1 }
 0x578   :  { %v2520_v62 = vpop.f32.mrf.mxu3 }
 0x57a   :  { %v2544_v6 = vpop.f32.mrf.mxu1 }
 0x57d   :  { %v2479_v2 = vpop.f32.mrf.mxu0 }
 0x57e   :  { %v2480_v54 = vadd.f32 %v2479_v2, %v6588_v46  ;;  %v6590_v2 = vld [vmem:[#allocation15_spill] sm:$0xff] }
 0x580   :  { %v2493_v23 = vadd.f32 %v2492_v39, %v2480_v54  ;;  %v2570_v1 = vpop.f32.mrf.mxu3 }
 0x582   :  { %v3775_v27 = vmul.f32 -1.442695, %v2493_v23  ;;  %v2546_v49 = vpop.f32.mrf.mxu1 }
 0x583   :  { %v2505_v42 = vpop.f32.mrf.mxu2 }
 0x584   :  { %4082 = vpow2.f32 %v3775_v27  ;;  %v2506_v57 = vadd.f32 %v2505_v42, %v6589_v60 }
 0x585   :  { %v2481_v38 = vpop.f32.mrf.mxu0 }
 0x586   :  { %v2519_v31 = vadd.f32 %v2518_v43, %v2506_v57 }
 0x588   :  { %v3776_v9 = vmul.f32 -1.442695, %v2519_v31  ;;  %v2572_v8 = vpop.f32.mrf.mxu3 }
 0x58a   :  { %v4083_v16 = vpop.eup %4082  ;;  %4084 = vpow2.f32 %v3776_v9  ;;  %v2659_v21 = vpop.f32.mrf.mxu1  ;;  %v6591_v9 = vld [vmem:[#allocation23_spill] sm:$0xff] }
 0x58b   :  { %v2577_v62 = vadd.f32 1.0, %v4083_v16  ;;  %v2694_v15 = vrot.slane %v2659_v21, 4  ;;  %v2507_v59 = vpop.f32.mrf.mxu2 }
 0x58d   :  { %4086 = vrcp.f32 %v2577_v62  ;;  %v2702_v39 = vadd.f32 %v2694_v15, %v6590_v2  ;;  %v2531_v54 = vpop.f32.mrf.mxu0  ;;  %vm2583_vm8 = vweird.f32 %v2577_v62 }
 0x58f   :  { %v3779_v23 = vmul.f32 -1.442695, %v2702_v39  ;;  %v2532_v39 = vadd.f32 %v2531_v54, %v6290_v10  ;;  %v2587_v54 = vand.u32 2147483647, %v2577_v62 }
 0x590   :  { %v4085_v49 = vpop.eup %4084 }
 0x591   :  { %v2596_v46 = vadd.f32 1.0, %v4085_v49  ;;  %4088 = vpow2.f32 %v3779_v23  ;;  %vm2588_vm13 = vcmp.eq.f32.partialorder %v2587_v54, 8.507059e+37 }
 0x592   :  { %v2685_v27 = vpop.f32.mrf.mxu3  ;;  %v2661_v38 = vpop.f32.mrf.mxu1 }
 0x593   :  { %v2696_v42 = vrot.slane %v2685_v27, 4  ;;  %v4087_v57 = vpop.eup %4086  ;;  %4090 = vrcp.f32 %v2596_v46  ;;  %v2557_v31 = vpop.f32.mrf.mxu2  ;;  %vm2602_vm9 = vweird.f32 %v2596_v46 }
 0x594   :  { %v2579_v8 = vmul.f32 %v4087_v57, %v2577_v62  ;;  %v2558_v43 = vadd.f32 %v2557_v31, %v6591_v9  ;;  %v2545_v31 = vadd.f32 %v2544_v6, %v2532_v39  ;;  %vm2584_vm6 = vweird.f32 %v4087_v57 }
 0x595   :  { %v2533_v16 = vpop.f32.mrf.mxu0  ;;  %v2704_v59 = vadd.f32 %v2696_v42, %v5332_v40  ;;  %vm5658_vm10 = vmor %vm2583_vm8, %vm2584_vm6 }
 0x596   :  { %v2580_v21 = vsub.f32 1.0, %v2579_v8  ;;  %v2571_v60 = vadd.f32 %v2570_v1, %v2558_v43  ;;  %v2589_v16 = vand.u32 2147483648, %v2577_v62  ;;  %v2608_v8 = vand.u32 2147483648, %v2596_v46 }
 0x597   :  { %v4089_v15 = vpop.eup %4088  ;;  %v3780_v38 = vmul.f32 -1.442695, %v2704_v59  ;;  %v2606_v1 = vand.u32 2147483647, %v2596_v46 }
 0x598   :  { %v3777_v2 = vmul.f32 -1.442695, %v2571_v60  ;;  %v2581_v47 = vmul.f32 %v4087_v57, %v2580_v21  ;;  %v5655_v63 = vadd.f32 1.0, %v4089_v15  ;;  %v2609_v21 = vor.u32 1.1754944e-38, %v2608_v8 }
 0x599   :  { %v4091_v49 = vpop.eup %4090  ;;  %v2590_v59 = vor.u32 1.1754944e-38, %v2589_v16  ;;  %vm2607_vm12 = vcmp.eq.f32.partialorder %v2606_v1, 8.507059e+37 }
 0x59a   :  { %v2687_v23 = vpop.f32.mrf.mxu3  ;;  %v2598_v27 = vmul.f32 %v4091_v49, %v2596_v46  ;;  %4092 = vpow2.f32 %v3777_v2  ;;  %v2582_v9 = vadd.f32 %v4087_v57, %v2581_v47  ;;  %vm2603_vm7 = vweird.f32 %v4091_v49 }
 0x59b   :  { %v2559_v36 = vpop.f32.mrf.mxu2  ;;  %4094 = vpow2.f32 %v3780_v38  ;;  %vm2604_vm11 = vmor %vm2602_vm9, %vm2603_vm7  ;;  %vm2733_vm3 = vweird.f32 %v5655_v63 }
 0x59c   :  { %v2599_v25 = vsub.f32 1.0, %v2598_v27  ;;  %4096 = vrcp.f32 %v5655_v63 }
 0x59d   :  { %v2646_v42 = vpop.f32.mrf.mxu0  ;;  %4098 = vtanh.f32 %v2545_v31 }
 0x59e   :  { %v2600_v43 = vmul.f32 %v4091_v49, %v2599_v25  ;;  %v2693_v60 = vrot.slane %v2646_v42, 4  ;;  %v2586_v25 = vsel %vm5658_vm10, %v4087_v57, %v2582_v9 }
 0x59f   :  { %v2591_v27 = vsel %vm2588_vm13, %v2590_v59, %v2586_v25 }
 0x5a0   :  { %v2601_v36 = vadd.f32 %v4091_v49, %v2600_v43  ;;  %v2701_v47 = vadd.f32 %v2693_v60, %v5343_v28  ;;  %v4093_v6 = vpop.eup %4092 }
 0x5a1   :  { %v2616_v39 = vadd.f32 1.0, %v4093_v6  ;;  %v4095_v23 = vpop.eup %4094 }
 0x5a2   :  { %v2605_v15 = vsel %vm2604_vm11, %v4091_v49, %v2601_v36  ;;  %v3778_v62 = vmul.f32 -1.442695, %v2701_v47  ;;  %v5665_v31 = vpop.eup %4096  ;;  %v5670_v9 = vadd.f32 1.0, %v4095_v23 }
 0x5a3   :  { %v2610_v46 = vsel %vm2607_vm12, %v2609_v21, %v2605_v15  ;;  %4100 = vrcp.f32 %v2616_v39  ;;  %v4099_v43 = vpop.eup %4098  ;;  %v2729_v57 = vmul.f32 %v5665_v31, %v5655_v63  ;;  %v2628_v6 = vand.u32 2147483648, %v2616_v39 }
 0x5a4   :  { %v2632_v42 = vmul.f32 %v2610_v46, %v5520_v37  ;;  %4102 = vpow2.f32 %v3778_v62  ;;  %v2633_v60 = vmul.f32 %v4099_v43, %v2591_v27  ;;  %v2626_v25 = vand.u32 2147483647, %v2616_v39  ;;  %v6594_v43 = vld [vmem:[#allocation19_spill] sm:$0xff] }
 0x5a5   :  { %v2648_v8 = vpop.f32.mrf.mxu0  ;;  %v2730_v2 = vsub.f32 1.0, %v2729_v57  ;;  %4104 = vrcp.f32 %v5670_v9  ;;  %vm2622_vm15 = vweird.f32 %v2616_v39  ;;  %v2629_v23 = vor.u32 1.1754944e-38, %v2628_v6 }
 0x5a6   :  { %v5672_v49 = vadd.f32 %v2633_v60, %v2632_v42  ;;  %vm2627_vm1 = vcmp.eq.f32.partialorder %v2626_v25, 8.507059e+37  ;;  %vm2734_vm2 = vweird.f32 %v5665_v31  ;;  %vm2753_vm11 = vweird.f32 %v5670_v9 }
 0x5a7   :  { %v2672_v38 = vpop.f32.mrf.mxu2  ;;  %v2731_v59 = vmul.f32 %v5665_v31, %v2730_v2  ;;  %vm5686_vm4 = vmor %vm2733_vm3, %vm2734_vm2 }
 0x5a8   :  { %4106 = vtanh.f32 %v5672_v49  ;;  %v2695_v15 = vrot.slane %v2672_v38, 4 }
 0x5a9   :  { %v4101_v16 = vpop.eup %4100  ;;  %v2732_v57 = vadd.f32 %v5665_v31, %v2731_v59 }
 0x5aa   :  { %v4103_v1 = vpop.eup %4102  ;;  %v2618_v54 = vmul.f32 %v4101_v16, %v2616_v39  ;;  %vm2623_vm14 = vweird.f32 %v4101_v16  ;;  %v2703_v60 = vadd.f32 %v2695_v15, %v6594_v43  ;;  %v2739_v39 = vand.u32 2147483648, %v5655_v63 }
 0x5ab   :  { %v2708_v36 = vadd.f32 1.0, %v4103_v1  ;;  %v5677_v62 = vpop.eup %4104  ;;  %vm2624_vm0 = vmor %vm2622_vm15, %vm2623_vm14  ;;  %v2736_v25 = vsel %vm5686_vm4, %v5665_v31, %v2732_v57 }
 0x5ac   :  { %v2619_v37 = vsub.f32 1.0, %v2618_v54  ;;  %v2749_v38 = vmul.f32 %v5677_v62, %v5670_v9  ;;  %vm2754_vm10 = vweird.f32 %v5677_v62 }
 0x5ad   :  { %4108 = vrcp.f32 %v2708_v36  ;;  %v2718_v15 = vand.u32 2147483647, %v2708_v36  ;;  %vm2714_vm6 = vweird.f32 %v2708_v36  ;;  %vm2755_vm12 = vmor %vm2753_vm11, %vm2754_vm10 }
 0x5ae   :  { %v2620_v21 = vmul.f32 %v4101_v16, %v2619_v37  ;;  %v4107_v27 = vpop.eup %4106  ;;  %v2737_v37 = vand.u32 2147483647, %v5655_v63  ;;  %4110 = vtanh.f32 %v2703_v60 }
 0x5af   :  { %v2674_v47 = vpop.f32.mrf.mxu2  ;;  %vm2719_vm9 = vcmp.eq.f32.partialorder %v2718_v15, 8.507059e+37  ;;  %v6632_v15 = vld [vmem:[#allocation81_spill] sm:$0xff] }
 0x5b0   :  { %v2621_v46 = vadd.f32 %v4101_v16, %v2620_v21  ;;  %v2720_v21 = vand.u32 2147483648, %v2708_v36  ;;  %vm2738_vm7 = vcmp.eq.f32.partialorder %v2737_v37, 8.507059e+37  ;;  %v6627_v37 = vld [vmem:[#allocation62_spill] sm:$0xff] }
 0x5b2   :  { %v2625_v42 = vsel %vm2624_vm0, %v4101_v16, %v2621_v46 }
 0x5b3   :  { %v4109_v8 = vpop.eup %4108  ;;  %v2630_v1 = vsel %vm2627_vm1, %v2629_v23, %v2625_v42  ;;  %v2740_v23 = vor.u32 1.1754944e-38, %v2739_v39 }
 0x5b4   :  { %v2710_v54 = vmul.f32 %v4109_v8, %v2708_v36  ;;  %v2636_v2 = vmul.f32 %v4107_v27, %v2630_v1  ;;  %vm2715_vm5 = vweird.f32 %v4109_v8  ;;  %v2750_v27 = vsub.f32 1.0, %v2749_v38  ;;  %v4111_v31 = vpop.eup %4110 }
 0x5b5   :  { %vm2716_vm8 = vmor %vm2714_vm6, %vm2715_vm5  ;;  %v2741_v63 = vsel %vm2738_vm7, %v2740_v23, %v2736_v25  ;;  %v6630_v25 = vld [vmem:[#allocation65_spill] sm:$0xff] }
 0x5b6   :  { %v2711_v47 = vsub.f32 1.0, %v2710_v54  ;;  %v2772_v6 = vrot.slane %v2636_v2, 4  ;;  %v2721_v54 = vor.u32 1.1754944e-38, %v2720_v21  ;;  %v2764_v2 = vrot.slane %v5546_v22, 6  ;;  %v6629_v21 = vld [vmem:[#allocation77_spill] sm:$0xff] }
 0x5b7   :  { %v2751_v60 = vmul.f32 %v5677_v62, %v2750_v27  ;;  %v2759_v22 = vand.u32 2147483648, %v5670_v9  ;;  %v6634_v23 = vld [vmem:[#allocation69_spill] sm:$0xff]  ;;  %v6635_v27 = vld [vmem:[#allocation70_spill] sm:$0xff] }
 0x5b8   :  { %v2712_v59 = vmul.f32 %v4109_v8, %v2711_v47  ;;  %v2775_v46 = vpack.c.bf16 %v2772_v6, %v2772_v6  ;;  %v2766_v36 = vmul.f32 %v2764_v2, %v2741_v63  ;;  %v6628_v6 = vld [vmem:[#allocation76_spill] sm:$0xff]  ;;  %v6640_v2 = vld [vmem:[#allocation73_spill] sm:$0xff] }
 0x5b9   :  { %v2752_v16 = vadd.f32 %v5677_v62, %v2751_v60  ;;  %v6639_v63 = vld [vmem:[#allocation88_spill] sm:$0xff]  ;;  %v6642_v60 = vld [vmem:[#allocation90_spill] sm:$0xff] }
 0x5ba   :  { %v2713_v42 = vadd.f32 %v4109_v8, %v2712_v59  ;;  %v2779_v1 = vrot.slane %v2775_v46, 2  ;;  %v6631_v59 = vld [vmem:[#allocation66_spill] sm:$0xff] }
 0x5bb   :  { %v6633_v46 = vld [vmem:[#allocation82_spill] sm:$0xff] }
 0x5bc   :  { %v2717_v43 = vsel %vm2716_vm8, %v4109_v8, %v2713_v42  ;;  %2803 = vmatmul.bf16.vlgmr.msrb.gmra.mxu1 %v2779_v1  ;;  %2829 = vmatmul.bf16.vlgmr.msra.gmra.mxu3 %v2779_v1  ;;  %v2760_v8 = vor.u32 1.1754944e-38, %v2759_v22  ;;  %v6636_v42 = vld [vmem:[#allocation85_spill] sm:$0xff]  ;;  %v6647_v22 = vld [vmem:[#allocation95_spill] sm:$0xff] }
 0x5bd   :  { %v2722_v57 = vsel %vm2719_vm9, %v2721_v54, %v2717_v43  ;;  %2962 = vmatpush.bf16.msrb.mxu1 %v6225_v44  ;;  %2988 = vmatpush.bf16.msra.mxu3 %v6226_v32  ;;  %v2757_v44 = vand.u32 2147483647, %v5670_v9  ;;  %v2756_v32 = vsel %vm2755_vm12, %v5677_v62, %v2752_v16  ;;  %v6626_v62 = vld [vmem:[#allocation61_spill] sm:$0xff]  ;;  %v6638_v54 = vld [vmem:[#allocation87_spill] sm:$0xff]  ;;  %v6646_v16 = vld [vmem:[#allocation94_spill] sm:$0xff] }
 0x5be   :  { %v2767_v39 = vmul.f32 %v4111_v31, %v2722_v57  ;;  %v6641_v31 = vld [vmem:[#allocation75_spill] sm:$0xff]  ;;  %v6643_v57 = vld [vmem:[#allocation92_spill] sm:$0xff] }
 0x5bf   :  { %vm2758_vm13 = vcmp.eq.f32.partialorder %v2757_v44, 8.507059e+37  ;;  %v6648_v44 = vld [vmem:[#allocation83_spill] sm:$0xff] }
 0x5c0   :  { %v5698_v38 = vadd.f32 %v2767_v39, %v2766_v36  ;;  %v2761_v43 = vsel %vm2758_vm13, %v2760_v8, %v2756_v32  ;;  %v6644_v36 = vld [vmem:[#allocation78_spill] sm:$0xff]  ;;  %v6645_v39 = vld [vmem:[#allocation80_spill] sm:$0xff]  ;;  %v6650_v8 = vld [vmem:[#allocation97_spill] sm:$0xff] }
 0x5c1   :  { %2963 = vmatpush.bf16.msrb.mxu1 %v6227_v51  ;;  %2989 = vmatpush.bf16.msra.mxu3 %v6228_v33  ;;  %v6649_v32 = vld [vmem:[#allocation84_spill] sm:$0xff] }
 0x5c2   :  { %4112 = vtanh.f32 %v5698_v38 }
 0x5c5   :  { %2964 = vmatpush.bf16.msrb.mxu1 %v6229_v20  ;;  %2990 = vmatpush.bf16.msra.mxu3 %v6230_v45  ;;  %v6611_v20 = vld [vmem:[#allocation60_spill] sm:$0xff]  ;;  %v6612_v45 = vld [vmem:[#allocation49_spill] sm:$0xff] }
 0x5c8   :  { %v4113_v51 = vpop.eup %4112 }
 0x5c9   :  { %v2770_v33 = vmul.f32 %v4113_v51, %v2761_v43  ;;  %2965 = vmatpush.bf16.msrb.mxu1 %v6231_v11  ;;  %2991 = vmatpush.bf16.msra.mxu3 %v6232_v4  ;;  %v6613_v11 = vld [vmem:[#allocation50_spill] sm:$0xff]  ;;  %v6614_v4 = vld [vmem:[#allocation63_spill] sm:$0xff]  ;;  %v6652_v43 = vld [vmem:[#allocation101_spill] sm:$0xff] }
 0x5ca   :  { %v6651_v51 = vld [vmem:[#allocation99_spill] sm:$0xff] }
 0x5cb   :  { %v2774_v47 = vpack.c.bf16 %v2770_v33, %v2770_v33  ;;  %v6653_v33 = vld [vmem:[#allocation102_spill] sm:$0xff] }
 0x5cc   :  { %2855 = vmatmul.bf16.vlgmr.msra.gmra.mxu1 %v2779_v1  ;;  %2881 = vmatmul.bf16.vlgmr.msrb.gmra.mxu3 %v2779_v1  ;;  %v6637_v1 = vld [vmem:[#allocation86_spill] sm:$0xff] }
 0x5cd   :  { %v2778_v9 = vrot.slane %v2774_v47, 2  ;;  %2966 = vmatpush.bf16.msrb.mxu1 %v6233_v29  ;;  %2992 = vmatpush.bf16.msra.mxu3 %v6234_v17  ;;  %v6615_v29 = vld [vmem:[#allocation64_spill] sm:$0xff]  ;;  %v6616_v17 = vld [vmem:[#allocation51_spill] sm:$0xff] }
 0x5ce   :  { %v6654_v47 = vld [vmem:[#allocation103_spill] sm:$0xff] }
 0x5cf   :  { %2790 = vmatmul.bf16.vlgmr.msrb.gmra.mxu0 %v2778_v9  ;;  %2816 = vmatmul.bf16.vlgmr.msra.gmra.mxu2 %v2778_v9 }
 0x5d0   :  { %2949 = vmatpush.bf16.msrb.mxu0 %v4358_v3  ;;  %2975 = vmatpush.bf16.msra.mxu2 %v4392_v56  ;;  %v6597_v3 = vld [vmem:[#allocation33_spill] sm:$0xff]  ;;  %v6601_v56 = vld [vmem:[#allocation36_spill] sm:$0xff] }
 0x5d1   :  { %2967 = vmatpush.bf16.msrb.mxu1 %v6235_v58  ;;  %2993 = vmatpush.bf16.msra.mxu3 %v6236_v61  ;;  %v6617_v58 = vld [vmem:[#allocation52_spill] sm:$0xff]  ;;  %v6618_v61 = vld [vmem:[#allocation53_spill] sm:$0xff] }
 0x5d4   :  { %2950 = vmatpush.bf16.msrb.mxu0 %v4361_v12  ;;  %2976 = vmatpush.bf16.msra.mxu2 %v4404_v5  ;;  %v6598_v12 = vld [vmem:[#allocation43_spill] sm:$0xff]  ;;  %v6602_v5 = vld [vmem:[#allocation45_spill] sm:$0xff] }
 0x5d5   :  { %2968 = vmatpush.bf16.msrb.mxu1 %v4460_v7  ;;  %2994 = vmatpush.bf16.msra.mxu3 %v4447_v50  ;;  %v6604_v50 = vld [vmem:[#allocation30_spill] sm:$0xff]  ;;  %v6605_v7 = vld [vmem:[#allocation39_spill] sm:$0xff] }
 0x5d8   :  { %2951 = vmatpush.bf16.msrb.mxu0 %v4377_v35  ;;  %2977 = vmatpush.bf16.msra.mxu2 %v4418_v18  ;;  %v6599_v35 = vld [vmem:[#allocation44_spill] sm:$0xff]  ;;  %v6603_v18 = vld [vmem:[#allocation46_spill] sm:$0xff] }
 0x5d9   :  { %2969 = vmatpush.bf16.msrb.mxu1 %v4469_v24  ;;  %2995 = vmatpush.bf16.msra.mxu3 %v6237_v0  ;;  %v6606_v24 = vld [vmem:[#allocation55_spill] sm:$0xff]  ;;  %v6619_v0 = vld [vmem:[#allocation54_spill] sm:$0xff] }
 0x5dc   :  { %2952 = vmatpush.bf16.msrb.mxu0 %v4388_v52  ;;  %2970 = vmatmul.bf16.vlgmr.msrb.gmra.mxu1 %v2778_v9  ;;  %v6600_v52 = vld [vmem:[#allocation26_spill] sm:$0xff] }
 0x5dd   :  { %3107 = vmatpush.bf16.msra.mxu1 %v6238_v26  ;;  %3133 = vmatpush.bf16.msrb.mxu3 %v6239_v14  ;;  %v6620_v26 = vld [vmem:[#allocation67_spill] sm:$0xff]  ;;  %v6621_v14 = vld [vmem:[#allocation68_spill] sm:$0xff] }
 0x5de   :  { %2978 = vmatpush.bf16.msra.mxu2 %v6179_v30  ;;  %2996 = vmatmul.bf16.vlgmr.msra.gmra.mxu3 %v2778_v9  ;;  %v6607_v30 = vld [vmem:[#allocation56_spill] sm:$0xff] }
 0x5df   :  { %2842 = vmatmul.bf16.vlgmr.msra.gmra.mxu0 %v2778_v9  ;;  %2868 = vmatmul.bf16.vlgmr.msrb.gmra.mxu2 %v2778_v9 }
 0x5e0   :  { %2953 = vmatpush.bf16.msrb.mxu0 %v6182_v41  ;;  %v6608_v41 = vld [vmem:[#allocation47_spill] sm:$0xff] }
 0x5e1   :  { %3108 = vmatpush.bf16.msra.mxu1 %v6240_v55  ;;  %3134 = vmatpush.bf16.msrb.mxu3 %v6241_v53  ;;  %v6622_v55 = vld [vmem:[#allocation57_spill] sm:$0xff]  ;;  %v6623_v53 = vld [vmem:[#allocation58_spill] sm:$0xff] }
 0x5e2   :  { %2979 = vmatpush.bf16.msra.mxu2 %v6183_v13  ;;  %v6609_v13 = vld [vmem:[#allocation48_spill] sm:$0xff] }
 0x5e4   :  { %2954 = vmatpush.bf16.msrb.mxu0 %v6186_v48  ;;  %v6610_v48 = vld [vmem:[#allocation59_spill] sm:$0xff] }
 0x5e5   :  { %3109 = vmatpush.bf16.msra.mxu1 %v6242_v19  ;;  %3135 = vmatpush.bf16.msrb.mxu3 %v6243_v34  ;;  %v6624_v19 = vld [vmem:[#allocation71_spill] sm:$0xff]  ;;  %v6625_v34 = vld [vmem:[#allocation72_spill] sm:$0xff] }
 0x5e6   :  { %2980 = vmatpush.bf16.msra.mxu2 %v6597_v3  ;;  %v6656_v3 = vld [vmem:[#allocation105_spill] sm:$0xff] }
 0x5e8   :  { %2955 = vmatpush.bf16.msrb.mxu0 %v6600_v52  ;;  %v6659_v52 = vld [vmem:[#allocation109_spill] sm:$0xff] }
 0x5e9   :  { %3110 = vmatpush.bf16.msra.mxu1 %v6598_v12  ;;  %3136 = vmatpush.bf16.msrb.mxu3 %v6599_v35  ;;  %v6657_v12 = vld [vmem:[#allocation106_spill] sm:$0xff]  ;;  %v6658_v35 = vld [vmem:[#allocation108_spill] sm:$0xff] }
 0x5ea   :  { %2981 = vmatpush.bf16.msra.mxu2 %v6601_v56 }
 0x5ec   :  { %2956 = vmatpush.bf16.msrb.mxu0 %v6604_v50 }
 0x5ed   :  { %3111 = vmatpush.bf16.msra.mxu1 %v6602_v5  ;;  %3137 = vmatpush.bf16.msrb.mxu3 %v6603_v18 }
 0x5ee   :  { %2982 = vmatpush.bf16.msra.mxu2 %v6605_v7 }
 0x5ef   :  { %2957 = vmatmul.bf16.vlgmr.msrb.gmra.mxu0 %v2778_v9 }
 0x5f0   :  { %3094 = vmatpush.bf16.msra.mxu0 %v6606_v24 }
 0x5f1   :  { %3112 = vmatpush.bf16.msra.mxu1 %v6608_v41  ;;  %3138 = vmatpush.bf16.msrb.mxu3 %v6609_v13 }
 0x5f2   :  { %3120 = vmatpush.bf16.msrb.mxu2 %v6607_v30  ;;  %v6660_v30 = vld [vmem:[#allocation27_spill] sm:$0xff] }
 0x5f3   :  { %2983 = vmatmul.bf16.vlgmr.msra.gmra.mxu2 %v2778_v9  ;;  %v6655_v9 = vld [vmem:[#allocation104_spill] sm:$0xff] }
 0x5f4   :  { %3095 = vmatpush.bf16.msra.mxu0 %v6610_v48 }
 0x5f5   :  { %3113 = vmatpush.bf16.msra.mxu1 %v6612_v45  ;;  %3139 = vmatpush.bf16.msrb.mxu3 %v6613_v11 }
 0x5f6   :  { %3121 = vmatpush.bf16.msrb.mxu2 %v6611_v20 }
 0x5f8   :  { %3096 = vmatpush.bf16.msra.mxu0 %v6614_v4  ;;  %v6661_v4 = vld [vmem:[#allocation20_spill] sm:$0xff] }
 0x5f9   :  { %3114 = vmatpush.bf16.msra.mxu1 %v6616_v17  ;;  %3140 = vmatpush.bf16.msrb.mxu3 %v6617_v58 }
 0x5fa   :  { %3122 = vmatpush.bf16.msrb.mxu2 %v6615_v29 }
 0x5fc   :  { %3097 = vmatpush.bf16.msra.mxu0 %v6620_v26 }
 0x5fd   :  { %3159 = vmatpush.bf16.msrb.mxu1 %v6618_v61  ;;  %3185 = vmatpush.bf16.msra.mxu3 %v6619_v0 }
 0x5fe   :  { %3123 = vmatpush.bf16.msrb.mxu2 %v6621_v14 }
 0x600   :  { %3098 = vmatpush.bf16.msra.mxu0 %v6624_v19 }
 0x601   :  { %3160 = vmatpush.bf16.msrb.mxu1 %v6622_v55  ;;  %3186 = vmatpush.bf16.msra.mxu3 %v6623_v53 }
 0x602   :  { %3124 = vmatpush.bf16.msrb.mxu2 %v6625_v34  ;;  %v6662_v34 = vld [vmem:[#allocation15_spill] sm:$0xff] }
 0x604   :  { %3099 = vmatpush.bf16.msra.mxu0 %v6628_v6 }
 0x605   :  { %3161 = vmatpush.bf16.msrb.mxu1 %v6626_v62  ;;  %3187 = vmatpush.bf16.msra.mxu3 %v6627_v37 }
 0x606   :  { %3125 = vmatpush.bf16.msrb.mxu2 %v6629_v21 }
 0x608   :  { %3100 = vmatpush.bf16.msra.mxu0 %v6632_v15 }
 0x609   :  { %3162 = vmatpush.bf16.msrb.mxu1 %v6630_v25  ;;  %3188 = vmatpush.bf16.msra.mxu3 %v6631_v59 }
 0x60a   :  { %3126 = vmatpush.bf16.msrb.mxu2 %v6633_v46 }
 0x60c   :  { %3101 = vmatpush.bf16.msra.mxu0 %v6636_v42 }
 0x60d   :  { %3163 = vmatpush.bf16.msrb.mxu1 %v6634_v23  ;;  %3189 = vmatpush.bf16.msra.mxu3 %v6635_v27 }
 0x60e   :  { %3127 = vmatpush.bf16.msrb.mxu2 %v6637_v1  ;;  %v6663_v1 = vld [vmem:[#allocation23_spill] sm:$0xff] }
 0x610   :  { %3146 = vmatpush.bf16.msrb.mxu0 %v6638_v54 }
 0x611   :  { %3164 = vmatpush.bf16.msrb.mxu1 %v6640_v2  ;;  %3190 = vmatpush.bf16.msra.mxu3 %v6641_v31 }
 0x612   :  { %3172 = vmatpush.bf16.msra.mxu2 %v6639_v63 }
 0x614   :  { %3147 = vmatpush.bf16.msrb.mxu0 %v6642_v60 }
 0x615   :  { %3165 = vmatpush.bf16.msrb.mxu1 %v6644_v36  ;;  %3191 = vmatpush.bf16.msra.mxu3 %v6645_v39 }
 0x616   :  { %3173 = vmatpush.bf16.msra.mxu2 %v6643_v57 }
 0x618   :  { %3148 = vmatpush.bf16.msrb.mxu0 %v6646_v16 }
 0x619   :  { %3166 = vmatpush.bf16.msrb.mxu1 %v6648_v44  ;;  %3192 = vmatpush.bf16.msra.mxu3 %v6649_v32 }
 0x61a   :  { %3174 = vmatpush.bf16.msra.mxu2 %v6647_v22 }
 0x61c   :  { %3149 = vmatpush.bf16.msrb.mxu0 %v6650_v8 }
 0x61e   :  { %3175 = vmatpush.bf16.msra.mxu2 %v6651_v51 }
 0x620   :  { %3150 = vmatpush.bf16.msrb.mxu0 %v6652_v43 }
 0x622   :  { %3176 = vmatpush.bf16.msra.mxu2 %v6653_v33 }
 0x624   :  { %3151 = vmatpush.bf16.msrb.mxu0 %v6654_v47 }
 0x626   :  { %3177 = vmatpush.bf16.msra.mxu2 %v6655_v9 }
 0x628   :  { %3152 = vmatpush.bf16.msrb.mxu0 %v6656_v3 }
 0x62a   :  { %3178 = vmatpush.bf16.msra.mxu2 %v6657_v12 }
 0x62c   :  { %3153 = vmatpush.bf16.msrb.mxu0 %v6658_v35 }
 0x62e   :  { %3179 = vmatpush.bf16.msra.mxu2 %v6659_v52 }
 0x639   :  { %v2804_v56 = vpop.f32.mrf.mxu1 }
 0x63f   :  { %v2830_v5 = vpop.f32.mrf.mxu3 }
 0x641   :  { %v2806_v18 = vpop.f32.mrf.mxu1 }
 0x647   :  { %v2832_v50 = vpop.f32.mrf.mxu3 }
 0x649   :  { %v2856_v7 = vpop.f32.mrf.mxu1 }
 0x64c   :  { %v2791_v24 = vpop.f32.mrf.mxu0 }
 0x64d   :  { %v2792_v41 = vadd.f32 %v2791_v24, %v6660_v30 }
 0x64f   :  { %v2805_v13 = vadd.f32 %v2804_v56, %v2792_v41  ;;  %v2882_v48 = vpop.f32.mrf.mxu3 }
 0x651   :  { %v3781_v20 = vmul.f32 -1.442695, %v2805_v13  ;;  %v2858_v45 = vpop.f32.mrf.mxu1 }
 0x652   :  { %v2817_v11 = vpop.f32.mrf.mxu2 }
 0x653   :  { %4114 = vpow2.f32 %v3781_v20  ;;  %v2818_v29 = vadd.f32 %v2817_v11, %v6661_v4 }
 0x654   :  { %v2793_v17 = vpop.f32.mrf.mxu0 }
 0x655   :  { %v2831_v58 = vadd.f32 %v2830_v5, %v2818_v29 }
 0x657   :  { %v3782_v61 = vmul.f32 -1.442695, %v2831_v58  ;;  %v2884_v0 = vpop.f32.mrf.mxu3 }
 0x659   :  { %v4115_v26 = vpop.eup %4114  ;;  %4116 = vpow2.f32 %v3782_v61  ;;  %v2971_v14 = vpop.f32.mrf.mxu1 }
 0x65a   :  { %v2889_v55 = vadd.f32 1.0, %v4115_v26  ;;  %v3006_v53 = vrot.slane %v2971_v14, 2  ;;  %v2819_v19 = vpop.f32.mrf.mxu2 }
 0x65c   :  { %4118 = vrcp.f32 %v2889_v55  ;;  %v3014_v62 = vadd.f32 %v3006_v53, %v6662_v34  ;;  %v2843_v37 = vpop.f32.mrf.mxu0  ;;  %v2901_v9 = vand.u32 2147483648, %v2889_v55  ;;  %vm2895_vm0 = vweird.f32 %v2889_v55 }
 0x65d   :  { %v2844_v36 = vadd.f32 %v2843_v37, %v6290_v10  ;;  %v2899_v5 = vand.u32 2147483647, %v2889_v55 }
 0x65e   :  { %v3785_v6 = vmul.f32 -1.442695, %v3014_v62 }
 0x65f   :  { %v4117_v21 = vpop.eup %4116  ;;  %v2857_v47 = vadd.f32 %v2856_v7, %v2844_v36  ;;  %vm2900_vm5 = vcmp.eq.f32.partialorder %v2899_v5, 8.507059e+37  ;;  %v6666_v36 = vld [vmem:[#allocation19_spill] sm:$0xff] }
 0x660   :  { %v2908_v25 = vadd.f32 1.0, %v4117_v21  ;;  %4120 = vpow2.f32 %v3785_v6 }
 0x661   :  { %v2997_v59 = vpop.f32.mrf.mxu3  ;;  %v2973_v46 = vpop.f32.mrf.mxu1 }
 0x662   :  { %v3008_v15 = vrot.slane %v2997_v59, 2  ;;  %v4119_v23 = vpop.eup %4118  ;;  %4122 = vrcp.f32 %v2908_v25  ;;  %v2869_v27 = vpop.f32.mrf.mxu2  ;;  %v2920_v3 = vand.u32 2147483648, %v2908_v25  ;;  %vm2914_vm1 = vweird.f32 %v2908_v25 }
 0x663   :  { %v2891_v42 = vmul.f32 %v4119_v23, %v2889_v55  ;;  %v2870_v54 = vadd.f32 %v2869_v27, %v6663_v1  ;;  %vm2896_vm14 = vweird.f32 %v4119_v23 }
 0x664   :  { %v2845_v63 = vpop.f32.mrf.mxu0  ;;  %v3016_v31 = vadd.f32 %v3008_v15, %v5332_v40  ;;  %v2918_v40 = vand.u32 2147483647, %v2908_v25  ;;  %vm5810_vm2 = vmor %vm2895_vm0, %vm2896_vm14  ;;  %v2921_v41 = vor.u32 1.1754944e-38, %v2920_v3 }
 0x665   :  { %v2892_v2 = vsub.f32 1.0, %v2891_v42  ;;  %v2883_v60 = vadd.f32 %v2882_v48, %v2870_v54  ;;  %v2902_v48 = vor.u32 1.1754944e-38, %v2901_v9 }
 0x666   :  { %v4121_v57 = vpop.eup %4120  ;;  %v3786_v8 = vmul.f32 -1.442695, %v3016_v31  ;;  %vm2919_vm4 = vcmp.eq.f32.partialorder %v2918_v40, 8.507059e+37 }
 0x667   :  { %v3783_v39 = vmul.f32 -1.442695, %v2883_v60  ;;  %v2893_v22 = vmul.f32 %v4119_v23, %v2892_v2  ;;  %v5807_v51 = vadd.f32 1.0, %v4121_v57 }
 0x668   :  { %v4123_v16 = vpop.eup %4122 }
 0x669   :  { %v2999_v44 = vpop.f32.mrf.mxu3  ;;  %v2910_v32 = vmul.f32 %v4123_v16, %v2908_v25  ;;  %4124 = vpow2.f32 %v3783_v39  ;;  %v2894_v12 = vadd.f32 %v4119_v23, %v2893_v22  ;;  %vm2915_vm15 = vweird.f32 %v4123_v16 }
 0x66a   :  { %v2871_v43 = vpop.f32.mrf.mxu2  ;;  %4126 = vpow2.f32 %v3786_v8  ;;  %vm2916_vm3 = vmor %vm2914_vm1, %vm2915_vm15  ;;  %vm3045_vm11 = vweird.f32 %v5807_v51  ;;  %v3051_v8 = vand.u32 2147483648, %v5807_v51  ;;  %v3049_v9 = vand.u32 2147483647, %v5807_v51 }
 0x66b   :  { %v2911_v33 = vsub.f32 1.0, %v2910_v32  ;;  %4128 = vrcp.f32 %v5807_v51  ;;  %v2898_v13 = vsel %vm5810_vm2, %v4119_v23, %v2894_v12 }
 0x66c   :  { %v2958_v35 = vpop.f32.mrf.mxu0  ;;  %4130 = vtanh.f32 %v2857_v47  ;;  %v2903_v58 = vsel %vm2900_vm5, %v2902_v48, %v2898_v13  ;;  %v3052_v5 = vor.u32 1.1754944e-38, %v3051_v8  ;;  %vm3050_vm15 = vcmp.eq.f32.partialorder %v3049_v9, 8.507059e+37  ;;  %v3268_v8 = vld [vmem:[#allocation8 + $0x38] sm:$0xff]  ;;  %v3267_v9 = vld [vmem:[#allocation8 + $0x30] sm:$0xff] }
 0x66d   :  { %v2912_v52 = vmul.f32 %v4123_v16, %v2911_v33  ;;  %v3005_v56 = vrot.slane %v2958_v35, 2 }
 0x66f   :  { %v2913_v50 = vadd.f32 %v4123_v16, %v2912_v52  ;;  %v3013_v7 = vadd.f32 %v3005_v56, %v5343_v28  ;;  %v4125_v24 = vpop.eup %4124 }
 0x670   :  { %v2928_v45 = vadd.f32 1.0, %v4125_v24  ;;  %v4127_v17 = vpop.eup %4126 }
 0x671   :  { %v2917_v20 = vsel %vm2916_vm3, %v4123_v16, %v2913_v50  ;;  %v3784_v11 = vmul.f32 -1.442695, %v3013_v7  ;;  %v5817_v0 = vpop.eup %4128  ;;  %v5822_v19 = vadd.f32 1.0, %v4127_v17 }
 0x672   :  { %v2922_v29 = vsel %vm2919_vm4, %v2921_v41, %v2917_v20  ;;  %4132 = vrcp.f32 %v2928_v45  ;;  %v4131_v14 = vpop.eup %4130  ;;  %v3041_v53 = vmul.f32 %v5817_v0, %v5807_v51  ;;  %v2940_v15 = vand.u32 2147483648, %v2928_v45 }
 0x673   :  { %v2944_v28 = vmul.f32 %v2922_v29, %v5672_v49  ;;  %4134 = vpow2.f32 %v3784_v11  ;;  %v2945_v55 = vmul.f32 %v4131_v14, %v2903_v58  ;;  %v2938_v23 = vand.u32 2147483647, %v2928_v45 }
 0x674   :  { %v2960_v26 = vpop.f32.mrf.mxu0  ;;  %v3042_v21 = vsub.f32 1.0, %v3041_v53  ;;  %4136 = vrcp.f32 %v5822_v19  ;;  %vm2934_vm7 = vweird.f32 %v2928_v45  ;;  %v2941_v2 = vor.u32 1.1754944e-38, %v2940_v15 }
 0x675   :  { %v5824_v34 = vadd.f32 %v2945_v55, %v2944_v28  ;;  %vm2939_vm9 = vcmp.eq.f32.partialorder %v2938_v23, 8.507059e+37  ;;  %vm3046_vm10 = vweird.f32 %v5817_v0  ;;  %v3076_v41 = vrot.slane %v5698_v38, 6 }
 0x676   :  { %v2984_v61 = vpop.f32.mrf.mxu2  ;;  %v3043_v27 = vmul.f32 %v5817_v0, %v3042_v21  ;;  %vm5835_vm12 = vmor %vm3045_vm11, %vm3046_vm10  ;;  %vm3065_vm3 = vweird.f32 %v5822_v19 }
 0x677   :  { %4138 = vtanh.f32 %v5824_v34  ;;  %v3007_v42 = vrot.slane %v2984_v61, 2  ;;  %v3071_v61 = vand.u32 2147483648, %v5822_v19 }
 0x678   :  { %v4133_v62 = vpop.eup %4132  ;;  %v3044_v16 = vadd.f32 %v5817_v0, %v3043_v27  ;;  %v3273_v27 = vld [vmem:[#allocation8 + $0x60] sm:$0xff] }
 0x679   :  { %v4135_v37 = vpop.eup %4134  ;;  %v2930_v6 = vmul.f32 %v4133_v62, %v2928_v45  ;;  %vm2935_vm6 = vweird.f32 %v4133_v62  ;;  %v3015_v39 = vadd.f32 %v3007_v42, %v6666_v36  ;;  %v3072_v28 = vor.u32 1.1754944e-38, %v3071_v61 }
 0x67a   :  { %v3020_v25 = vadd.f32 1.0, %v4135_v37  ;;  %v4137_v63 = vpop.eup %4136  ;;  %vm2936_vm8 = vmor %vm2934_vm7, %vm2935_vm6  ;;  %v3048_v40 = vsel %vm5835_vm12, %v5817_v0, %v3044_v16  ;;  %v3069_v0 = vand.u32 2147483647, %v5822_v19  ;;  %v3270_v16 = vld [vmem:[#allocation8 + $0x48] sm:$0xff] }
 0x67b   :  { %v2931_v49 = vsub.f32 1.0, %v2930_v6  ;;  %v3061_v43 = vmul.f32 %v4137_v63, %v5822_v19  ;;  %v3053_v51 = vsel %vm3050_vm15, %v3052_v5, %v3048_v40  ;;  %vm3066_vm2 = vweird.f32 %v4137_v63  ;;  %v3276_v19 = vld [vmem:[#allocation8 + $0x78] sm:$0xff] }
 0x67c   :  { %4140 = vrcp.f32 %v3020_v25  ;;  %v3032_v12 = vand.u32 2147483648, %v3020_v25  ;;  %v3030_v52 = vand.u32 2147483647, %v3020_v25  ;;  %vm3026_vm14 = vweird.f32 %v3020_v25  ;;  %vm3067_vm4 = vmor %vm3065_vm3, %vm3066_vm2  ;;  %v3264_v40 = vld [vmem:[#allocation8 + $0x18] sm:$0xff] }
 0x67d   :  { %v2932_v46 = vmul.f32 %v4133_v62, %v2931_v49  ;;  %v4139_v31 = vpop.eup %4138  ;;  %4142 = vtanh.f32 %v3015_v39  ;;  %v3062_v18 = vsub.f32 1.0, %v3061_v43  ;;  %v3078_v11 = vmul.f32 %v3076_v41, %v3053_v51  ;;  %v3275_v49 = vld [vmem:[#allocation8 + $0x70] sm:$0xff]  ;;  %v3261_v41 = vld [vmem:[#allocation8] sm:$0xff] }
 0x67e   :  { %v2986_v59 = vpop.f32.mrf.mxu2  ;;  %v3033_v24 = vor.u32 1.1754944e-38, %v3032_v12  ;;  %vm3031_vm1 = vcmp.eq.f32.partialorder %v3030_v52, 8.507059e+37  ;;  %vm3070_vm5 = vcmp.eq.f32.partialorder %v3069_v0, 8.507059e+37  ;;  %v3265_v12 = vld [vmem:[#allocation8 + $0x20] sm:$0xff]  ;;  %vm3301_vm2 = vcmask 74752  }
 0x67f   :  { %v2933_v54 = vadd.f32 %v4133_v62, %v2932_v46  ;;  %v3063_v20 = vmul.f32 %v4137_v63, %v3062_v18  ;;  %v3274_v46 = vld [vmem:[#allocation8 + $0x68] sm:$0xff] }
 0x681   :  { %v2937_v60 = vsel %vm2936_vm8, %v4133_v62, %v2933_v54  ;;  %v3064_v58 = vadd.f32 %v4137_v63, %v3063_v20 }
 0x682   :  { %v4141_v57 = vpop.eup %4140  ;;  %v2942_v22 = vsel %vm2939_vm9, %v2941_v2, %v2937_v60 }
 0x683   :  { %v3022_v44 = vmul.f32 %v4141_v57, %v3020_v25  ;;  %v2948_v32 = vmul.f32 %v4139_v31, %v2942_v22  ;;  %vm3027_vm13 = vweird.f32 %v4141_v57  ;;  %v4143_v48 = vpop.eup %4142  ;;  %v3068_v38 = vsel %vm3067_vm4, %v4137_v63, %v3064_v58  ;;  %v3272_v63 = vld [vmem:[#allocation8 + $0x58] sm:$0xff] }
 0x684   :  { %vm3028_vm0 = vmor %vm3026_vm14, %vm3027_vm13  ;;  %v3073_v14 = vsel %vm3070_vm5, %v3072_v28, %v3068_v38 }
 0x685   :  { %v3023_v47 = vsub.f32 1.0, %v3022_v44  ;;  %v3084_v3 = vrot.slane %v2948_v32, 2 }
 0x687   :  { %v3024_v35 = vmul.f32 %v4141_v57, %v3023_v47  ;;  %v3087_v56 = vpack.c.bf16 %v3084_v3, %v3084_v3 }
 0x689   :  { %v3025_v50 = vadd.f32 %v4141_v57, %v3024_v35  ;;  %v3091_v7 = vrot.slane %v3087_v56, 3  ;;  %v3263_v56 = vld [vmem:[#allocation8 + $0x10] sm:$0xff] }
 0x68b   :  { %v3029_v13 = vsel %vm3028_vm0, %v4141_v57, %v3025_v50  ;;  %3115 = vmatmul.bf16.vlgmr.msra.gmra.mxu1 %v3091_v7  ;;  %3141 = vmatmul.bf16.vlgmr.msrb.gmra.mxu3 %v3091_v7  ;;  %v3271_v57 = vld [vmem:[#allocation8 + $0x50] sm:$0xff]  ;;  %v3262_v50 = vld [vmem:[#allocation8 + $0x8] sm:$0xff] }
 0x68c   :  { %v3034_v45 = vsel %vm3031_vm1, %v3033_v24, %v3029_v13 }
 0x68d   :  { %v3079_v29 = vmul.f32 %v4143_v48, %v3034_v45 }
 0x68f   :  { %v3080_v17 = vadd.f32 %v3079_v29, %v3078_v11 }
 0x691   :  { %4144 = vtanh.f32 %v3080_v17 }
 0x697   :  { %v4145_v26 = vpop.eup %4144 }
 0x698   :  { %v3082_v55 = vmul.f32 %v4145_v26, %v3073_v14 }
 0x69a   :  { %v3086_v53 = vpack.c.bf16 %v3082_v55, %v3082_v55 }
 0x69b   :  { %3167 = vmatmul.bf16.vlgmr.msrb.gmra.mxu1 %v3091_v7  ;;  %3193 = vmatmul.bf16.vlgmr.msra.gmra.mxu3 %v3091_v7 }
 0x69c   :  { %v3090_v62 = vrot.slane %v3086_v53, 3 }
 0x69e   :  { %3102 = vmatmul.bf16.vlgmr.msra.gmra.mxu0 %v3090_v62  ;;  %3128 = vmatmul.bf16.vlgmr.msrb.gmra.mxu2 %v3090_v62 }
 0x69f   :  { %3281 = vmatpush.msra.mxu0 %v3276_v19 }
 0x6a1   :  { %3282 = vmatpush.msra.mxu0 %v3275_v49 }
 0x6a3   :  { %3283 = vmatpush.msra.mxu0 %v3274_v46 }
 0x6a5   :  { %3284 = vmatpush.msra.mxu0 %v3273_v27 }
 0x6a7   :  { %3285 = vmatpush.msra.mxu0 %v3272_v63 }
 0x6a9   :  { %3286 = vmatpush.msra.mxu0 %v3271_v57 }
 0x6ab   :  { %3287 = vmatpush.msra.mxu0 %v3270_v16 }
 0x6ae   :  { %3154 = vmatmul.bf16.vlgmr.msrb.gmra.mxu0 %v3090_v62  ;;  %3180 = vmatmul.bf16.vlgmr.msra.gmra.mxu2 %v3090_v62 }
 0x708   :  { %v3116_v37 = vpop.f32.mrf.mxu1 }
 0x70e   :  { %v3142_v6 = vpop.f32.mrf.mxu3 }
 0x710   :  { %v3118_v21 = vpop.f32.mrf.mxu1 }
 0x716   :  { %v3144_v25 = vpop.f32.mrf.mxu3 }
 0x718   :  { %v5847_v59 = vpop.f32.mrf.mxu1 }
 0x71b   :  { %v3103_v15 = vpop.f32.mrf.mxu0 }
 0x71c   :  { %v3104_v23 = vadd.f32 %v3103_v15, %v6660_v30  ;;  %v3269_v30 = vld [vmem:[#allocation8 + $0x40] sm:$0xff] }
 0x71d   :  { %3288 = vmatpush.msra.mxu0 %v3269_v30 }
 0x71e   :  { %v3117_v42 = vadd.f32 %v3116_v37, %v3104_v23  ;;  %v3194_v54 = vpop.f32.mrf.mxu3 }
 0x71f   :  { %3289 = vmatpush.msra.mxu0 %v3268_v8 }
 0x720   :  { %v3787_v2 = vmul.f32 -1.442695, %v3117_v42  ;;  %v3170_v31 = vpop.f32.mrf.mxu1 }
 0x721   :  { %v3129_v60 = vpop.f32.mrf.mxu2  ;;  %3290 = vmatpush.msra.mxu0 %v3267_v9 }
 0x722   :  { %4146 = vpow2.f32 %v3787_v2  ;;  %v3130_v36 = vadd.f32 %v3129_v60, %v6661_v4  ;;  %v3266_v4 = vld [vmem:[#allocation8 + $0x28] sm:$0xff] }
 0x723   :  { %v3105_v39 = vpop.f32.mrf.mxu0  ;;  %3291 = vmatpush.msra.mxu0 %v3266_v4 }
 0x724   :  { %v3143_v22 = vadd.f32 %v3142_v6, %v3130_v36 }
 0x725   :  { %3292 = vmatpush.msra.mxu0 %v3265_v12 }
 0x726   :  { %v3788_v44 = vmul.f32 -1.442695, %v3143_v22  ;;  %v3196_v32 = vpop.f32.mrf.mxu3  ;;  %v3905_v22 = vld [vmem:[%s5868_s7] ss:$0 sm:$0xff] }
 0x727   :  { %3293 = vmatpush.msra.mxu0 %v3264_v40 }
 0x728   :  { %v4147_v43 = vpop.eup %4146  ;;  %4148 = vpow2.f32 %v3788_v44 }
 0x729   :  { %v3201_v33 = vadd.f32 1.0, %v4147_v43  ;;  %v3131_v47 = vpop.f32.mrf.mxu2  ;;  %3294 = vmatpush.msra.mxu0 %v3263_v56 }
 0x72b   :  { %4150 = vrcp.f32 %v3201_v33  ;;  %v3155_v3 = vpop.f32.mrf.mxu0  ;;  %3295 = vmatpush.msra.mxu0 %v3262_v50  ;;  %v3213_v26 = vand.u32 2147483648, %v3201_v33  ;;  %vm3207_vm8 = vweird.f32 %v3201_v33  ;;  %v3211_v55 = vand.u32 2147483647, %v3201_v33 }
 0x72c   :  { %v3156_v20 = vadd.f32 %v3155_v3, %v6290_v10 }
 0x72d   :  { %3296 = vmatpush.msra.mxu0 %v3261_v41  ;;  %v3214_v21 = vor.u32 1.1754944e-38, %v3213_v26  ;;  %vm3212_vm13 = vcmp.eq.f32.partialorder %v3211_v55, 8.507059e+37 }
 0x72e   :  { %v4149_v35 = vpop.eup %4148  ;;  %v3169_v0 = vadd.f32 %v5847_v59, %v3156_v20 }
 0x72f   :  { %v3220_v52 = vadd.f32 1.0, %v4149_v35 }
 0x731   :  { %v4151_v5 = vpop.eup %4150  ;;  %4152 = vrcp.f32 %v3220_v52  ;;  %v3181_v18 = vpop.f32.mrf.mxu2  ;;  %v3232_v38 = vand.u32 2147483648, %v3220_v52  ;;  %v3230_v14 = vand.u32 2147483647, %v3220_v52  ;;  %vm3226_vm9 = vweird.f32 %v3220_v52 }
 0x732   :  { %v3203_v7 = vmul.f32 %v4151_v5, %v3201_v33  ;;  %v3182_v24 = vadd.f32 %v3181_v18, %v6663_v1  ;;  %vm3208_vm6 = vweird.f32 %v4151_v5 }
 0x733   :  { %v3157_v51 = vpop.f32.mrf.mxu0  ;;  %vm3209_vm10 = vmor %vm3207_vm8, %vm3208_vm6  ;;  %v3233_v62 = vor.u32 1.1754944e-38, %v3232_v38  ;;  %vm3231_vm12 = vcmp.eq.f32.partialorder %v3230_v14, 8.507059e+37 }
 0x734   :  { %v3204_v13 = vsub.f32 1.0, %v3203_v7  ;;  %v3195_v48 = vadd.f32 %v3194_v54, %v3182_v24 }
 0x736   :  { %v3789_v45 = vmul.f32 -1.442695, %v3195_v48  ;;  %v3205_v29 = vmul.f32 %v4151_v5, %v3204_v13 }
 0x737   :  { %v4153_v11 = vpop.eup %4152 }
 0x738   :  { %v3222_v17 = vmul.f32 %v4153_v11, %v3220_v52  ;;  %4154 = vpow2.f32 %v3789_v45  ;;  %v3206_v1 = vadd.f32 %v4151_v5, %v3205_v29  ;;  %vm3227_vm7 = vweird.f32 %v4153_v11 }
 0x739   :  { %v3183_v58 = vpop.f32.mrf.mxu2  ;;  %4156 = vtanh.f32 %v3169_v0  ;;  %vm3228_vm11 = vmor %vm3226_vm9, %vm3227_vm7 }
 0x73a   :  { %v3223_v61 = vsub.f32 1.0, %v3222_v17  ;;  %v3210_v37 = vsel %vm3209_vm10, %v4151_v5, %v3206_v1 }
 0x73b   :  { %v3215_v59 = vsel %vm3212_vm13, %v3214_v21, %v3210_v37 }
 0x73c   :  { %v3224_v28 = vmul.f32 %v4153_v11, %v3223_v61 }
 0x73e   :  { %v4155_v10 = vpop.eup %4154  ;;  %v3225_v53 = vadd.f32 %v4153_v11, %v3224_v28 }
 0x73f   :  { %v3240_v6 = vadd.f32 1.0, %v4155_v10  ;;  %v4157_v15 = vpop.eup %4156 }
 0x740   :  { %v3229_v25 = vsel %vm3228_vm11, %v4153_v11, %v3225_v53  ;;  %v3257_v46 = vmul.f32 %v4157_v15, %v3215_v59 }
 0x741   :  { %v3234_v19 = vsel %vm3231_vm12, %v3233_v62, %v3229_v25  ;;  %4158 = vrcp.f32 %v3240_v6  ;;  %v3252_v63 = vand.u32 2147483648, %v3240_v6  ;;  %v3250_v31 = vand.u32 2147483647, %v3240_v6 }
 0x742   :  { %v3256_v49 = vmul.f32 %v3234_v19, %v5824_v34  ;;  %vm3246_vm15 = vweird.f32 %v3240_v6 }
 0x743   :  { %v3253_v57 = vor.u32 1.1754944e-38, %v3252_v63  ;;  %vm3251_vm1 = vcmp.eq.f32.partialorder %v3250_v31, 8.507059e+37 }
 0x744   :  { %v3258_v27 = vadd.f32 %v3257_v46, %v3256_v49 }
 0x746   :  { %4160 = vtanh.f32 %v3258_v27 }
 0x747   :  { %v4159_v23 = vpop.eup %4158 }
 0x748   :  { %v3242_v42 = vmul.f32 %v4159_v23, %v3240_v6  ;;  %vm3247_vm14 = vweird.f32 %v4159_v23 }
 0x749   :  { %vm3248_vm0 = vmor %vm3246_vm15, %vm3247_vm14 }
 0x74a   :  { %v3243_v54 = vsub.f32 1.0, %v3242_v42 }
 0x74c   :  { %v3244_v2 = vmul.f32 %v4159_v23, %v3243_v54  ;;  %v4161_v39 = vpop.eup %4160 }
 0x74e   :  { %v3245_v60 = vadd.f32 %v4159_v23, %v3244_v2 }
 0x750   :  { %v3249_v36 = vsel %vm3248_vm0, %v4159_v23, %v3245_v60 }
 0x751   :  { %v3254_v16 = vsel %vm3251_vm1, %v3253_v57, %v3249_v36 }
 0x752   :  { %v3260_v34 = vmul.f32 %v4161_v39, %v3254_v16 }
 0x754   :  { %3297 = vmatmul.f32.vlgmr.msra.gmra.mxu0 %v3260_v34 }
 0x7d1   :  { %v3298_v30 = vpop.f32.mrf.mxu0 }
 0x7d2   :  { %v3299_v44 = vadd.f32 %v3905_v22, %v3298_v30 }
 0x7d4   :  { %3302 = vst.msk [vmem:[#allocation10] sm:$0x3] %vm3301_vm2, %v3299_v44 }
 0x7d5   :  { %3313 = dma.vmem_to_hbm [thread:$0]  %s3309_s11, 32, %s3311_s14, [#allocation4]  }
 0x7d6   :  { %4288 = dma.done.wait [#allocation4], 32  }
 0x7d7   :  { %4289 = vsyncadd [#allocation4], 4294967264 }
 0x7d8   :  { %3318 = vsyncpa [#allocation3], 1 }
 0x7d9   :  { %3319 = vsyncpa [#allocation6], 1 }
 0x7da   :  { %3320 = vsyncpa [#allocation9], 1 }
 0x7db   :  { %3321 = vsyncpa [#allocation4], 1 }

</bundles_post_ra>
